<compile_context>
chip_gen: v6e
topology: v6e:2x2x1
jax: 0.10.0
libtpu: 0.0.40
codegen_flags: <defaults>
</compile_context>

<pallas_src>
import jax
import jax.numpy as jnp
from jax.experimental import pallas as pl
from jax.experimental.pallas import tpu as pltpu


def _elu(v):
    # ELU, alpha = 1 (PyTorch default). Clamp before exp so the unselected
    # where-branch stays finite. (Same formula is used in the reference, so
    # the comparison is exact up to accumulation order.)
    return jnp.where(v > 0, v, jnp.exp(jnp.minimum(v, 0.0)) - 1.0)


def _make_resblock_kernel(H, W, C, K):
    P = (K - 1) // 2
    HW = H * W
    OFF = P * W + P                 # image offset inside the flat padded scratch
    L = HW + 2 * OFF                # flat padded length

    def conv_same_flat(pad_ref, w_ref, mask_ref):
        # pad_ref : (C, L) flat zero-padded input (halo already zero)
        # w_ref   : (Cout, K*K*Cin) packed as [co, (kh*K + kw)*C + ci]
        # mask_ref: (K, HW) column-validity mask per kw (kills row-wrapped taps)
        # Returns the SAME conv as a (C, HW) f32 slab.
        acc = jnp.zeros((C, HW), jnp.float32)
        for kh in range(K):
            for kw in range(K):
                start = kh * W + kw                      # contiguous lane slice
                win = pad_ref[:, start:start + HW] * mask_ref[kw:kw + 1, :]
                base = (kh * K + kw) * C
                for ci in range(C):
                    w_col = w_ref[:, base + ci:base + ci + 1]   # (Cout, 1)
                    acc = acc + w_col * win[ci:ci + 1, :]       # VPU FMA, lane-dense
        return acc

    def kernel(x_ref, w1_ref, w2_ref, mask_ref, o_ref, pad_ref):
        # x_ref: (1, C, HW)   o_ref: (1, C, HW)   pad_ref: (C, L) f32 scratch
        x_flat = x_ref[0].astype(jnp.float32)            # (C, HW)

        # conv1: zero-pad the input image (zero every step: safe under
        # megacore sharding of the parallel batch axis).
        pad_ref[...] = jnp.zeros_like(pad_ref)
        pad_ref[:, OFF:OFF + HW] = x_flat
        y = _elu(conv_same_flat(pad_ref, w1_ref, mask_ref))

        # conv2: zero-pad the ELU'd intermediate (matches PyTorch SAME conv on
        # the intermediate -- this is the correctness fix). Halo is still zero.
        pad_ref[:, OFF:OFF + HW] = y
        y2 = conv_same_flat(pad_ref, w2_ref, mask_ref)

        # residual add + final ELU; lane-dense (C, 256) store.
        o_ref[0] = _elu(y2 + x_flat).astype(o_ref.dtype)

    return kernel


def residual_block_forward(x_nchw, w1_oihw, w2_oihw):
    """x: (N, C, H, W); w1, w2: (Cout, Cin, K, K) (PyTorch layout). Returns NCHW."""
    N, C, H, W = x_nchw.shape
    K = w1_oihw.shape[-1]
    P = (K - 1) // 2
    HW = H * W
    L = HW + 2 * (P * W + P)

    # Free reshape: NCHW -> (N, C, H*W). No transpose, no pad, no extra HBM pass.
    x_flat = x_nchw.reshape(N, C, HW)

    # Pack weights once: (Cout, Cin, KH, KW) -> (Cout, KH*KW*Cin). Tiny tensors.
    wp1 = jnp.transpose(w1_oihw, (0, 2, 3, 1)).reshape(C, K * K * C)
    wp2 = jnp.transpose(w2_oihw, (0, 2, 3, 1)).reshape(C, K * K * C)

    # Per-kw column mask: zero out taps whose column index falls outside the
    # image (they would otherwise wrap to the adjacent row in the flat layout).
    col = jnp.arange(HW, dtype=jnp.int32) % W
    masks = jnp.stack(
        [((col + kw - P >= 0) & (col + kw - P < W)).astype(jnp.float32)
         for kw in range(K)], axis=0)                     # (K, HW)

    kernel = _make_resblock_kernel(H, W, C, K)

    out_flat = pl.pallas_call(
        kernel,
        out_shape=jax.ShapeDtypeStruct((N, C, HW), x_nchw.dtype),
        grid_spec=pltpu.PrefetchScalarGridSpec(
            num_scalar_prefetch=0,
            grid=(N,),
            in_specs=[
                pl.BlockSpec((1, C, HW), lambda n: (n, 0, 0)),
                # Grid-invariant index maps: weights / mask are fetched once.
                pl.BlockSpec((C, K * K * C), lambda n: (0, 0)),
                pl.BlockSpec((C, K * K * C), lambda n: (0, 0)),
                pl.BlockSpec((K, HW), lambda n: (0, 0)),
            ],
            out_specs=pl.BlockSpec((1, C, HW), lambda n: (n, 0, 0)),
            scratch_shapes=[pltpu.VMEM((C, L), jnp.float32)],
        ),
        compiler_params=pltpu.CompilerParams(
            dimension_semantics=("parallel",)),
    )(x_flat, wp1, wp2, masks)

    return out_flat.reshape(N, C, H, W)   # free reshape back to NCHW


def _reference_forward(x_nchw, w1_oihw, w2_oihw):
    """Pure-JAX reference mirroring the PyTorch module (full f32 precision)."""
    dn = ("NCHW", "OIHW", "NCHW")

    def conv(v, w):
        return jax.lax.conv_general_dilated(
            v, w, window_strides=(1, 1), padding="SAME",
            dimension_numbers=dn, precision=jax.lax.Precision.HIGHEST)

    y = _elu(conv(x_nchw, w1_oihw))
    return _elu(conv(y, w2_oihw) + x_nchw)


if __name__ == "__main__":
    # batch=2, in_planes=4, spatial=16x16, kernel_size=3 (module defaults).
    N, C, H, W, K = 2, 4, 16, 16, 3

    key = jax.random.PRNGKey(0)
    kx, k1, k2 = jax.random.split(key, 3)

    x = jax.random.normal(kx, (N, C, H, W), dtype=jnp.float32)
    # Conv weights in PyTorch OIHW layout, roughly torch-like init scale.
    scale = 1.0 / (C * K * K) ** 0.5
    w1 = scale * jax.random.normal(k1, (C, C, K, K), dtype=jnp.float32)
    w2 = scale * jax.random.normal(k2, (C, C, K, K), dtype=jnp.float32)

    out = jax.block_until_ready(residual_block_forward(x, w1, w2))
    ref = _reference_forward(x, w1, w2)

    assert out.shape == (N, C, H, W)
    max_err = float(jnp.max(jnp.abs(out - ref)))
    assert jnp.allclose(out, ref, atol=1e-4, rtol=1e-4), f"max abs err {max_err}"

    print("KERNEL_OK")
</pallas_src>

<mosaic_0001>
module attributes {stable_mosaic.version = 11 : i64} {
  func.func @kernel(%arg0: i32, %arg1: memref<1x4x256xf32, #tpu.memory_space<vmem>>, %arg2: memref<4x36xf32, #tpu.memory_space<vmem>>, %arg3: memref<4x36xf32, #tpu.memory_space<vmem>>, %arg4: memref<3x256xf32, #tpu.memory_space<vmem>>, %arg5: memref<1x4x256xf32, #tpu.memory_space<vmem>>, %arg6: memref<4x290xf32, #tpu.memory_space<vmem>>) attributes {dimension_semantics = [#tpu.dimension_semantics<parallel>], iteration_bounds = array<i64: 2>, scalar_prefetch = 0 : i64, scratch_operands = 1 : i64, tpu.core_type = #tpu.core_type<tc>, window_params = [{transform_indices = @transform_0, window_bounds = array<i64: 1, 4, 256>}, {pipeline_mode = #tpu.pipeline_mode<synchronous>, transform_indices = @transform_1, window_bounds = array<i64: 4, 36>}, {pipeline_mode = #tpu.pipeline_mode<synchronous>, transform_indices = @transform_2, window_bounds = array<i64: 4, 36>}, {pipeline_mode = #tpu.pipeline_mode<synchronous>, transform_indices = @transform_3, window_bounds = array<i64: 3, 256>}, {transform_indices = @transform_4, window_bounds = array<i64: 1, 4, 256>}]} {
    %c0 = arith.constant 0 : index
    %c0_0 = arith.constant 0 : index
    %c0_1 = arith.constant 0 : index
    %0 = vector.load %arg1[%c0, %c0_0, %c0_1] : memref<1x4x256xf32, #tpu.memory_space<vmem>>, vector<1x4x256xf32>
    %1 = vector.shape_cast %0 : vector<1x4x256xf32> to vector<4x256xf32>
    %cst = arith.constant 0.000000e+00 : f32
    %2 = vector.broadcast %cst : f32 to vector<4x290xf32>
    %c0_2 = arith.constant 0 : index
    %c0_3 = arith.constant 0 : index
    %3 = vector.load %arg6[%c0_2, %c0_3] : memref<4x290xf32, #tpu.memory_space<vmem>>, vector<4x290xf32>
    tpu.vector_store %arg6[%c0_2, %c0_3], %2 {strides = array<i32>} : memref<4x290xf32, #tpu.memory_space<vmem>>, vector<4x290xf32>,
    %c0_4 = arith.constant 0 : index
    %c17 = arith.constant 17 : index
    %4 = vector.load %arg6[%c0_4, %c17] : memref<4x290xf32, #tpu.memory_space<vmem>>, vector<4x256xf32>
    tpu.vector_store %arg6[%c0_4, %c17], %1 {strides = array<i32>} : memref<4x290xf32, #tpu.memory_space<vmem>>, vector<4x256xf32>,
    %cst_5 = arith.constant 0.000000e+00 : f32
    %5 = vector.broadcast %cst_5 : f32 to vector<4x256xf32>
    %c0_6 = arith.constant 0 : index
    %c0_7 = arith.constant 0 : index
    %6 = vector.load %arg6[%c0_6, %c0_7] : memref<4x290xf32, #tpu.memory_space<vmem>>, vector<4x256xf32>
    %c0_8 = arith.constant 0 : index
    %c0_9 = arith.constant 0 : index
    %7 = vector.load %arg4[%c0_8, %c0_9] : memref<3x256xf32, #tpu.memory_space<vmem>>, vector<1x256xf32>
    %8 = vector.broadcast %7 : vector<1x256xf32> to vector<4x256xf32>
    %9 = arith.mulf %6, %8 : vector<4x256xf32>
    %c0_10 = arith.constant 0 : index
    %c0_11 = arith.constant 0 : index
    %10 = vector.load %arg2[%c0_10, %c0_11] : memref<4x36xf32, #tpu.memory_space<vmem>>, vector<4x1xf32>
    %11 = vector.extract_strided_slice %9 {offsets = [0, 0], sizes = [1, 256], strides = [1, 1]} : vector<4x256xf32> to vector<1x256xf32>
    %12 = vector.broadcast %10 : vector<4x1xf32> to vector<4x256xf32>
    %13 = vector.broadcast %11 : vector<1x256xf32> to vector<4x256xf32>
    %14 = arith.mulf %12, %13 : vector<4x256xf32>
    %15 = arith.addf %5, %14 : vector<4x256xf32>
    %c0_12 = arith.constant 0 : index
    %c1 = arith.constant 1 : index
    %16 = vector.load %arg2[%c0_12, %c1] : memref<4x36xf32, #tpu.memory_space<vmem>>, vector<4x1xf32>
    %17 = vector.extract_strided_slice %9 {offsets = [1, 0], sizes = [1, 256], strides = [1, 1]} : vector<4x256xf32> to vector<1x256xf32>
    %18 = vector.broadcast %16 : vector<4x1xf32> to vector<4x256xf32>
    %19 = vector.broadcast %17 : vector<1x256xf32> to vector<4x256xf32>
    %20 = arith.mulf %18, %19 : vector<4x256xf32>
    %21 = arith.addf %15, %20 : vector<4x256xf32>
    %c0_13 = arith.constant 0 : index
    %c2 = arith.constant 2 : index
    %22 = vector.load %arg2[%c0_13, %c2] : memref<4x36xf32, #tpu.memory_space<vmem>>, vector<4x1xf32>
    %23 = vector.extract_strided_slice %9 {offsets = [2, 0], sizes = [1, 256], strides = [1, 1]} : vector<4x256xf32> to vector<1x256xf32>
    %24 = vector.broadcast %22 : vector<4x1xf32> to vector<4x256xf32>
    %25 = vector.broadcast %23 : vector<1x256xf32> to vector<4x256xf32>
    %26 = arith.mulf %24, %25 : vector<4x256xf32>
    %27 = arith.addf %21, %26 : vector<4x256xf32>
    %c0_14 = arith.constant 0 : index
    %c3 = arith.constant 3 : index
    %28 = vector.load %arg2[%c0_14, %c3] : memref<4x36xf32, #tpu.memory_space<vmem>>, vector<4x1xf32>
    %29 = vector.extract_strided_slice %9 {offsets = [3, 0], sizes = [1, 256], strides = [1, 1]} : vector<4x256xf32> to vector<1x256xf32>
    %30 = vector.broadcast %28 : vector<4x1xf32> to vector<4x256xf32>
    %31 = vector.broadcast %29 : vector<1x256xf32> to vector<4x256xf32>
    %32 = arith.mulf %30, %31 : vector<4x256xf32>
    %33 = arith.addf %27, %32 : vector<4x256xf32>
    %c0_15 = arith.constant 0 : index
    %c1_16 = arith.constant 1 : index
    %34 = vector.load %arg6[%c0_15, %c1_16] : memref<4x290xf32, #tpu.memory_space<vmem>>, vector<4x256xf32>
    %c1_17 = arith.constant 1 : index
    %c0_18 = arith.constant 0 : index
    %35 = vector.load %arg4[%c1_17, %c0_18] : memref<3x256xf32, #tpu.memory_space<vmem>>, vector<1x256xf32>
    %36 = vector.broadcast %35 : vector<1x256xf32> to vector<4x256xf32>
    %37 = arith.mulf %34, %36 : vector<4x256xf32>
    %c0_19 = arith.constant 0 : index
    %c4 = arith.constant 4 : index
    %38 = vector.load %arg2[%c0_19, %c4] : memref<4x36xf32, #tpu.memory_space<vmem>>, vector<4x1xf32>
    %39 = vector.extract_strided_slice %37 {offsets = [0, 0], sizes = [1, 256], strides = [1, 1]} : vector<4x256xf32> to vector<1x256xf32>
    %40 = vector.broadcast %38 : vector<4x1xf32> to vector<4x256xf32>
    %41 = vector.broadcast %39 : vector<1x256xf32> to vector<4x256xf32>
    %42 = arith.mulf %40, %41 : vector<4x256xf32>
    %43 = arith.addf %33, %42 : vector<4x256xf32>
    %c0_20 = arith.constant 0 : index
    %c5 = arith.constant 5 : index
    %44 = vector.load %arg2[%c0_20, %c5] : memref<4x36xf32, #tpu.memory_space<vmem>>, vector<4x1xf32>
    %45 = vector.extract_strided_slice %37 {offsets = [1, 0], sizes = [1, 256], strides = [1, 1]} : vector<4x256xf32> to vector<1x256xf32>
    %46 = vector.broadcast %44 : vector<4x1xf32> to vector<4x256xf32>
    %47 = vector.broadcast %45 : vector<1x256xf32> to vector<4x256xf32>
    %48 = arith.mulf %46, %47 : vector<4x256xf32>
    %49 = arith.addf %43, %48 : vector<4x256xf32>
    %c0_21 = arith.constant 0 : index
    %c6 = arith.constant 6 : index
    %50 = vector.load %arg2[%c0_21, %c6] : memref<4x36xf32, #tpu.memory_space<vmem>>, vector<4x1xf32>
    %51 = vector.extract_strided_slice %37 {offsets = [2, 0], sizes = [1, 256], strides = [1, 1]} : vector<4x256xf32> to vector<1x256xf32>
    %52 = vector.broadcast %50 : vector<4x1xf32> to vector<4x256xf32>
    %53 = vector.broadcast %51 : vector<1x256xf32> to vector<4x256xf32>
    %54 = arith.mulf %52, %53 : vector<4x256xf32>
    %55 = arith.addf %49, %54 : vector<4x256xf32>
    %c0_22 = arith.constant 0 : index
    %c7 = arith.constant 7 : index
    %56 = vector.load %arg2[%c0_22, %c7] : memref<4x36xf32, #tpu.memory_space<vmem>>, vector<4x1xf32>
    %57 = vector.extract_strided_slice %37 {offsets = [3, 0], sizes = [1, 256], strides = [1, 1]} : vector<4x256xf32> to vector<1x256xf32>
    %58 = vector.broadcast %56 : vector<4x1xf32> to vector<4x256xf32>
    %59 = vector.broadcast %57 : vector<1x256xf32> to vector<4x256xf32>
    %60 = arith.mulf %58, %59 : vector<4x256xf32>
    %61 = arith.addf %55, %60 : vector<4x256xf32>
    %c0_23 = arith.constant 0 : index
    %c2_24 = arith.constant 2 : index
    %62 = vector.load %arg6[%c0_23, %c2_24] : memref<4x290xf32, #tpu.memory_space<vmem>>, vector<4x256xf32>
    %c2_25 = arith.constant 2 : index
    %c0_26 = arith.constant 0 : index
    %63 = vector.load %arg4[%c2_25, %c0_26] : memref<3x256xf32, #tpu.memory_space<vmem>>, vector<1x256xf32>
    %64 = vector.broadcast %63 : vector<1x256xf32> to vector<4x256xf32>
    %65 = arith.mulf %62, %64 : vector<4x256xf32>
    %c0_27 = arith.constant 0 : index
    %c8 = arith.constant 8 : index
    %66 = vector.load %arg2[%c0_27, %c8] : memref<4x36xf32, #tpu.memory_space<vmem>>, vector<4x1xf32>
    %67 = vector.extract_strided_slice %65 {offsets = [0, 0], sizes = [1, 256], strides = [1, 1]} : vector<4x256xf32> to vector<1x256xf32>
    %68 = vector.broadcast %66 : vector<4x1xf32> to vector<4x256xf32>
    %69 = vector.broadcast %67 : vector<1x256xf32> to vector<4x256xf32>
    %70 = arith.mulf %68, %69 : vector<4x256xf32>
    %71 = arith.addf %61, %70 : vector<4x256xf32>
    %c0_28 = arith.constant 0 : index
    %c9 = arith.constant 9 : index
    %72 = vector.load %arg2[%c0_28, %c9] : memref<4x36xf32, #tpu.memory_space<vmem>>, vector<4x1xf32>
    %73 = vector.extract_strided_slice %65 {offsets = [1, 0], sizes = [1, 256], strides = [1, 1]} : vector<4x256xf32> to vector<1x256xf32>
    %74 = vector.broadcast %72 : vector<4x1xf32> to vector<4x256xf32>
    %75 = vector.broadcast %73 : vector<1x256xf32> to vector<4x256xf32>
    %76 = arith.mulf %74, %75 : vector<4x256xf32>
    %77 = arith.addf %71, %76 : vector<4x256xf32>
    %c0_29 = arith.constant 0 : index
    %c10 = arith.constant 10 : index
    %78 = vector.load %arg2[%c0_29, %c10] : memref<4x36xf32, #tpu.memory_space<vmem>>, vector<4x1xf32>
    %79 = vector.extract_strided_slice %65 {offsets = [2, 0], sizes = [1, 256], strides = [1, 1]} : vector<4x256xf32> to vector<1x256xf32>
    %80 = vector.broadcast %78 : vector<4x1xf32> to vector<4x256xf32>
    %81 = vector.broadcast %79 : vector<1x256xf32> to vector<4x256xf32>
    %82 = arith.mulf %80, %81 : vector<4x256xf32>
    %83 = arith.addf %77, %82 : vector<4x256xf32>
    %c0_30 = arith.constant 0 : index
    %c11 = arith.constant 11 : index
    %84 = vector.load %arg2[%c0_30, %c11] : memref<4x36xf32, #tpu.memory_space<vmem>>, vector<4x1xf32>
    %85 = vector.extract_strided_slice %65 {offsets = [3, 0], sizes = [1, 256], strides = [1, 1]} : vector<4x256xf32> to vector<1x256xf32>
    %86 = vector.broadcast %84 : vector<4x1xf32> to vector<4x256xf32>
    %87 = vector.broadcast %85 : vector<1x256xf32> to vector<4x256xf32>
    %88 = arith.mulf %86, %87 : vector<4x256xf32>
    %89 = arith.addf %83, %88 : vector<4x256xf32>
    %c0_31 = arith.constant 0 : index
    %c16 = arith.constant 16 : index
    %90 = vector.load %arg6[%c0_31, %c16] : memref<4x290xf32, #tpu.memory_space<vmem>>, vector<4x256xf32>
    %c0_32 = arith.constant 0 : index
    %c0_33 = arith.constant 0 : index
    %91 = vector.load %arg4[%c0_32, %c0_33] : memref<3x256xf32, #tpu.memory_space<vmem>>, vector<1x256xf32>
    %92 = vector.broadcast %91 : vector<1x256xf32> to vector<4x256xf32>
    %93 = arith.mulf %90, %92 : vector<4x256xf32>
    %c0_34 = arith.constant 0 : index
    %c12 = arith.constant 12 : index
    %94 = vector.load %arg2[%c0_34, %c12] : memref<4x36xf32, #tpu.memory_space<vmem>>, vector<4x1xf32>
    %95 = vector.extract_strided_slice %93 {offsets = [0, 0], sizes = [1, 256], strides = [1, 1]} : vector<4x256xf32> to vector<1x256xf32>
    %96 = vector.broadcast %94 : vector<4x1xf32> to vector<4x256xf32>
    %97 = vector.broadcast %95 : vector<1x256xf32> to vector<4x256xf32>
    %98 = arith.mulf %96, %97 : vector<4x256xf32>
    %99 = arith.addf %89, %98 : vector<4x256xf32>
    %c0_35 = arith.constant 0 : index
    %c13 = arith.constant 13 : index
    %100 = vector.load %arg2[%c0_35, %c13] : memref<4x36xf32, #tpu.memory_space<vmem>>, vector<4x1xf32>
    %101 = vector.extract_strided_slice %93 {offsets = [1, 0], sizes = [1, 256], strides = [1, 1]} : vector<4x256xf32> to vector<1x256xf32>
    %102 = vector.broadcast %100 : vector<4x1xf32> to vector<4x256xf32>
    %103 = vector.broadcast %101 : vector<1x256xf32> to vector<4x256xf32>
    %104 = arith.mulf %102, %103 : vector<4x256xf32>
    %105 = arith.addf %99, %104 : vector<4x256xf32>
    %c0_36 = arith.constant 0 : index
    %c14 = arith.constant 14 : index
    %106 = vector.load %arg2[%c0_36, %c14] : memref<4x36xf32, #tpu.memory_space<vmem>>, vector<4x1xf32>
    %107 = vector.extract_strided_slice %93 {offsets = [2, 0], sizes = [1, 256], strides = [1, 1]} : vector<4x256xf32> to vector<1x256xf32>
    %108 = vector.broadcast %106 : vector<4x1xf32> to vector<4x256xf32>
    %109 = vector.broadcast %107 : vector<1x256xf32> to vector<4x256xf32>
    %110 = arith.mulf %108, %109 : vector<4x256xf32>
    %111 = arith.addf %105, %110 : vector<4x256xf32>
    %c0_37 = arith.constant 0 : index
    %c15 = arith.constant 15 : index
    %112 = vector.load %arg2[%c0_37, %c15] : memref<4x36xf32, #tpu.memory_space<vmem>>, vector<4x1xf32>
    %113 = vector.extract_strided_slice %93 {offsets = [3, 0], sizes = [1, 256], strides = [1, 1]} : vector<4x256xf32> to vector<1x256xf32>
    %114 = vector.broadcast %112 : vector<4x1xf32> to vector<4x256xf32>
    %115 = vector.broadcast %113 : vector<1x256xf32> to vector<4x256xf32>
    %116 = arith.mulf %114, %115 : vector<4x256xf32>
    %117 = arith.addf %111, %116 : vector<4x256xf32>
    %c0_38 = arith.constant 0 : index
    %c17_39 = arith.constant 17 : index
    %118 = vector.load %arg6[%c0_38, %c17_39] : memref<4x290xf32, #tpu.memory_space<vmem>>, vector<4x256xf32>
    %c1_40 = arith.constant 1 : index
    %c0_41 = arith.constant 0 : index
    %119 = vector.load %arg4[%c1_40, %c0_41] : memref<3x256xf32, #tpu.memory_space<vmem>>, vector<1x256xf32>
    %120 = vector.broadcast %119 : vector<1x256xf32> to vector<4x256xf32>
    %121 = arith.mulf %118, %120 : vector<4x256xf32>
    %c0_42 = arith.constant 0 : index
    %c16_43 = arith.constant 16 : index
    %122 = vector.load %arg2[%c0_42, %c16_43] : memref<4x36xf32, #tpu.memory_space<vmem>>, vector<4x1xf32>
    %123 = vector.extract_strided_slice %121 {offsets = [0, 0], sizes = [1, 256], strides = [1, 1]} : vector<4x256xf32> to vector<1x256xf32>
    %124 = vector.broadcast %122 : vector<4x1xf32> to vector<4x256xf32>
    %125 = vector.broadcast %123 : vector<1x256xf32> to vector<4x256xf32>
    %126 = arith.mulf %124, %125 : vector<4x256xf32>
    %127 = arith.addf %117, %126 : vector<4x256xf32>
    %c0_44 = arith.constant 0 : index
    %c17_45 = arith.constant 17 : index
    %128 = vector.load %arg2[%c0_44, %c17_45] : memref<4x36xf32, #tpu.memory_space<vmem>>, vector<4x1xf32>
    %129 = vector.extract_strided_slice %121 {offsets = [1, 0], sizes = [1, 256], strides = [1, 1]} : vector<4x256xf32> to vector<1x256xf32>
    %130 = vector.broadcast %128 : vector<4x1xf32> to vector<4x256xf32>
    %131 = vector.broadcast %129 : vector<1x256xf32> to vector<4x256xf32>
    %132 = arith.mulf %130, %131 : vector<4x256xf32>
    %133 = arith.addf %127, %132 : vector<4x256xf32>
    %c0_46 = arith.constant 0 : index
    %c18 = arith.constant 18 : index
    %134 = vector.load %arg2[%c0_46, %c18] : memref<4x36xf32, #tpu.memory_space<vmem>>, vector<4x1xf32>
    %135 = vector.extract_strided_slice %121 {offsets = [2, 0], sizes = [1, 256], strides = [1, 1]} : vector<4x256xf32> to vector<1x256xf32>
    %136 = vector.broadcast %134 : vector<4x1xf32> to vector<4x256xf32>
    %137 = vector.broadcast %135 : vector<1x256xf32> to vector<4x256xf32>
    %138 = arith.mulf %136, %137 : vector<4x256xf32>
    %139 = arith.addf %133, %138 : vector<4x256xf32>
    %c0_47 = arith.constant 0 : index
    %c19 = arith.constant 19 : index
    %140 = vector.load %arg2[%c0_47, %c19] : memref<4x36xf32, #tpu.memory_space<vmem>>, vector<4x1xf32>
    %141 = vector.extract_strided_slice %121 {offsets = [3, 0], sizes = [1, 256], strides = [1, 1]} : vector<4x256xf32> to vector<1x256xf32>
    %142 = vector.broadcast %140 : vector<4x1xf32> to vector<4x256xf32>
    %143 = vector.broadcast %141 : vector<1x256xf32> to vector<4x256xf32>
    %144 = arith.mulf %142, %143 : vector<4x256xf32>
    %145 = arith.addf %139, %144 : vector<4x256xf32>
    %c0_48 = arith.constant 0 : index
    %c18_49 = arith.constant 18 : index
    %146 = vector.load %arg6[%c0_48, %c18_49] : memref<4x290xf32, #tpu.memory_space<vmem>>, vector<4x256xf32>
    %c2_50 = arith.constant 2 : index
    %c0_51 = arith.constant 0 : index
    %147 = vector.load %arg4[%c2_50, %c0_51] : memref<3x256xf32, #tpu.memory_space<vmem>>, vector<1x256xf32>
    %148 = vector.broadcast %147 : vector<1x256xf32> to vector<4x256xf32>
    %149 = arith.mulf %146, %148 : vector<4x256xf32>
    %c0_52 = arith.constant 0 : index
    %c20 = arith.constant 20 : index
    %150 = vector.load %arg2[%c0_52, %c20] : memref<4x36xf32, #tpu.memory_space<vmem>>, vector<4x1xf32>
    %151 = vector.extract_strided_slice %149 {offsets = [0, 0], sizes = [1, 256], strides = [1, 1]} : vector<4x256xf32> to vector<1x256xf32>
    %152 = vector.broadcast %150 : vector<4x1xf32> to vector<4x256xf32>
    %153 = vector.broadcast %151 : vector<1x256xf32> to vector<4x256xf32>
    %154 = arith.mulf %152, %153 : vector<4x256xf32>
    %155 = arith.addf %145, %154 : vector<4x256xf32>
    %c0_53 = arith.constant 0 : index
    %c21 = arith.constant 21 : index
    %156 = vector.load %arg2[%c0_53, %c21] : memref<4x36xf32, #tpu.memory_space<vmem>>, vector<4x1xf32>
    %157 = vector.extract_strided_slice %149 {offsets = [1, 0], sizes = [1, 256], strides = [1, 1]} : vector<4x256xf32> to vector<1x256xf32>
    %158 = vector.broadcast %156 : vector<4x1xf32> to vector<4x256xf32>
    %159 = vector.broadcast %157 : vector<1x256xf32> to vector<4x256xf32>
    %160 = arith.mulf %158, %159 : vector<4x256xf32>
    %161 = arith.addf %155, %160 : vector<4x256xf32>
    %c0_54 = arith.constant 0 : index
    %c22 = arith.constant 22 : index
    %162 = vector.load %arg2[%c0_54, %c22] : memref<4x36xf32, #tpu.memory_space<vmem>>, vector<4x1xf32>
    %163 = vector.extract_strided_slice %149 {offsets = [2, 0], sizes = [1, 256], strides = [1, 1]} : vector<4x256xf32> to vector<1x256xf32>
    %164 = vector.broadcast %162 : vector<4x1xf32> to vector<4x256xf32>
    %165 = vector.broadcast %163 : vector<1x256xf32> to vector<4x256xf32>
    %166 = arith.mulf %164, %165 : vector<4x256xf32>
    %167 = arith.addf %161, %166 : vector<4x256xf32>
    %c0_55 = arith.constant 0 : index
    %c23 = arith.constant 23 : index
    %168 = vector.load %arg2[%c0_55, %c23] : memref<4x36xf32, #tpu.memory_space<vmem>>, vector<4x1xf32>
    %169 = vector.extract_strided_slice %149 {offsets = [3, 0], sizes = [1, 256], strides = [1, 1]} : vector<4x256xf32> to vector<1x256xf32>
    %170 = vector.broadcast %168 : vector<4x1xf32> to vector<4x256xf32>
    %171 = vector.broadcast %169 : vector<1x256xf32> to vector<4x256xf32>
    %172 = arith.mulf %170, %171 : vector<4x256xf32>
    %173 = arith.addf %167, %172 : vector<4x256xf32>
    %c0_56 = arith.constant 0 : index
    %c32 = arith.constant 32 : index
    %174 = vector.load %arg6[%c0_56, %c32] : memref<4x290xf32, #tpu.memory_space<vmem>>, vector<4x256xf32>
    %c0_57 = arith.constant 0 : index
    %c0_58 = arith.constant 0 : index
    %175 = vector.load %arg4[%c0_57, %c0_58] : memref<3x256xf32, #tpu.memory_space<vmem>>, vector<1x256xf32>
    %176 = vector.broadcast %175 : vector<1x256xf32> to vector<4x256xf32>
    %177 = arith.mulf %174, %176 : vector<4x256xf32>
    %c0_59 = arith.constant 0 : index
    %c24 = arith.constant 24 : index
    %178 = vector.load %arg2[%c0_59, %c24] : memref<4x36xf32, #tpu.memory_space<vmem>>, vector<4x1xf32>
    %179 = vector.extract_strided_slice %177 {offsets = [0, 0], sizes = [1, 256], strides = [1, 1]} : vector<4x256xf32> to vector<1x256xf32>
    %180 = vector.broadcast %178 : vector<4x1xf32> to vector<4x256xf32>
    %181 = vector.broadcast %179 : vector<1x256xf32> to vector<4x256xf32>
    %182 = arith.mulf %180, %181 : vector<4x256xf32>
    %183 = arith.addf %173, %182 : vector<4x256xf32>
    %c0_60 = arith.constant 0 : index
    %c25 = arith.constant 25 : index
    %184 = vector.load %arg2[%c0_60, %c25] : memref<4x36xf32, #tpu.memory_space<vmem>>, vector<4x1xf32>
    %185 = vector.extract_strided_slice %177 {offsets = [1, 0], sizes = [1, 256], strides = [1, 1]} : vector<4x256xf32> to vector<1x256xf32>
    %186 = vector.broadcast %184 : vector<4x1xf32> to vector<4x256xf32>
    %187 = vector.broadcast %185 : vector<1x256xf32> to vector<4x256xf32>
    %188 = arith.mulf %186, %187 : vector<4x256xf32>
    %189 = arith.addf %183, %188 : vector<4x256xf32>
    %c0_61 = arith.constant 0 : index
    %c26 = arith.constant 26 : index
    %190 = vector.load %arg2[%c0_61, %c26] : memref<4x36xf32, #tpu.memory_space<vmem>>, vector<4x1xf32>
    %191 = vector.extract_strided_slice %177 {offsets = [2, 0], sizes = [1, 256], strides = [1, 1]} : vector<4x256xf32> to vector<1x256xf32>
    %192 = vector.broadcast %190 : vector<4x1xf32> to vector<4x256xf32>
    %193 = vector.broadcast %191 : vector<1x256xf32> to vector<4x256xf32>
    %194 = arith.mulf %192, %193 : vector<4x256xf32>
    %195 = arith.addf %189, %194 : vector<4x256xf32>
    %c0_62 = arith.constant 0 : index
    %c27 = arith.constant 27 : index
    %196 = vector.load %arg2[%c0_62, %c27] : memref<4x36xf32, #tpu.memory_space<vmem>>, vector<4x1xf32>
    %197 = vector.extract_strided_slice %177 {offsets = [3, 0], sizes = [1, 256], strides = [1, 1]} : vector<4x256xf32> to vector<1x256xf32>
    %198 = vector.broadcast %196 : vector<4x1xf32> to vector<4x256xf32>
    %199 = vector.broadcast %197 : vector<1x256xf32> to vector<4x256xf32>
    %200 = arith.mulf %198, %199 : vector<4x256xf32>
    %201 = arith.addf %195, %200 : vector<4x256xf32>
    %c0_63 = arith.constant 0 : index
    %c33 = arith.constant 33 : index
    %202 = vector.load %arg6[%c0_63, %c33] : memref<4x290xf32, #tpu.memory_space<vmem>>, vector<4x256xf32>
    %c1_64 = arith.constant 1 : index
    %c0_65 = arith.constant 0 : index
    %203 = vector.load %arg4[%c1_64, %c0_65] : memref<3x256xf32, #tpu.memory_space<vmem>>, vector<1x256xf32>
    %204 = vector.broadcast %203 : vector<1x256xf32> to vector<4x256xf32>
    %205 = arith.mulf %202, %204 : vector<4x256xf32>
    %c0_66 = arith.constant 0 : index
    %c28 = arith.constant 28 : index
    %206 = vector.load %arg2[%c0_66, %c28] : memref<4x36xf32, #tpu.memory_space<vmem>>, vector<4x1xf32>
    %207 = vector.extract_strided_slice %205 {offsets = [0, 0], sizes = [1, 256], strides = [1, 1]} : vector<4x256xf32> to vector<1x256xf32>
    %208 = vector.broadcast %206 : vector<4x1xf32> to vector<4x256xf32>
    %209 = vector.broadcast %207 : vector<1x256xf32> to vector<4x256xf32>
    %210 = arith.mulf %208, %209 : vector<4x256xf32>
    %211 = arith.addf %201, %210 : vector<4x256xf32>
    %c0_67 = arith.constant 0 : index
    %c29 = arith.constant 29 : index
    %212 = vector.load %arg2[%c0_67, %c29] : memref<4x36xf32, #tpu.memory_space<vmem>>, vector<4x1xf32>
    %213 = vector.extract_strided_slice %205 {offsets = [1, 0], sizes = [1, 256], strides = [1, 1]} : vector<4x256xf32> to vector<1x256xf32>
    %214 = vector.broadcast %212 : vector<4x1xf32> to vector<4x256xf32>
    %215 = vector.broadcast %213 : vector<1x256xf32> to vector<4x256xf32>
    %216 = arith.mulf %214, %215 : vector<4x256xf32>
    %217 = arith.addf %211, %216 : vector<4x256xf32>
    %c0_68 = arith.constant 0 : index
    %c30 = arith.constant 30 : index
    %218 = vector.load %arg2[%c0_68, %c30] : memref<4x36xf32, #tpu.memory_space<vmem>>, vector<4x1xf32>
    %219 = vector.extract_strided_slice %205 {offsets = [2, 0], sizes = [1, 256], strides = [1, 1]} : vector<4x256xf32> to vector<1x256xf32>
    %220 = vector.broadcast %218 : vector<4x1xf32> to vector<4x256xf32>
    %221 = vector.broadcast %219 : vector<1x256xf32> to vector<4x256xf32>
    %222 = arith.mulf %220, %221 : vector<4x256xf32>
    %223 = arith.addf %217, %222 : vector<4x256xf32>
    %c0_69 = arith.constant 0 : index
    %c31 = arith.constant 31 : index
    %224 = vector.load %arg2[%c0_69, %c31] : memref<4x36xf32, #tpu.memory_space<vmem>>, vector<4x1xf32>
    %225 = vector.extract_strided_slice %205 {offsets = [3, 0], sizes = [1, 256], strides = [1, 1]} : vector<4x256xf32> to vector<1x256xf32>
    %226 = vector.broadcast %224 : vector<4x1xf32> to vector<4x256xf32>
    %227 = vector.broadcast %225 : vector<1x256xf32> to vector<4x256xf32>
    %228 = arith.mulf %226, %227 : vector<4x256xf32>
    %229 = arith.addf %223, %228 : vector<4x256xf32>
    %c0_70 = arith.constant 0 : index
    %c34 = arith.constant 34 : index
    %230 = vector.load %arg6[%c0_70, %c34] : memref<4x290xf32, #tpu.memory_space<vmem>>, vector<4x256xf32>
    %c2_71 = arith.constant 2 : index
    %c0_72 = arith.constant 0 : index
    %231 = vector.load %arg4[%c2_71, %c0_72] : memref<3x256xf32, #tpu.memory_space<vmem>>, vector<1x256xf32>
    %232 = vector.broadcast %231 : vector<1x256xf32> to vector<4x256xf32>
    %233 = arith.mulf %230, %232 : vector<4x256xf32>
    %c0_73 = arith.constant 0 : index
    %c32_74 = arith.constant 32 : index
    %234 = vector.load %arg2[%c0_73, %c32_74] : memref<4x36xf32, #tpu.memory_space<vmem>>, vector<4x1xf32>
    %235 = vector.extract_strided_slice %233 {offsets = [0, 0], sizes = [1, 256], strides = [1, 1]} : vector<4x256xf32> to vector<1x256xf32>
    %236 = vector.broadcast %234 : vector<4x1xf32> to vector<4x256xf32>
    %237 = vector.broadcast %235 : vector<1x256xf32> to vector<4x256xf32>
    %238 = arith.mulf %236, %237 : vector<4x256xf32>
    %239 = arith.addf %229, %238 : vector<4x256xf32>
    %c0_75 = arith.constant 0 : index
    %c33_76 = arith.constant 33 : index
    %240 = vector.load %arg2[%c0_75, %c33_76] : memref<4x36xf32, #tpu.memory_space<vmem>>, vector<4x1xf32>
    %241 = vector.extract_strided_slice %233 {offsets = [1, 0], sizes = [1, 256], strides = [1, 1]} : vector<4x256xf32> to vector<1x256xf32>
    %242 = vector.broadcast %240 : vector<4x1xf32> to vector<4x256xf32>
    %243 = vector.broadcast %241 : vector<1x256xf32> to vector<4x256xf32>
    %244 = arith.mulf %242, %243 : vector<4x256xf32>
    %245 = arith.addf %239, %244 : vector<4x256xf32>
    %c0_77 = arith.constant 0 : index
    %c34_78 = arith.constant 34 : index
    %246 = vector.load %arg2[%c0_77, %c34_78] : memref<4x36xf32, #tpu.memory_space<vmem>>, vector<4x1xf32>
    %247 = vector.extract_strided_slice %233 {offsets = [2, 0], sizes = [1, 256], strides = [1, 1]} : vector<4x256xf32> to vector<1x256xf32>
    %248 = vector.broadcast %246 : vector<4x1xf32> to vector<4x256xf32>
    %249 = vector.broadcast %247 : vector<1x256xf32> to vector<4x256xf32>
    %250 = arith.mulf %248, %249 : vector<4x256xf32>
    %251 = arith.addf %245, %250 : vector<4x256xf32>
    %c0_79 = arith.constant 0 : index
    %c35 = arith.constant 35 : index
    %252 = vector.load %arg2[%c0_79, %c35] : memref<4x36xf32, #tpu.memory_space<vmem>>, vector<4x1xf32>
    %253 = vector.extract_strided_slice %233 {offsets = [3, 0], sizes = [1, 256], strides = [1, 1]} : vector<4x256xf32> to vector<1x256xf32>
    %254 = vector.broadcast %252 : vector<4x1xf32> to vector<4x256xf32>
    %255 = vector.broadcast %253 : vector<1x256xf32> to vector<4x256xf32>
    %256 = arith.mulf %254, %255 : vector<4x256xf32>
    %257 = arith.addf %251, %256 : vector<4x256xf32>
    %cst_80 = arith.constant 0.000000e+00 : f32
    %258 = vector.broadcast %cst_80 : f32 to vector<4x256xf32>
    %259 = arith.cmpf ogt, %257, %258 : vector<4x256xf32>
    %cst_81 = arith.constant 0.000000e+00 : f32
    %260 = vector.broadcast %cst_81 : f32 to vector<4x256xf32>
    %261 = arith.minimumf %257, %260 : vector<4x256xf32>
    %262 = math.exp %261 : vector<4x256xf32>
    %cst_82 = arith.constant 1.000000e+00 : f32
    %263 = vector.broadcast %cst_82 : f32 to vector<4x256xf32>
    %264 = arith.subf %262, %263 : vector<4x256xf32>
    %265 = arith.select %259, %257, %264 : vector<4x256xi1>, vector<4x256xf32>
    %c0_83 = arith.constant 0 : index
    %c17_84 = arith.constant 17 : index
    %266 = vector.load %arg6[%c0_83, %c17_84] : memref<4x290xf32, #tpu.memory_space<vmem>>, vector<4x256xf32>
    tpu.vector_store %arg6[%c0_83, %c17_84], %265 {strides = array<i32>} : memref<4x290xf32, #tpu.memory_space<vmem>>, vector<4x256xf32>,
    %cst_85 = arith.constant 0.000000e+00 : f32
    %267 = vector.broadcast %cst_85 : f32 to vector<4x256xf32>
    %c0_86 = arith.constant 0 : index
    %c0_87 = arith.constant 0 : index
    %268 = vector.load %arg6[%c0_86, %c0_87] : memref<4x290xf32, #tpu.memory_space<vmem>>, vector<4x256xf32>
    %c0_88 = arith.constant 0 : index
    %c0_89 = arith.constant 0 : index
    %269 = vector.load %arg4[%c0_88, %c0_89] : memref<3x256xf32, #tpu.memory_space<vmem>>, vector<1x256xf32>
    %270 = vector.broadcast %269 : vector<1x256xf32> to vector<4x256xf32>
    %271 = arith.mulf %268, %270 : vector<4x256xf32>
    %c0_90 = arith.constant 0 : index
    %c0_91 = arith.constant 0 : index
    %272 = vector.load %arg3[%c0_90, %c0_91] : memref<4x36xf32, #tpu.memory_space<vmem>>, vector<4x1xf32>
    %273 = vector.extract_strided_slice %271 {offsets = [0, 0], sizes = [1, 256], strides = [1, 1]} : vector<4x256xf32> to vector<1x256xf32>
    %274 = vector.broadcast %272 : vector<4x1xf32> to vector<4x256xf32>
    %275 = vector.broadcast %273 : vector<1x256xf32> to vector<4x256xf32>
    %276 = arith.mulf %274, %275 : vector<4x256xf32>
    %277 = arith.addf %267, %276 : vector<4x256xf32>
    %c0_92 = arith.constant 0 : index
    %c1_93 = arith.constant 1 : index
    %278 = vector.load %arg3[%c0_92, %c1_93] : memref<4x36xf32, #tpu.memory_space<vmem>>, vector<4x1xf32>
    %279 = vector.extract_strided_slice %271 {offsets = [1, 0], sizes = [1, 256], strides = [1, 1]} : vector<4x256xf32> to vector<1x256xf32>
    %280 = vector.broadcast %278 : vector<4x1xf32> to vector<4x256xf32>
    %281 = vector.broadcast %279 : vector<1x256xf32> to vector<4x256xf32>
    %282 = arith.mulf %280, %281 : vector<4x256xf32>
    %283 = arith.addf %277, %282 : vector<4x256xf32>
    %c0_94 = arith.constant 0 : index
    %c2_95 = arith.constant 2 : index
    %284 = vector.load %arg3[%c0_94, %c2_95] : memref<4x36xf32, #tpu.memory_space<vmem>>, vector<4x1xf32>
    %285 = vector.extract_strided_slice %271 {offsets = [2, 0], sizes = [1, 256], strides = [1, 1]} : vector<4x256xf32> to vector<1x256xf32>
    %286 = vector.broadcast %284 : vector<4x1xf32> to vector<4x256xf32>
    %287 = vector.broadcast %285 : vector<1x256xf32> to vector<4x256xf32>
    %288 = arith.mulf %286, %287 : vector<4x256xf32>
    %289 = arith.addf %283, %288 : vector<4x256xf32>
    %c0_96 = arith.constant 0 : index
    %c3_97 = arith.constant 3 : index
    %290 = vector.load %arg3[%c0_96, %c3_97] : memref<4x36xf32, #tpu.memory_space<vmem>>, vector<4x1xf32>
    %291 = vector.extract_strided_slice %271 {offsets = [3, 0], sizes = [1, 256], strides = [1, 1]} : vector<4x256xf32> to vector<1x256xf32>
    %292 = vector.broadcast %290 : vector<4x1xf32> to vector<4x256xf32>
    %293 = vector.broadcast %291 : vector<1x256xf32> to vector<4x256xf32>
    %294 = arith.mulf %292, %293 : vector<4x256xf32>
    %295 = arith.addf %289, %294 : vector<4x256xf32>
    %c0_98 = arith.constant 0 : index
    %c1_99 = arith.constant 1 : index
    %296 = vector.load %arg6[%c0_98, %c1_99] : memref<4x290xf32, #tpu.memory_space<vmem>>, vector<4x256xf32>
    %c1_100 = arith.constant 1 : index
    %c0_101 = arith.constant 0 : index
    %297 = vector.load %arg4[%c1_100, %c0_101] : memref<3x256xf32, #tpu.memory_space<vmem>>, vector<1x256xf32>
    %298 = vector.broadcast %297 : vector<1x256xf32> to vector<4x256xf32>
    %299 = arith.mulf %296, %298 : vector<4x256xf32>
    %c0_102 = arith.constant 0 : index
    %c4_103 = arith.constant 4 : index
    %300 = vector.load %arg3[%c0_102, %c4_103] : memref<4x36xf32, #tpu.memory_space<vmem>>, vector<4x1xf32>
    %301 = vector.extract_strided_slice %299 {offsets = [0, 0], sizes = [1, 256], strides = [1, 1]} : vector<4x256xf32> to vector<1x256xf32>
    %302 = vector.broadcast %300 : vector<4x1xf32> to vector<4x256xf32>
    %303 = vector.broadcast %301 : vector<1x256xf32> to vector<4x256xf32>
    %304 = arith.mulf %302, %303 : vector<4x256xf32>
    %305 = arith.addf %295, %304 : vector<4x256xf32>
    %c0_104 = arith.constant 0 : index
    %c5_105 = arith.constant 5 : index
    %306 = vector.load %arg3[%c0_104, %c5_105] : memref<4x36xf32, #tpu.memory_space<vmem>>, vector<4x1xf32>
    %307 = vector.extract_strided_slice %299 {offsets = [1, 0], sizes = [1, 256], strides = [1, 1]} : vector<4x256xf32> to vector<1x256xf32>
    %308 = vector.broadcast %306 : vector<4x1xf32> to vector<4x256xf32>
    %309 = vector.broadcast %307 : vector<1x256xf32> to vector<4x256xf32>
    %310 = arith.mulf %308, %309 : vector<4x256xf32>
    %311 = arith.addf %305, %310 : vector<4x256xf32>
    %c0_106 = arith.constant 0 : index
    %c6_107 = arith.constant 6 : index
    %312 = vector.load %arg3[%c0_106, %c6_107] : memref<4x36xf32, #tpu.memory_space<vmem>>, vector<4x1xf32>
    %313 = vector.extract_strided_slice %299 {offsets = [2, 0], sizes = [1, 256], strides = [1, 1]} : vector<4x256xf32> to vector<1x256xf32>
    %314 = vector.broadcast %312 : vector<4x1xf32> to vector<4x256xf32>
    %315 = vector.broadcast %313 : vector<1x256xf32> to vector<4x256xf32>
    %316 = arith.mulf %314, %315 : vector<4x256xf32>
    %317 = arith.addf %311, %316 : vector<4x256xf32>
    %c0_108 = arith.constant 0 : index
    %c7_109 = arith.constant 7 : index
    %318 = vector.load %arg3[%c0_108, %c7_109] : memref<4x36xf32, #tpu.memory_space<vmem>>, vector<4x1xf32>
    %319 = vector.extract_strided_slice %299 {offsets = [3, 0], sizes = [1, 256], strides = [1, 1]} : vector<4x256xf32> to vector<1x256xf32>
    %320 = vector.broadcast %318 : vector<4x1xf32> to vector<4x256xf32>
    %321 = vector.broadcast %319 : vector<1x256xf32> to vector<4x256xf32>
    %322 = arith.mulf %320, %321 : vector<4x256xf32>
    %323 = arith.addf %317, %322 : vector<4x256xf32>
    %c0_110 = arith.constant 0 : index
    %c2_111 = arith.constant 2 : index
    %324 = vector.load %arg6[%c0_110, %c2_111] : memref<4x290xf32, #tpu.memory_space<vmem>>, vector<4x256xf32>
    %c2_112 = arith.constant 2 : index
    %c0_113 = arith.constant 0 : index
    %325 = vector.load %arg4[%c2_112, %c0_113] : memref<3x256xf32, #tpu.memory_space<vmem>>, vector<1x256xf32>
    %326 = vector.broadcast %325 : vector<1x256xf32> to vector<4x256xf32>
    %327 = arith.mulf %324, %326 : vector<4x256xf32>
    %c0_114 = arith.constant 0 : index
    %c8_115 = arith.constant 8 : index
    %328 = vector.load %arg3[%c0_114, %c8_115] : memref<4x36xf32, #tpu.memory_space<vmem>>, vector<4x1xf32>
    %329 = vector.extract_strided_slice %327 {offsets = [0, 0], sizes = [1, 256], strides = [1, 1]} : vector<4x256xf32> to vector<1x256xf32>
    %330 = vector.broadcast %328 : vector<4x1xf32> to vector<4x256xf32>
    %331 = vector.broadcast %329 : vector<1x256xf32> to vector<4x256xf32>
    %332 = arith.mulf %330, %331 : vector<4x256xf32>
    %333 = arith.addf %323, %332 : vector<4x256xf32>
    %c0_116 = arith.constant 0 : index
    %c9_117 = arith.constant 9 : index
    %334 = vector.load %arg3[%c0_116, %c9_117] : memref<4x36xf32, #tpu.memory_space<vmem>>, vector<4x1xf32>
    %335 = vector.extract_strided_slice %327 {offsets = [1, 0], sizes = [1, 256], strides = [1, 1]} : vector<4x256xf32> to vector<1x256xf32>
    %336 = vector.broadcast %334 : vector<4x1xf32> to vector<4x256xf32>
    %337 = vector.broadcast %335 : vector<1x256xf32> to vector<4x256xf32>
    %338 = arith.mulf %336, %337 : vector<4x256xf32>
    %339 = arith.addf %333, %338 : vector<4x256xf32>
    %c0_118 = arith.constant 0 : index
    %c10_119 = arith.constant 10 : index
    %340 = vector.load %arg3[%c0_118, %c10_119] : memref<4x36xf32, #tpu.memory_space<vmem>>, vector<4x1xf32>
    %341 = vector.extract_strided_slice %327 {offsets = [2, 0], sizes = [1, 256], strides = [1, 1]} : vector<4x256xf32> to vector<1x256xf32>
    %342 = vector.broadcast %340 : vector<4x1xf32> to vector<4x256xf32>
    %343 = vector.broadcast %341 : vector<1x256xf32> to vector<4x256xf32>
    %344 = arith.mulf %342, %343 : vector<4x256xf32>
    %345 = arith.addf %339, %344 : vector<4x256xf32>
    %c0_120 = arith.constant 0 : index
    %c11_121 = arith.constant 11 : index
    %346 = vector.load %arg3[%c0_120, %c11_121] : memref<4x36xf32, #tpu.memory_space<vmem>>, vector<4x1xf32>
    %347 = vector.extract_strided_slice %327 {offsets = [3, 0], sizes = [1, 256], strides = [1, 1]} : vector<4x256xf32> to vector<1x256xf32>
    %348 = vector.broadcast %346 : vector<4x1xf32> to vector<4x256xf32>
    %349 = vector.broadcast %347 : vector<1x256xf32> to vector<4x256xf32>
    %350 = arith.mulf %348, %349 : vector<4x256xf32>
    %351 = arith.addf %345, %350 : vector<4x256xf32>
    %c0_122 = arith.constant 0 : index
    %c16_123 = arith.constant 16 : index
    %352 = vector.load %arg6[%c0_122, %c16_123] : memref<4x290xf32, #tpu.memory_space<vmem>>, vector<4x256xf32>
    %c0_124 = arith.constant 0 : index
    %c0_125 = arith.constant 0 : index
    %353 = vector.load %arg4[%c0_124, %c0_125] : memref<3x256xf32, #tpu.memory_space<vmem>>, vector<1x256xf32>
    %354 = vector.broadcast %353 : vector<1x256xf32> to vector<4x256xf32>
    %355 = arith.mulf %352, %354 : vector<4x256xf32>
    %c0_126 = arith.constant 0 : index
    %c12_127 = arith.constant 12 : index
    %356 = vector.load %arg3[%c0_126, %c12_127] : memref<4x36xf32, #tpu.memory_space<vmem>>, vector<4x1xf32>
    %357 = vector.extract_strided_slice %355 {offsets = [0, 0], sizes = [1, 256], strides = [1, 1]} : vector<4x256xf32> to vector<1x256xf32>
    %358 = vector.broadcast %356 : vector<4x1xf32> to vector<4x256xf32>
    %359 = vector.broadcast %357 : vector<1x256xf32> to vector<4x256xf32>
    %360 = arith.mulf %358, %359 : vector<4x256xf32>
    %361 = arith.addf %351, %360 : vector<4x256xf32>
    %c0_128 = arith.constant 0 : index
    %c13_129 = arith.constant 13 : index
    %362 = vector.load %arg3[%c0_128, %c13_129] : memref<4x36xf32, #tpu.memory_space<vmem>>, vector<4x1xf32>
    %363 = vector.extract_strided_slice %355 {offsets = [1, 0], sizes = [1, 256], strides = [1, 1]} : vector<4x256xf32> to vector<1x256xf32>
    %364 = vector.broadcast %362 : vector<4x1xf32> to vector<4x256xf32>
    %365 = vector.broadcast %363 : vector<1x256xf32> to vector<4x256xf32>
    %366 = arith.mulf %364, %365 : vector<4x256xf32>
    %367 = arith.addf %361, %366 : vector<4x256xf32>
    %c0_130 = arith.constant 0 : index
    %c14_131 = arith.constant 14 : index
    %368 = vector.load %arg3[%c0_130, %c14_131] : memref<4x36xf32, #tpu.memory_space<vmem>>, vector<4x1xf32>
    %369 = vector.extract_strided_slice %355 {offsets = [2, 0], sizes = [1, 256], strides = [1, 1]} : vector<4x256xf32> to vector<1x256xf32>
    %370 = vector.broadcast %368 : vector<4x1xf32> to vector<4x256xf32>
    %371 = vector.broadcast %369 : vector<1x256xf32> to vector<4x256xf32>
    %372 = arith.mulf %370, %371 : vector<4x256xf32>
    %373 = arith.addf %367, %372 : vector<4x256xf32>
    %c0_132 = arith.constant 0 : index
    %c15_133 = arith.constant 15 : index
    %374 = vector.load %arg3[%c0_132, %c15_133] : memref<4x36xf32, #tpu.memory_space<vmem>>, vector<4x1xf32>
    %375 = vector.extract_strided_slice %355 {offsets = [3, 0], sizes = [1, 256], strides = [1, 1]} : vector<4x256xf32> to vector<1x256xf32>
    %376 = vector.broadcast %374 : vector<4x1xf32> to vector<4x256xf32>
    %377 = vector.broadcast %375 : vector<1x256xf32> to vector<4x256xf32>
    %378 = arith.mulf %376, %377 : vector<4x256xf32>
    %379 = arith.addf %373, %378 : vector<4x256xf32>
    %c0_134 = arith.constant 0 : index
    %c17_135 = arith.constant 17 : index
    %380 = vector.load %arg6[%c0_134, %c17_135] : memref<4x290xf32, #tpu.memory_space<vmem>>, vector<4x256xf32>
    %c1_136 = arith.constant 1 : index
    %c0_137 = arith.constant 0 : index
    %381 = vector.load %arg4[%c1_136, %c0_137] : memref<3x256xf32, #tpu.memory_space<vmem>>, vector<1x256xf32>
    %382 = vector.broadcast %381 : vector<1x256xf32> to vector<4x256xf32>
    %383 = arith.mulf %380, %382 : vector<4x256xf32>
    %c0_138 = arith.constant 0 : index
    %c16_139 = arith.constant 16 : index
    %384 = vector.load %arg3[%c0_138, %c16_139] : memref<4x36xf32, #tpu.memory_space<vmem>>, vector<4x1xf32>
    %385 = vector.extract_strided_slice %383 {offsets = [0, 0], sizes = [1, 256], strides = [1, 1]} : vector<4x256xf32> to vector<1x256xf32>
    %386 = vector.broadcast %384 : vector<4x1xf32> to vector<4x256xf32>
    %387 = vector.broadcast %385 : vector<1x256xf32> to vector<4x256xf32>
    %388 = arith.mulf %386, %387 : vector<4x256xf32>
    %389 = arith.addf %379, %388 : vector<4x256xf32>
    %c0_140 = arith.constant 0 : index
    %c17_141 = arith.constant 17 : index
    %390 = vector.load %arg3[%c0_140, %c17_141] : memref<4x36xf32, #tpu.memory_space<vmem>>, vector<4x1xf32>
    %391 = vector.extract_strided_slice %383 {offsets = [1, 0], sizes = [1, 256], strides = [1, 1]} : vector<4x256xf32> to vector<1x256xf32>
    %392 = vector.broadcast %390 : vector<4x1xf32> to vector<4x256xf32>
    %393 = vector.broadcast %391 : vector<1x256xf32> to vector<4x256xf32>
    %394 = arith.mulf %392, %393 : vector<4x256xf32>
    %395 = arith.addf %389, %394 : vector<4x256xf32>
    %c0_142 = arith.constant 0 : index
    %c18_143 = arith.constant 18 : index
    %396 = vector.load %arg3[%c0_142, %c18_143] : memref<4x36xf32, #tpu.memory_space<vmem>>, vector<4x1xf32>
    %397 = vector.extract_strided_slice %383 {offsets = [2, 0], sizes = [1, 256], strides = [1, 1]} : vector<4x256xf32> to vector<1x256xf32>
    %398 = vector.broadcast %396 : vector<4x1xf32> to vector<4x256xf32>
    %399 = vector.broadcast %397 : vector<1x256xf32> to vector<4x256xf32>
    %400 = arith.mulf %398, %399 : vector<4x256xf32>
    %401 = arith.addf %395, %400 : vector<4x256xf32>
    %c0_144 = arith.constant 0 : index
    %c19_145 = arith.constant 19 : index
    %402 = vector.load %arg3[%c0_144, %c19_145] : memref<4x36xf32, #tpu.memory_space<vmem>>, vector<4x1xf32>
    %403 = vector.extract_strided_slice %383 {offsets = [3, 0], sizes = [1, 256], strides = [1, 1]} : vector<4x256xf32> to vector<1x256xf32>
    %404 = vector.broadcast %402 : vector<4x1xf32> to vector<4x256xf32>
    %405 = vector.broadcast %403 : vector<1x256xf32> to vector<4x256xf32>
    %406 = arith.mulf %404, %405 : vector<4x256xf32>
    %407 = arith.addf %401, %406 : vector<4x256xf32>
    %c0_146 = arith.constant 0 : index
    %c18_147 = arith.constant 18 : index
    %408 = vector.load %arg6[%c0_146, %c18_147] : memref<4x290xf32, #tpu.memory_space<vmem>>, vector<4x256xf32>
    %c2_148 = arith.constant 2 : index
    %c0_149 = arith.constant 0 : index
    %409 = vector.load %arg4[%c2_148, %c0_149] : memref<3x256xf32, #tpu.memory_space<vmem>>, vector<1x256xf32>
    %410 = vector.broadcast %409 : vector<1x256xf32> to vector<4x256xf32>
    %411 = arith.mulf %408, %410 : vector<4x256xf32>
    %c0_150 = arith.constant 0 : index
    %c20_151 = arith.constant 20 : index
    %412 = vector.load %arg3[%c0_150, %c20_151] : memref<4x36xf32, #tpu.memory_space<vmem>>, vector<4x1xf32>
    %413 = vector.extract_strided_slice %411 {offsets = [0, 0], sizes = [1, 256], strides = [1, 1]} : vector<4x256xf32> to vector<1x256xf32>
    %414 = vector.broadcast %412 : vector<4x1xf32> to vector<4x256xf32>
    %415 = vector.broadcast %413 : vector<1x256xf32> to vector<4x256xf32>
    %416 = arith.mulf %414, %415 : vector<4x256xf32>
    %417 = arith.addf %407, %416 : vector<4x256xf32>
    %c0_152 = arith.constant 0 : index
    %c21_153 = arith.constant 21 : index
    %418 = vector.load %arg3[%c0_152, %c21_153] : memref<4x36xf32, #tpu.memory_space<vmem>>, vector<4x1xf32>
    %419 = vector.extract_strided_slice %411 {offsets = [1, 0], sizes = [1, 256], strides = [1, 1]} : vector<4x256xf32> to vector<1x256xf32>
    %420 = vector.broadcast %418 : vector<4x1xf32> to vector<4x256xf32>
    %421 = vector.broadcast %419 : vector<1x256xf32> to vector<4x256xf32>
    %422 = arith.mulf %420, %421 : vector<4x256xf32>
    %423 = arith.addf %417, %422 : vector<4x256xf32>
    %c0_154 = arith.constant 0 : index
    %c22_155 = arith.constant 22 : index
    %424 = vector.load %arg3[%c0_154, %c22_155] : memref<4x36xf32, #tpu.memory_space<vmem>>, vector<4x1xf32>
    %425 = vector.extract_strided_slice %411 {offsets = [2, 0], sizes = [1, 256], strides = [1, 1]} : vector<4x256xf32> to vector<1x256xf32>
    %426 = vector.broadcast %424 : vector<4x1xf32> to vector<4x256xf32>
    %427 = vector.broadcast %425 : vector<1x256xf32> to vector<4x256xf32>
    %428 = arith.mulf %426, %427 : vector<4x256xf32>
    %429 = arith.addf %423, %428 : vector<4x256xf32>
    %c0_156 = arith.constant 0 : index
    %c23_157 = arith.constant 23 : index
    %430 = vector.load %arg3[%c0_156, %c23_157] : memref<4x36xf32, #tpu.memory_space<vmem>>, vector<4x1xf32>
    %431 = vector.extract_strided_slice %411 {offsets = [3, 0], sizes = [1, 256], strides = [1, 1]} : vector<4x256xf32> to vector<1x256xf32>
    %432 = vector.broadcast %430 : vector<4x1xf32> to vector<4x256xf32>
    %433 = vector.broadcast %431 : vector<1x256xf32> to vector<4x256xf32>
    %434 = arith.mulf %432, %433 : vector<4x256xf32>
    %435 = arith.addf %429, %434 : vector<4x256xf32>
    %c0_158 = arith.constant 0 : index
    %c32_159 = arith.constant 32 : index
    %436 = vector.load %arg6[%c0_158, %c32_159] : memref<4x290xf32, #tpu.memory_space<vmem>>, vector<4x256xf32>
    %c0_160 = arith.constant 0 : index
    %c0_161 = arith.constant 0 : index
    %437 = vector.load %arg4[%c0_160, %c0_161] : memref<3x256xf32, #tpu.memory_space<vmem>>, vector<1x256xf32>
    %438 = vector.broadcast %437 : vector<1x256xf32> to vector<4x256xf32>
    %439 = arith.mulf %436, %438 : vector<4x256xf32>
    %c0_162 = arith.constant 0 : index
    %c24_163 = arith.constant 24 : index
    %440 = vector.load %arg3[%c0_162, %c24_163] : memref<4x36xf32, #tpu.memory_space<vmem>>, vector<4x1xf32>
    %441 = vector.extract_strided_slice %439 {offsets = [0, 0], sizes = [1, 256], strides = [1, 1]} : vector<4x256xf32> to vector<1x256xf32>
    %442 = vector.broadcast %440 : vector<4x1xf32> to vector<4x256xf32>
    %443 = vector.broadcast %441 : vector<1x256xf32> to vector<4x256xf32>
    %444 = arith.mulf %442, %443 : vector<4x256xf32>
    %445 = arith.addf %435, %444 : vector<4x256xf32>
    %c0_164 = arith.constant 0 : index
    %c25_165 = arith.constant 25 : index
    %446 = vector.load %arg3[%c0_164, %c25_165] : memref<4x36xf32, #tpu.memory_space<vmem>>, vector<4x1xf32>
    %447 = vector.extract_strided_slice %439 {offsets = [1, 0], sizes = [1, 256], strides = [1, 1]} : vector<4x256xf32> to vector<1x256xf32>
    %448 = vector.broadcast %446 : vector<4x1xf32> to vector<4x256xf32>
    %449 = vector.broadcast %447 : vector<1x256xf32> to vector<4x256xf32>
    %450 = arith.mulf %448, %449 : vector<4x256xf32>
    %451 = arith.addf %445, %450 : vector<4x256xf32>
    %c0_166 = arith.constant 0 : index
    %c26_167 = arith.constant 26 : index
    %452 = vector.load %arg3[%c0_166, %c26_167] : memref<4x36xf32, #tpu.memory_space<vmem>>, vector<4x1xf32>
    %453 = vector.extract_strided_slice %439 {offsets = [2, 0], sizes = [1, 256], strides = [1, 1]} : vector<4x256xf32> to vector<1x256xf32>
    %454 = vector.broadcast %452 : vector<4x1xf32> to vector<4x256xf32>
    %455 = vector.broadcast %453 : vector<1x256xf32> to vector<4x256xf32>
    %456 = arith.mulf %454, %455 : vector<4x256xf32>
    %457 = arith.addf %451, %456 : vector<4x256xf32>
    %c0_168 = arith.constant 0 : index
    %c27_169 = arith.constant 27 : index
    %458 = vector.load %arg3[%c0_168, %c27_169] : memref<4x36xf32, #tpu.memory_space<vmem>>, vector<4x1xf32>
    %459 = vector.extract_strided_slice %439 {offsets = [3, 0], sizes = [1, 256], strides = [1, 1]} : vector<4x256xf32> to vector<1x256xf32>
    %460 = vector.broadcast %458 : vector<4x1xf32> to vector<4x256xf32>
    %461 = vector.broadcast %459 : vector<1x256xf32> to vector<4x256xf32>
    %462 = arith.mulf %460, %461 : vector<4x256xf32>
    %463 = arith.addf %457, %462 : vector<4x256xf32>
    %c0_170 = arith.constant 0 : index
    %c33_171 = arith.constant 33 : index
    %464 = vector.load %arg6[%c0_170, %c33_171] : memref<4x290xf32, #tpu.memory_space<vmem>>, vector<4x256xf32>
    %c1_172 = arith.constant 1 : index
    %c0_173 = arith.constant 0 : index
    %465 = vector.load %arg4[%c1_172, %c0_173] : memref<3x256xf32, #tpu.memory_space<vmem>>, vector<1x256xf32>
    %466 = vector.broadcast %465 : vector<1x256xf32> to vector<4x256xf32>
    %467 = arith.mulf %464, %466 : vector<4x256xf32>
    %c0_174 = arith.constant 0 : index
    %c28_175 = arith.constant 28 : index
    %468 = vector.load %arg3[%c0_174, %c28_175] : memref<4x36xf32, #tpu.memory_space<vmem>>, vector<4x1xf32>
    %469 = vector.extract_strided_slice %467 {offsets = [0, 0], sizes = [1, 256], strides = [1, 1]} : vector<4x256xf32> to vector<1x256xf32>
    %470 = vector.broadcast %468 : vector<4x1xf32> to vector<4x256xf32>
    %471 = vector.broadcast %469 : vector<1x256xf32> to vector<4x256xf32>
    %472 = arith.mulf %470, %471 : vector<4x256xf32>
    %473 = arith.addf %463, %472 : vector<4x256xf32>
    %c0_176 = arith.constant 0 : index
    %c29_177 = arith.constant 29 : index
    %474 = vector.load %arg3[%c0_176, %c29_177] : memref<4x36xf32, #tpu.memory_space<vmem>>, vector<4x1xf32>
    %475 = vector.extract_strided_slice %467 {offsets = [1, 0], sizes = [1, 256], strides = [1, 1]} : vector<4x256xf32> to vector<1x256xf32>
    %476 = vector.broadcast %474 : vector<4x1xf32> to vector<4x256xf32>
    %477 = vector.broadcast %475 : vector<1x256xf32> to vector<4x256xf32>
    %478 = arith.mulf %476, %477 : vector<4x256xf32>
    %479 = arith.addf %473, %478 : vector<4x256xf32>
    %c0_178 = arith.constant 0 : index
    %c30_179 = arith.constant 30 : index
    %480 = vector.load %arg3[%c0_178, %c30_179] : memref<4x36xf32, #tpu.memory_space<vmem>>, vector<4x1xf32>
    %481 = vector.extract_strided_slice %467 {offsets = [2, 0], sizes = [1, 256], strides = [1, 1]} : vector<4x256xf32> to vector<1x256xf32>
    %482 = vector.broadcast %480 : vector<4x1xf32> to vector<4x256xf32>
    %483 = vector.broadcast %481 : vector<1x256xf32> to vector<4x256xf32>
    %484 = arith.mulf %482, %483 : vector<4x256xf32>
    %485 = arith.addf %479, %484 : vector<4x256xf32>
    %c0_180 = arith.constant 0 : index
    %c31_181 = arith.constant 31 : index
    %486 = vector.load %arg3[%c0_180, %c31_181] : memref<4x36xf32, #tpu.memory_space<vmem>>, vector<4x1xf32>
    %487 = vector.extract_strided_slice %467 {offsets = [3, 0], sizes = [1, 256], strides = [1, 1]} : vector<4x256xf32> to vector<1x256xf32>
    %488 = vector.broadcast %486 : vector<4x1xf32> to vector<4x256xf32>
    %489 = vector.broadcast %487 : vector<1x256xf32> to vector<4x256xf32>
    %490 = arith.mulf %488, %489 : vector<4x256xf32>
    %491 = arith.addf %485, %490 : vector<4x256xf32>
    %c0_182 = arith.constant 0 : index
    %c34_183 = arith.constant 34 : index
    %492 = vector.load %arg6[%c0_182, %c34_183] : memref<4x290xf32, #tpu.memory_space<vmem>>, vector<4x256xf32>
    %c2_184 = arith.constant 2 : index
    %c0_185 = arith.constant 0 : index
    %493 = vector.load %arg4[%c2_184, %c0_185] : memref<3x256xf32, #tpu.memory_space<vmem>>, vector<1x256xf32>
    %494 = vector.broadcast %493 : vector<1x256xf32> to vector<4x256xf32>
    %495 = arith.mulf %492, %494 : vector<4x256xf32>
    %c0_186 = arith.constant 0 : index
    %c32_187 = arith.constant 32 : index
    %496 = vector.load %arg3[%c0_186, %c32_187] : memref<4x36xf32, #tpu.memory_space<vmem>>, vector<4x1xf32>
    %497 = vector.extract_strided_slice %495 {offsets = [0, 0], sizes = [1, 256], strides = [1, 1]} : vector<4x256xf32> to vector<1x256xf32>
    %498 = vector.broadcast %496 : vector<4x1xf32> to vector<4x256xf32>
    %499 = vector.broadcast %497 : vector<1x256xf32> to vector<4x256xf32>
    %500 = arith.mulf %498, %499 : vector<4x256xf32>
    %501 = arith.addf %491, %500 : vector<4x256xf32>
    %c0_188 = arith.constant 0 : index
    %c33_189 = arith.constant 33 : index
    %502 = vector.load %arg3[%c0_188, %c33_189] : memref<4x36xf32, #tpu.memory_space<vmem>>, vector<4x1xf32>
    %503 = vector.extract_strided_slice %495 {offsets = [1, 0], sizes = [1, 256], strides = [1, 1]} : vector<4x256xf32> to vector<1x256xf32>
    %504 = vector.broadcast %502 : vector<4x1xf32> to vector<4x256xf32>
    %505 = vector.broadcast %503 : vector<1x256xf32> to vector<4x256xf32>
    %506 = arith.mulf %504, %505 : vector<4x256xf32>
    %507 = arith.addf %501, %506 : vector<4x256xf32>
    %c0_190 = arith.constant 0 : index
    %c34_191 = arith.constant 34 : index
    %508 = vector.load %arg3[%c0_190, %c34_191] : memref<4x36xf32, #tpu.memory_space<vmem>>, vector<4x1xf32>
    %509 = vector.extract_strided_slice %495 {offsets = [2, 0], sizes = [1, 256], strides = [1, 1]} : vector<4x256xf32> to vector<1x256xf32>
    %510 = vector.broadcast %508 : vector<4x1xf32> to vector<4x256xf32>
    %511 = vector.broadcast %509 : vector<1x256xf32> to vector<4x256xf32>
    %512 = arith.mulf %510, %511 : vector<4x256xf32>
    %513 = arith.addf %507, %512 : vector<4x256xf32>
    %c0_192 = arith.constant 0 : index
    %c35_193 = arith.constant 35 : index
    %514 = vector.load %arg3[%c0_192, %c35_193] : memref<4x36xf32, #tpu.memory_space<vmem>>, vector<4x1xf32>
    %515 = vector.extract_strided_slice %495 {offsets = [3, 0], sizes = [1, 256], strides = [1, 1]} : vector<4x256xf32> to vector<1x256xf32>
    %516 = vector.broadcast %514 : vector<4x1xf32> to vector<4x256xf32>
    %517 = vector.broadcast %515 : vector<1x256xf32> to vector<4x256xf32>
    %518 = arith.mulf %516, %517 : vector<4x256xf32>
    %519 = arith.addf %513, %518 : vector<4x256xf32>
    %520 = arith.addf %519, %1 : vector<4x256xf32>
    %cst_194 = arith.constant 0.000000e+00 : f32
    %521 = vector.broadcast %cst_194 : f32 to vector<4x256xf32>
    %522 = arith.cmpf ogt, %520, %521 : vector<4x256xf32>
    %cst_195 = arith.constant 0.000000e+00 : f32
    %523 = vector.broadcast %cst_195 : f32 to vector<4x256xf32>
    %524 = arith.minimumf %520, %523 : vector<4x256xf32>
    %525 = math.exp %524 : vector<4x256xf32>
    %cst_196 = arith.constant 1.000000e+00 : f32
    %526 = vector.broadcast %cst_196 : f32 to vector<4x256xf32>
    %527 = arith.subf %525, %526 : vector<4x256xf32>
    %528 = arith.select %522, %520, %527 : vector<4x256xi1>, vector<4x256xf32>
    %c0_197 = arith.constant 0 : index
    %c0_198 = arith.constant 0 : index
    %c0_199 = arith.constant 0 : index
    %529 = vector.load %arg5[%c0_197, %c0_198, %c0_199] : memref<1x4x256xf32, #tpu.memory_space<vmem>>, vector<1x4x256xf32>
    %530 = vector.shape_cast %529 : vector<1x4x256xf32> to vector<4x256xf32>
    %531 = vector.shape_cast %528 : vector<4x256xf32> to vector<1x4x256xf32>
    tpu.vector_store %arg5[%c0_197, %c0_198, %c0_199], %531 {strides = array<i32>} : memref<1x4x256xf32, #tpu.memory_space<vmem>>, vector<1x4x256xf32>,
    return
  }
  func.func @transform_0(%arg0: i32) -> (i32, i32, i32) {
    %c0_i32 = arith.constant 0 : i32
    %c0_i32_0 = arith.constant 0 : i32
    %c0_i32_1 = arith.constant 0 : i32
    return %arg0, %c0_i32, %c0_i32_0 : i32, i32, i32
  }
  func.func @transform_1(%arg0: i32) -> (i32, i32) {
    %c0_i32 = arith.constant 0 : i32
    %c0_i32_0 = arith.constant 0 : i32
    %c0_i32_1 = arith.constant 0 : i32
    return %c0_i32, %c0_i32_0 : i32, i32
  }
  func.func @transform_2(%arg0: i32) -> (i32, i32) {
    %c0_i32 = arith.constant 0 : i32
    %c0_i32_0 = arith.constant 0 : i32
    %c0_i32_1 = arith.constant 0 : i32
    return %c0_i32, %c0_i32_0 : i32, i32
  }
  func.func @transform_3(%arg0: i32) -> (i32, i32) {
    %c0_i32 = arith.constant 0 : i32
    %c0_i32_0 = arith.constant 0 : i32
    %c0_i32_1 = arith.constant 0 : i32
    return %c0_i32, %c0_i32_0 : i32, i32
  }
  func.func @transform_4(%arg0: i32) -> (i32, i32, i32) {
    %c0_i32 = arith.constant 0 : i32
    %c0_i32_0 = arith.constant 0 : i32
    %c0_i32_1 = arith.constant 0 : i32
    return %arg0, %c0_i32, %c0_i32_0 : i32, i32, i32
  }
}

</mosaic_0001>

<bundles_post_ra>
// kernel: tpu_custom_call.1
= control target key start
LH: loop header
LB: loop body
LE: loop exit
PB: predicated region body
PF: predicated region fallthrough
CT: control target
= control target key end

     0   :  { %9 = vsyncpa [#allocation4], 0  ;;  %s6562_s0 = inlined_call_operand.hbm [shape: f32[2,4,256], index: 0, kind: input, shape index: {}]   ;;  %s6563_s1 = inlined_call_operand.hbm [shape: f32[4,36], index: 1, kind: input, shape index: {}]   ;;  %s6564_s2 = inlined_call_operand.hbm [shape: f32[4,36], index: 2, kind: input, shape index: {}]   ;;  %s6565_s3 = inlined_call_operand.hbm [shape: f32[3,256], index: 3, kind: input, shape index: {}]   ;;  %s6566_s4 = inlined_call_operand.hbm [shape: f32[2,4,256], index: 4, kind: output, shape index: {}]  }
   0x1   :  { %11 = vsyncpa [#allocation4 + $0x1], 0 }
   0x2   :  { %12 = vsyncpa [#allocation7], 0 }
   0x3   :  { %13 = vsyncpa [#allocation10], 0 }
   0x4   :  { %14 = vsyncpa [#allocation5], 0 }
   0x5   :  { %16 = vsyncpa [#allocation5 + $0x1], 0  ;;  %s4594_s15 = smov 0   ;;  %s4596_s16 = smov 0  }
   0x6   :  { %s4598_s17 = smov 0   ;;  %s4600_s18 = smov 0  }
   0x7 LB: > { %s4615_s19 = sadd.s32 4294967295, %s4509_s18   ;;  %s4091_s20 = sadd.s32 4294967294, %s4509_s18   ;;  %s4509_s18 = sphi %s4600_s18, %s6846_s18   ;;  %s4505_s17 = sphi %s4598_s17, %s6845_s17   ;;  %s4501_s16 = sphi %s4596_s16, %s6844_s16   ;;  %s4497_s15 = sphi %s4594_s15, %s6843_s15  }
   0x8   : > { %p42_p0 = scmp.ne.s32.totalorder %s4501_s16, %s4497_s15  ;;  %p6567_p1 = scmp.eq.s32.totalorder %s4615_s19, 0 }
   0x9   : > { %p135_p3 = scmp.eq.s32.totalorder %s4091_s20, 1  ;;  %p4092_p5 = scmp.ge.s32.totalorder %s4509_s18, 1 }
   0xa   : > { %p4624_p4 = por %p6567_p1, %p42_p0  ;;  %p142_p7 = scmp.lt.s32.totalorder %s4509_s18, 3 }
   0xb   : > { %p4629_p6 = por %p135_p3, %p42_p0  ;;  %s4511_s24 = smov [#allocation6]  }
   0xc   : > { %s6637_s21 = scalar_select %p4624_p4, 1, 0 }
   0xd   : > { %s6638_s22 = scalar_select %p4629_p6, 1, 0 }
   0xe   : > { %p4634_p8 = pnand %p4092_p5, %p142_p7  ;;  %s155_s25 = sshll.u32 %s4511_s24, 4  ;;  %s156_s25 = int_to_ptr.vmem [resolvable:$true] %s155_s25 }
   0xf   : > { %s4512_s26 = smov [#allocation8]   ;;  %s4513_s29 = smov [#allocation9]  }
  0x10   : > { %s6639_s23 = scalar_select %p4634_p8, 1, 0 }
  0x11   : > { %p4133_p10 = pneg %p4634_p8  ;;  %s166_s27 = sshll.u32 %s4512_s26, 4  ;;  %s167_s27 = int_to_ptr.vmem [resolvable:$true] %s166_s27 }
  0x12   : > { %s177_s30 = sshll.u32 %s4513_s29, 4  ;;  %s4342_s5 = scalar_lea.vmem %s156_s25, 64  ;;  %s4647_s30 = int_to_ptr.vmem [resolvable:$true] %s177_s30 }
  0x13   : > { %p4643_p11 = pnand %p4133_p10, %p6567_p1  ;;  %p4343_p13 = scmp.ne.s32.totalorder %s156_s25, %s4342_s5 }
  0x14   : > { %p4350_p5 = scmp.lt.s32.totalorder %s156_s25, %s156_s25  ;;  %p4351_p7 = scmp.lt.s32.totalorder %s4342_s5, %s4342_s5 }
  0x15   : > { %p4333_p12 = pneg %p4643_p11 }
  0x16   : > { %p4352_p10 = por %p4351_p7, %p4350_p5 }
  0x17   : > { %p4345_p0 = pnand %p4343_p13, %p4333_p12 }
  0x19   : > { %p4346_p3 = pneg %p4345_p0 }
  0x1b   : > { %p4353_p9 = pnand %p4352_p10, %p4346_p3 }
  0x1d   : > { %4356 = shalt.err (!%p4353_p9)
}
  0x1e   : > { %4136 = dma.hbm_to_vmem [thread:$0]  (!%p4643_p11), %s6563_s1, 64, %s156_s25, [#allocation7]  }
  0x1f   : > { %s4368_s8 = scalar_lea.vmem %s167_s27, 64  ;;  %p4376_p13 = scmp.lt.s32.totalorder %s167_s27, %s167_s27 }
  0x20   : > { %p4369_p1 = scmp.ne.s32.totalorder %s167_s27, %s4368_s8  ;;  %p4377_p0 = scmp.lt.s32.totalorder %s4368_s8, %s4368_s8 }
  0x22   : > { %p4371_p2 = pnand %p4369_p1, %p4333_p12  ;;  %p4378_p4 = por %p4377_p0, %p4376_p13 }
  0x24   : > { %p4372_p6 = pneg %p4371_p2 }
  0x26   : > { %p4379_p8 = pnand %p4378_p4, %p4372_p6 }
  0x28   : > { %4382 = shalt.err (!%p4379_p8)
}
  0x29   : > { %4139 = dma.hbm_to_vmem [thread:$0]  (!%p4643_p11), %s6564_s2, 64, %s167_s27, [#allocation7]  }
  0x2a   : > { %s4394_s11 = scalar_lea.vmem %s4647_s30, 128  ;;  %p4402_p3 = scmp.lt.s32.totalorder %s4647_s30, %s4647_s30 }
  0x2b   : > { %p4395_p9 = scmp.ne.s32.totalorder %s4647_s30, %s4394_s11  ;;  %p4403_p4 = scmp.lt.s32.totalorder %s4394_s11, %s4394_s11 }
  0x2d   : > { %p4397_p1 = pnand %p4395_p9, %p4333_p12  ;;  %p4404_p6 = por %p4403_p4, %p4402_p3 }
  0x2f   : > { %p4398_p2 = pneg %p4397_p1 }
  0x31   : > { %p4405_p8 = pnand %p4404_p6, %p4398_p2 }
  0x33   : > { %4408 = shalt.err (!%p4405_p8)
}
  0x34   : > { %4142 = dma.hbm_to_vmem [thread:$0]  (!%p4643_p11), %s6565_s3, 128, %s4647_s30, [#allocation10]  }
  0x35   : > { %s4681_s14 = sadd.s32 1, %s4509_s18   ;;  %s29_s24 = sadd.s32 1, %s4505_s17 }
  0x36   : > { %s26_s20 = ssub.s32 %s4509_s18, %s4681_s14  ;;  %p36_p5 = scmp.ne.s32.totalorder %s4505_s17, %s4501_s16 }
  0x37   : > { %p27_p12 = scmp.eq.s32.totalorder %s26_s20, 0  ;;  %p37_p7 = scmp.eq.s32.totalorder %s4509_s18, 0 }
  0x38   : > { %p4154_p10 = scmp.lt.s32.totalorder %s4509_s18, 2  ;;  %p6641_p0 = scmp.eq.s32.totalorder %s4615_s19, 1 }
  0x39   : > { %s4691_s25 = scalar_select %p27_p12, %s4505_s17, %s29_s24  }
  0x3a   : > { %p38_p13 = por %p37_p7, %p36_p5  ;;  %p4695_p9 = por %p6641_p0, %p36_p5 }
  0x3b   : > { %s188_s27 = sand.u32 1, %s4505_s17   ;;  %s4115_s28 = sshll.u32 %s4509_s18, 7 }
  0x3c   : > { %s6642_s26 = scalar_select %p4695_p9, 1, 0 }
  0x3d   : > { %s4097_s29 = sshll.u32 %s188_s27, 3  ;;  %s4704_s6 = scalar_lea.hbm %s6562_s0, %s4115_s28 }
  0x3e   : > { %s192_s7 = scalar_lea.vmem [#allocation3], %s4097_s29  ;;  %p4706_p11 = pnand %p4154_p10, %p38_p13 }
  0x3f   : > { %s200_s8 = sshll.u32 %s192_s7, 4  ;;  %s189_s10 = scalar_lea.sflag [#allocation4], %s188_s27  ;;  %s201_s8 = int_to_ptr.vmem [resolvable:$true] %s200_s8 }
  0x40   : > { %s4409_s11 = scalar_lea.hbm %s4704_s6, 128  ;;  %p4411_p2 = pneg %p4706_p11 }
  0x41   : > { %p4410_p1 = scmp.ne.s32.totalorder %s4704_s6, %s4409_s11  ;;  %s4414_s20 = scalar_lea.hbm %s6562_s0, 256 }
  0x42   : > { %p4415_p6 = scmp.lt.s32.totalorder %s4704_s6, %s6562_s0  ;;  %p4416_p8 = scmp.lt.s32.totalorder %s4414_s20, %s4409_s11 }
  0x43   : > { %p4412_p3 = pnand %p4411_p2, %p4410_p1 }
  0x44   : > { %p4417_p12 = por %p4416_p8, %p4415_p6 }
  0x45   : > { %p4413_p4 = pneg %p4412_p3 }
  0x47   : > { %p4418_p5 = pnand %p4417_p12, %p4413_p4 }
  0x49   : > { %4421 = shalt.err (!%p4418_p5)
}
  0x4a   : > { %s4422_s29 = scalar_lea.vmem %s201_s8, 128  ;;  %s4514_s27 = smov [#allocation3]  }
  0x4b   : > { %p4423_p7 = scmp.ne.s32.totalorder %s201_s8, %s4422_s29  ;;  %s4427_s30 = sshll.u32 %s4514_s27, 4  ;;  %s4428_s30 = int_to_ptr.vmem [resolvable:$false] %s4427_s30 }
  0x4c   : > { %s4429_s5 = scalar_lea.vmem %s4428_s30, 256  ;;  %p4430_p0 = scmp.lt.s32.totalorder %s201_s8, %s4428_s30 }
  0x4d   : > { %p4425_p10 = pnand %p4423_p7, %p4411_p2  ;;  %p4431_p1 = scmp.lt.s32.totalorder %s4429_s5, %s4422_s29 }
  0x4f   : > { %p4426_p13 = pneg %p4425_p10  ;;  %p4432_p3 = por %p4431_p1, %p4430_p0 }
  0x51   : > { %p4433_p9 = pnand %p4432_p3, %p4426_p13 }
  0x53   : > { %4436 = shalt.err (!%p4433_p9)
}
  0x54   : > { %4146 = dma.hbm_to_vmem [thread:$0]  (!%p4706_p11), %s4704_s6, 128, %s201_s8, %s189_s10  }
  0x55   : > { %p6644_p4 = scmp.ne.s32.totalorder %s6639_s23, 0 }
  0x57   : > { %209 = sbr.rel (%p6644_p4) target bundleno = 3124 (0xc34), region = 36 }
  0x5c   : > { %s4727_s7 = sand.u32 1, %s4501_s16   ;;  %p6645_p9 = scmp.ne.s32.totalorder %s6637_s21, 0 }
  0x5d   : > { %s6618_s11 = sshll.u32 %s4727_s7, 3  ;;  %s212_s12 = scalar_lea.sflag [#allocation4], %s4727_s7 }
  0x5e   : > { %s4733_s13 = scalar_lea.vmem [#allocation3], %s6618_s11 }
  0x5f   : > { %4480 = dma.done.wait (%p6645_p9), %s212_s12, 128  }
  0x60   : > { %4482 = vsyncadd (%p6645_p9), %s212_s12, 4294967168  ;;  %p6646_p11 = scmp.eq.s32.totalorder %s4615_s19, 0 }
  0x62   : > { %4484 = dma.done.wait (%p6646_p11), [#allocation7], 128   ;;  %p6647_p2 = pmov %p6646_p11 }
  0x64   : > { %4486 = vsyncadd (%p6647_p2), [#allocation7], 4294967168  ;;  %p6648_p6 = pmov %p6647_p2 }
  0x65   : > { %p6649_p8 = pmov %p6647_p2 }
  0x66   : > { %4488 = dma.done.wait (%p6648_p6), [#allocation10], 128  }
  0x67   : > { %4490 = vsyncadd (%p6649_p8), [#allocation10], 4294967168  ;;  %v273_v0 = vlaneseq  ;;  %v6592_v1 = vmov 1   ;;  %v6591_v2 = vmov 0   ;;  %v4517_v6 = vmov 0.0   ;;  %v252_v8 = vld [vmem:[%s4733_s13] sm:$0xff] }
  0x68   : > { %4248 = vset.pattern.permute.xlu1 %v6592_v1  ;;  %4247 = vset.pattern.permute.xlu0 %v6591_v2  ;;  %253 = vst [vmem:[#allocation2] sm:$0xff] %v4517_v6  ;;  %vm254_vm0 = vcmask 273408   ;;  %v284_v7 = vld [vmem:[#allocation6] sm:$0xf]  ;;  %s4518_s21 = smov 17   ;;  %v6590_v12 = vmov 2  }
  0x69   : > { %v4749_v3 = vshrl.u32 %v273_v0, 7  ;;  %255 = vst.msk [vmem:[#allocation2 + $0x8] sm:$0xf] %vm254_vm0, %v4517_v6  ;;  %314 = vperm.xlu1 %4248, %v284_v7   ;;  %257 = vrot.lane.b32.xlu0 %v252_v8, %s4518_s21  ;;  %v394_v9 = vld [vmem:[#allocation9 + $0x1] ss:$4 sm:$0x3] }
  0x6a   : > { %s4520_s23 = smov 1   ;;  %v6588_v14 = vmov 3   ;;  %v6589_v15 = vmov 8   ;;  %v638_v16 = vld [vmem:[#allocation6] sm:$0xf]  ;;  %v6586_v18 = vmov 4  }
  0x6b   : > { %v4752_v4 = vsub.s32 0, %v4749_v3  ;;  %v4755_v5 = vsub.s32 1, %v4749_v3  ;;  %v414_v17 = vld [vmem:[#allocation6] sm:$0xf]  ;;  %v6587_v20 = vmov 12   ;;  %v6583_v21 = vmov 5  }
  0x6c   : > { %v850_v19 = vld [vmem:[#allocation6] sm:$0xf]  ;;  %v6585_v23 = vmov 16   ;;  %v618_v24 = vld [vmem:[#allocation9 + $0x2] ss:$4 sm:$0x3] }
  0x6d   : > { %v399_v10 = vrot.slane %v394_v9, %v4752_v4  ;;  %v403_v11 = vrot.slane %v394_v9, %v4755_v5  ;;  %4249 = vset.pattern.permute.xlu1 %v6590_v12  ;;  %287 = vperm.xlu0 %4247, %v284_v7   ;;  %v4771_v22 = vld [vmem:[#allocation6] sm:$0xf]  ;;  %v6581_v25 = vmov 6   ;;  %v623_v26 = vrot.slane %v618_v24, %v4752_v4  ;;  %s4529_s6 = smov 2   ;;  %s4533_s8 = smov 16  }
  0x6e   : > { %340 = vperm.xlu1 %4249, %v284_v7   ;;  %v627_v27 = vrot.slane %v618_v24, %v4755_v5  ;;  %v6580_v28 = vmov 7   ;;  %v6579_v30 = vmov 9   ;;  %v271_v31 = vld [vmem:[#allocation9] ss:$4 sm:$0x3]  ;;  %v6578_v32 = vmov 10  }
  0x6f   : > { %v4762_v13 = vcombine.low %v399_v10, %v403_v11  ;;  %v276_v33 = vrot.slane %v271_v31, %v4752_v4  ;;  %v280_v34 = vrot.slane %v271_v31, %v4755_v5  ;;  %v6577_v35 = vmov 11   ;;  %s4540_s9 = smov 127   ;;  %s4541_s10 = smov 126  }
  0x70   : > { %v4779_v29 = vcombine.low %v623_v26, %v627_v27  ;;  %v6576_v37 = vmov 13   ;;  %v6575_v38 = vmov 14   ;;  %v6574_v39 = vmov 15   ;;  %s4542_s20 = smov 112   ;;  %s4543_s24 = smov 111  }
  0x71   : > { %405 = vrot.lane.b32.xlu0 %v4762_v13, %s4520_s23  ;;  %v4788_v36 = vcombine.low %v276_v33, %v280_v34  ;;  %v6573_v40 = vmov 17   ;;  %v6572_v41 = vmov 18   ;;  %v6571_v42 = vmov 19   ;;  %s4545_s28 = smov 18   ;;  %s4547_s29 = smov 110  }
  0x72   : > { %4250 = vset.pattern.permute.xlu1 %v6588_v14  ;;  %4255 = vset.pattern.permute.xlu0 %v6589_v15  ;;  %vm264_vm1 = vcmask 1043592   ;;  %vm265_vm2 = vcmask 1047556   ;;  %vm260_vm3 = vcmask 138240   ;;  %vm268_vm4 = vcmask 134144   ;;  %s4551_s27 = smov 32   ;;  %s4553_s30 = smov 96  }
  0x73   : > { %366 = vperm.xlu1 %4250, %v284_v7   ;;  %vm4802_vm5 = vmor %vm265_vm2, %vm264_vm1  ;;  %v6650_v44 = vmov 0  ;;  %vm408_vm6 = vcmask 7168   ;;  %v4822_v57 = vsub.s32 5, %v4749_v3  ;;  %v4825_v58 = vsub.s32 4, %v4749_v3  ;;  %s4557_s5 = smov 33   ;;  %s6623_s12 = smov 95  }
  0x74   : > { %v6651_v44 = vsel %vm4802_vm5, 4294967295, %v6650_v44  ;;  %v4841_v8 = vsub.s32 2, %v4749_v3  ;;  %v4844_v9 = vsub.s32 6, %v4749_v3  ;;  %v4860_v33 = vsub.s32 3, %v4749_v3  ;;  %s4563_s11 = smov 34   ;;  %p6840_p5 = scmp.ne.s32.totalorder %s6642_s26, 0 }
  0x75   : > { %641 = vperm.xlu0 %4255, %v638_v16   ;;  %6652 = vst [vmem:[#allocation16_spill] sm:$0xff] %v6651_v44  ;;  %v4863_v34 = vsub.s32 7, %v4749_v3  ;;  %vm632_vm7 = vcmask 15360   ;;  %vm844_vm8 = vcmask 130048   ;;  %vm1267_vm9 = vcmask 146432  }
  0x76   : > { %vm1479_vm10 = vcmask 261120   ;;  %vm1691_vm11 = vcmask 269312   ;;  %vm1903_vm12 = vcmask 277504   ;;  %vm461_vm13 = vcmask 1039360  }
  0x77   : > { %4251 = vset.pattern.permute.xlu1 %v6586_v18  ;;  %vm685_vm14 = vcmask 1031168   ;;  %vm897_vm15 = vcmask 916480   ;;  %vm1108_vm0 = vcmask 908288   ;;  %vm6633_vm1 = vcmask 900096  }
  0x78   : > { %417 = vperm.xlu1 %4251, %v414_v17   ;;  %vm6634_vm2 = vcmask 785408  }
  0x79   : > { %4259 = vset.pattern.permute.xlu0 %v6587_v20 }
  0x7a   : > { %853 = vperm.xlu0 %4259, %v850_v19  }
  0x7c   : > { %4252 = vset.pattern.permute.xlu1 %v6583_v21 }
  0x7d   : > { %469 = vperm.xlu1 %4252, %v414_v17  }
  0x7e   : > { %4263 = vset.pattern.permute.xlu0 %v6585_v23 }
  0x7f   : > { %1064 = vperm.xlu0 %4263, %v4771_v22  }
  0x81   : > { %4253 = vset.pattern.permute.xlu1 %v6581_v25 }
  0x82   : > { %518 = vperm.xlu1 %4253, %v414_v17  }
  0x86   : > { %4254 = vset.pattern.permute.xlu1 %v6580_v28 }
  0x87   : > { %567 = vperm.xlu1 %4254, %v414_v17  }
  0x8b   : > { %629 = vrot.lane.b32.xlu1 %v4779_v29, %s4529_s6 }
  0x8c   : > { %4256 = vset.pattern.permute.xlu1 %v6579_v30 }
  0x8f   : > { %693 = vperm.xlu1 %4256, %v638_v16  }
  0x93   : > { %4257 = vset.pattern.permute.xlu1 %v6578_v32 }
  0x94   : > { %742 = vperm.xlu1 %4257, %v638_v16  }
  0x98   : > { %4258 = vset.pattern.permute.xlu1 %v6577_v35 }
  0x99   : > { %791 = vperm.xlu1 %4258, %v638_v16  }
  0x9d   : > { %841 = vrot.lane.b32.xlu1 %v4788_v36, %s4533_s8 }
  0x9e   : > { %4260 = vset.pattern.permute.xlu1 %v6576_v37 }
  0xa1   : > { %905 = vperm.xlu1 %4260, %v850_v19  }
  0xa5   : > { %4261 = vset.pattern.permute.xlu1 %v6575_v38 }
  0xa6   : > { %954 = vperm.xlu1 %4261, %v850_v19  }
  0xaa   : > { %4262 = vset.pattern.permute.xlu1 %v6574_v39 }
  0xab   : > { %1003 = vperm.xlu1 %4262, %v850_v19  }
  0xaf   : > { %1053 = vrot.lane.b32.xlu1 %v4762_v13, %s4518_s21 }
  0xb0   : > { %4264 = vset.pattern.permute.xlu1 %v6573_v40 }
  0xb3   : > { %1116 = vperm.xlu1 %4264, %v4771_v22  }
  0xb7   : > { %4265 = vset.pattern.permute.xlu1 %v6572_v41 }
  0xb8   : > { %1165 = vperm.xlu1 %4265, %v4771_v22  }
  0xbc   : > { %4266 = vset.pattern.permute.xlu1 %v6571_v42 }
  0xdb   : > { %v258_v43 = vpop.permute.xlu0 %257 }
  0xdc   : > { %v259_v45 = vrot.slane %v258_v43, 4 }
  0xde   : > { %v261_v46 = vsel %vm260_vm3, %v259_v45, %v258_v43  ;;  %269 = vst.msk [vmem:[#allocation2 + $0x8] sm:$0xf] %vm268_vm4, %v259_v45 }
  0xdf   : > { %267 = vst.msk [vmem:[#allocation2] sm:$0xff] %vm4802_vm5, %v261_v46 }
  0xe4   : > { %v4810_v47 = vpop.permute.xlu1 %314 }
  0xe5   : > { %v392_v51 = vld [vmem:[#allocation2 + $0x8] sm:$0xf] }
  0xe6   : > { %v4818_v54 = vld [vmem:[#allocation2] sm:$0xff] }
  0xe8   : > { %v4812_v48 = vpop.permute.xlu0 %287 }
  0xe9   : > { %v4814_v49 = vpop.permute.xlu1 %340 }
  0xec   : > { %v406_v50 = vpop.permute.xlu0 %405 }
  0xed   : > { %v407_v52 = vrot.slane %v406_v50, 4 }
  0xee   : > { %v4816_v53 = vpop.permute.xlu1 %366 }
  0xef   : > { %v409_v55 = vsel %vm408_vm6, %v407_v52, %v406_v50  ;;  %v413_v56 = vmul.f32 %v407_v52, %v392_v51 }
  0xf0   : > { %v4828_v59 = vmul.f32 %v409_v55, %v4818_v54 }
  0xf1   : > { %v433_v60 = vrot.slane %v413_v56, %v4752_v4  ;;  %v483_v63 = vrot.slane %v413_v56, %v4755_v5  ;;  %v532_v24 = vrot.slane %v413_v56, %v4841_v8  ;;  %v581_v50 = vrot.slane %v413_v56, %v4860_v33 }
  0xf2   : > { %v429_v62 = vrot.slane %v4828_v59, %v4825_v58  ;;  %v479_v0 = vrot.slane %v4828_v59, %v4822_v57  ;;  %v528_v26 = vrot.slane %v4828_v59, %v4844_v9  ;;  %v577_v51 = vrot.slane %v4828_v59, %v4863_v34 }
  0xf3   : > { %v4831_v61 = vpop.permute.xlu1 %417  ;;  %v448_v6 = vrot.slane %v433_v60, %v4752_v4  ;;  %v498_v16 = vrot.slane %v483_v63, %v4755_v5  ;;  %v547_v43 = vrot.slane %v532_v24, %v4841_v8  ;;  %v596_v55 = vrot.slane %v581_v50, %v4860_v33 }
  0xf4   : > { %v444_v7 = vrot.slane %v429_v62, %v4752_v4  ;;  %v494_v17 = vrot.slane %v479_v0, %v4755_v5  ;;  %v543_v45 = vrot.slane %v528_v26, %v4841_v8  ;;  %v592_v60 = vrot.slane %v577_v51, %v4860_v33 }
  0xf5   : > { %v451_v10 = vmul.f32 %v448_v6, %v4831_v61 }
  0xf6   : > { %v450_v11 = vmul.f32 %v444_v7, %v4831_v61  ;;  %v616_v7 = vld [vmem:[#allocation2 + $0x8] sm:$0xf] }
  0xf7   : > { %459 = vrot.lane.b32.xlu0 %v451_v10, %s4540_s9 }
  0xf8   : > { %v4851_v19 = vpop.permute.xlu1 %469  ;;  %457 = vrot.lane.b32.xlu1 %v450_v11, %s4540_s9 }
  0xf9   : > { %v501_v27 = vmul.f32 %v498_v16, %v4851_v19  ;;  %v500_v31 = vmul.f32 %v494_v17, %v4851_v19 }
  0xfb   : > { %509 = vrot.lane.b32.xlu0 %v501_v27, %s4540_s9  ;;  %v642_v27 = vpop.permute.xlu0 %641 }
  0xfc   : > { %507 = vrot.lane.b32.xlu1 %v500_v31, %s4540_s9 }
  0xfd   : > { %v4869_v46 = vpop.permute.xlu1 %518 }
  0xfe   : > { %v550_v52 = vmul.f32 %v547_v43, %v4869_v46  ;;  %v549_v3 = vmul.f32 %v543_v45, %v4869_v46 }
 0x100   : > { %558 = vrot.lane.b32.xlu0 %v550_v52, %s4540_s9  ;;  %556 = vrot.lane.b32.xlu1 %v549_v3, %s4540_s9 }
 0x102   : > { %v4880_v62 = vpop.permute.xlu1 %567 }
 0x103   : > { %v599_v63 = vmul.f32 %v596_v55, %v4880_v62  ;;  %v598_v56 = vmul.f32 %v592_v60, %v4880_v62 }
 0x105   : > { %607 = vrot.lane.b32.xlu0 %v599_v63, %s4540_s9  ;;  %605 = vrot.lane.b32.xlu1 %v598_v56, %s4540_s9 }
 0x106   : > { %v630_v0 = vpop.permute.xlu1 %629 }
 0x107   : > { %v631_v6 = vrot.slane %v630_v0, 4 }
 0x109   : > { %v633_v10 = vsel %vm632_vm7, %v631_v6, %v630_v0  ;;  %v637_v11 = vmul.f32 %v631_v6, %v616_v7 }
 0x10a   : > { %v4888_v16 = vmul.f32 %v633_v10, %v4818_v54  ;;  %v4890_v17 = vpop.permute.xlu1 %693 }
 0x10b   : > { %v657_v24 = vrot.slane %v637_v11, %v4752_v4  ;;  %v707_v26 = vrot.slane %v637_v11, %v4755_v5  ;;  %v756_v55 = vrot.slane %v637_v11, %v4841_v8 }
 0x10c   : > { %v649_v31 = vrot.slane %v4888_v16, %v4752_v4  ;;  %v653_v43 = vrot.slane %v4888_v16, %v4825_v58  ;;  %v703_v56 = vrot.slane %v4888_v16, %v4822_v57 }
 0x10d   : > { %v672_v45 = vrot.slane %v657_v24, %v4752_v4  ;;  %v722_v3 = vrot.slane %v707_v26, %v4755_v5  ;;  %v771_v6 = vrot.slane %v756_v55, %v4841_v8  ;;  %v752_v26 = vrot.slane %v4888_v16, %v4844_v9  ;;  %v840_v55 = vld [vmem:[#allocation2 + $0x8] sm:$0xf] }
 0x10e   : > { %v664_v50 = vrot.slane %v649_v31, %v4752_v4  ;;  %v668_v63 = vrot.slane %v653_v43, %v4752_v4  ;;  %v718_v24 = vrot.slane %v703_v56, %v4755_v5  ;;  %v805_v31 = vrot.slane %v637_v11, %v4860_v33 }
 0x10f   : > { %v4900_v51 = vpop.permute.xlu1 %742  ;;  %v675_v52 = vmul.f32 %v672_v45, %v642_v27  ;;  %v725_v0 = vmul.f32 %v722_v3, %v4890_v17  ;;  %v801_v11 = vrot.slane %v4888_v16, %v4863_v34 }
 0x110   : > { %v673_v60 = vmul.f32 %v664_v50, %v642_v27  ;;  %v674_v10 = vmul.f32 %v668_v63, %v642_v27  ;;  %v774_v43 = vmul.f32 %v771_v6, %v4900_v51  ;;  %v724_v50 = vmul.f32 %v718_v24, %v4890_v17 }
 0x111   : > { %683 = vrot.lane.b32.xlu0 %v675_v52, %s4541_s10  ;;  %v767_v52 = vrot.slane %v752_v26, %v4841_v8  ;;  %v820_v3 = vrot.slane %v805_v31, %v4860_v33  ;;  %v854_v31 = vpop.permute.xlu0 %853 }
 0x112   : > { %679 = vrot.lane.b32.xlu1 %v673_v60, %s4541_s10 }
 0x114   : > { %v4911_v7 = vpop.permute.xlu1 %791 }
 0x115   : > { %733 = vrot.lane.b32.xlu0 %v725_v0, %s4541_s10  ;;  %v823_v56 = vmul.f32 %v820_v3, %v4911_v7 }
 0x116   : > { %681 = vrot.lane.b32.xlu1 %v674_v10, %s4541_s10  ;;  %v773_v10 = vmul.f32 %v767_v52, %v4900_v51 }
 0x118   : > { %v842_v45 = vpop.permute.xlu1 %841 }
 0x119   : > { %v843_v27 = vrot.slane %v842_v45, 4  ;;  %782 = vrot.lane.b32.xlu0 %v774_v43, %s4541_s10  ;;  %v816_v43 = vrot.slane %v801_v11, %v4860_v33 }
 0x11a   : > { %731 = vrot.lane.b32.xlu1 %v724_v50, %s4541_s10 }
 0x11b   : > { %v845_v60 = vsel %vm844_vm8, %v843_v27, %v842_v45  ;;  %v849_v63 = vmul.f32 %v843_v27, %v840_v55  ;;  %v822_v27 = vmul.f32 %v816_v43, %v4911_v7 }
 0x11c   : > { %v4930_v0 = vmul.f32 %v845_v60, %v4818_v54  ;;  %v4932_v6 = vpop.permute.xlu1 %905 }
 0x11d   : > { %831 = vrot.lane.b32.xlu0 %v823_v56, %s4541_s10  ;;  %v869_v24 = vrot.slane %v849_v63, %v4752_v4  ;;  %v919_v26 = vrot.slane %v849_v63, %v4755_v5 }
 0x11e   : > { %780 = vrot.lane.b32.xlu1 %v773_v10, %s4541_s10  ;;  %v861_v45 = vrot.slane %v4930_v0, %v4752_v4  ;;  %v865_v3 = vrot.slane %v4930_v0, %v4825_v58  ;;  %v968_v10 = vrot.slane %v849_v63, %v4841_v8  ;;  %v915_v43 = vrot.slane %v4930_v0, %v4822_v57 }
 0x11f   : > { %v884_v50 = vrot.slane %v869_v24, %v4752_v4  ;;  %v934_v56 = vrot.slane %v919_v26, %v4755_v5  ;;  %v1017_v26 = vrot.slane %v849_v63, %v4860_v33 }
 0x120   : > { %v876_v52 = vrot.slane %v861_v45, %v4752_v4  ;;  %v880_v24 = vrot.slane %v865_v3, %v4752_v4  ;;  %v983_v42 = vrot.slane %v968_v10, %v4841_v8  ;;  %v964_v3 = vrot.slane %v4930_v0, %v4844_v9 }
 0x121   : > { %v4947_v55 = vpop.permute.xlu1 %954  ;;  %v887_v60 = vmul.f32 %v884_v50, %v854_v31  ;;  %v937_v45 = vmul.f32 %v934_v56, %v4932_v6  ;;  %v1032_v10 = vrot.slane %v1017_v26, %v4860_v33 }
 0x122   : > { %829 = vrot.lane.b32.xlu1 %v822_v27, %s4541_s10  ;;  %v885_v11 = vmul.f32 %v876_v52, %v854_v31  ;;  %v886_v27 = vmul.f32 %v880_v24, %v854_v31  ;;  %v930_v52 = vrot.slane %v915_v43, %v4755_v5  ;;  %v979_v63 = vrot.slane %v964_v3, %v4841_v8  ;;  %v1065_v3 = vpop.permute.xlu0 %1064 }
 0x123   : > { %895 = vrot.lane.b32.xlu0 %v887_v60, %s4542_s20  ;;  %v986_v60 = vmul.f32 %v983_v42, %v4947_v55 }
 0x126   : > { %v4958_v50 = vpop.permute.xlu1 %1003  ;;  %891 = vrot.lane.b32.xlu1 %v885_v11, %s4542_s20  ;;  %v1052_v11 = vld [vmem:[#allocation2 + $0x8] sm:$0xf] }
 0x127   : > { %945 = vrot.lane.b32.xlu0 %v937_v45, %s4542_s20  ;;  %v936_v45 = vmul.f32 %v930_v52, %v4932_v6  ;;  %v1035_v43 = vmul.f32 %v1032_v10, %v4958_v50  ;;  %v985_v52 = vmul.f32 %v979_v63, %v4947_v55 }
 0x12a   : > { %v1054_v41 = vpop.permute.xlu1 %1053  ;;  %893 = vrot.lane.b32.xlu1 %v886_v27, %s4542_s20  ;;  %v1013_v27 = vrot.slane %v4930_v0, %v4863_v34 }
 0x12b   : > { %v1055_v56 = vrot.slane %v1054_v41, 4  ;;  %994 = vrot.lane.b32.xlu0 %v986_v60, %s4542_s20 }
 0x12c   : > { %v1028_v10 = vrot.slane %v1013_v27, %v4860_v33 }
 0x12d   : > { %v1056_v31 = vsel %vm260_vm3, %v1055_v56, %v1054_v41  ;;  %v4973_v24 = vmul.f32 %v1055_v56, %v1052_v11 }
 0x12e   : > { %v4977_v42 = vmul.f32 %v1056_v31, %v4818_v54  ;;  %943 = vrot.lane.b32.xlu1 %v936_v45, %s4542_s20  ;;  %v425_v31 = vrot.slane %v4828_v59, %v4752_v4 }
 0x12f   : > { %1043 = vrot.lane.b32.xlu0 %v1035_v43, %s4542_s20  ;;  %v1080_v26 = vrot.slane %v4973_v24, %v4752_v4  ;;  %v1130_v41 = vrot.slane %v4973_v24, %v4755_v5  ;;  %v1034_v43 = vmul.f32 %v1028_v10, %v4958_v50  ;;  %v475_v10 = vrot.slane %v4828_v59, %v4755_v5 }
 0x130   : > { %v1072_v60 = vrot.slane %v4977_v42, %v4752_v4  ;;  %v1076_v40 = vrot.slane %v4977_v42, %v4825_v58  ;;  %v1228_v38 = vrot.slane %v4973_v24, %v4860_v33 }
 0x131   : > { %v1095_v56 = vrot.slane %v1080_v26, %v4752_v4  ;;  %v1145_v45 = vrot.slane %v1130_v41, %v4755_v5  ;;  %v5001_v26 = vpop.permute.xlu1 %1116  ;;  %v440_v41 = vrot.slane %v425_v31, %v4752_v4  ;;  %v1175_v31 = vrot.slane %v4977_v42, %v4844_v9 }
 0x132   : > { %992 = vrot.lane.b32.xlu1 %v985_v52, %s4542_s20  ;;  %v1087_v63 = vrot.slane %v1072_v60, %v4752_v4  ;;  %v1126_v60 = vrot.slane %v4977_v42, %v4822_v57 }
 0x133   : > { %v1098_v11 = vmul.f32 %v1095_v56, %v1065_v3  ;;  %v1148_v27 = vmul.f32 %v1145_v45, %v5001_v26  ;;  %v1091_v56 = vrot.slane %v1076_v40, %v4752_v4  ;;  %v490_v40 = vrot.slane %v475_v10, %v4755_v5 }
 0x134   : > { %v1096_v52 = vmul.f32 %v1087_v63, %v1065_v3  ;;  %v1141_v45 = vrot.slane %v1126_v60, %v4755_v5  ;;  %v524_v63 = vrot.slane %v4828_v59, %v4841_v8  ;;  %v699_v10 = vrot.slane %v4888_v16, %v4755_v5 }
 0x135   : > { %1106 = vrot.lane.b32.xlu0 %v1098_v11, %s4543_s24  ;;  %v449_v11 = vmul.f32 %v440_v41, %v4831_v61  ;;  %v1190_v61 = vrot.slane %v1175_v31, %v4841_v8 }
 0x136   : > { %1041 = vrot.lane.b32.xlu1 %v1034_v43, %s4542_s20  ;;  %v1097_v43 = vmul.f32 %v1091_v56, %v1065_v3  ;;  %v1166_v3 = vpop.permute.xlu1 %1165  ;;  %v539_v41 = vrot.slane %v524_v63, %v4841_v8  ;;  %v573_v56 = vrot.slane %v4828_v59, %v4860_v33  ;;  %v748_v59 = vrot.slane %v4888_v16, %v4841_v8 }
 0x137   : > { %v6582_v63 = vmov 20  }
 0x138   : > { %v548_v60 = vmul.f32 %v539_v41, %v4869_v46  ;;  %v763_v31 = vrot.slane %v748_v59, %v4841_v8  ;;  %4267 = vset.pattern.permute.xlu0 %v6582_v63  ;;  %v1009_v41 = vrot.slane %v4930_v0, %v4860_v33 }
 0x139   : > { %1156 = vrot.lane.b32.xlu0 %v1148_v27, %s4543_s24  ;;  %v499_v27 = vmul.f32 %v490_v40, %v4851_v19  ;;  %v1196_v19 = vmul.f32 %v1190_v61, %v1166_v3  ;;  %v797_v40 = vrot.slane %v4888_v16, %v4860_v33  ;;  %v960_v61 = vrot.slane %v4930_v0, %v4841_v8 }
 0x13a   : > { %1102 = vrot.lane.b32.xlu1 %v1096_v52, %s4543_s24  ;;  %v1147_v52 = vmul.f32 %v1141_v45, %v5001_v26  ;;  %v714_v45 = vrot.slane %v699_v10, %v4755_v5 }
 0x13c   : > { %v723_v46 = vmul.f32 %v714_v45, %v4890_v17 }
 0x13d   : > { %455 = vrot.lane.b32.xlu0 %v449_v11, %s4540_s9  ;;  %v588_v11 = vrot.slane %v573_v56, %v4860_v33 }
 0x13e   : > { %1104 = vrot.lane.b32.xlu1 %v1097_v43, %s4543_s24 }
 0x13f   : > { %v597_v43 = vmul.f32 %v588_v11, %v4880_v62  ;;  %v772_v62 = vmul.f32 %v763_v31, %v4900_v51  ;;  %v975_v51 = vrot.slane %v960_v61, %v4841_v8  ;;  %v1179_v11 = vrot.slane %v4973_v24, %v4841_v8 }
 0x141   : > { %505 = vrot.lane.b32.xlu0 %v499_v27, %s4540_s9  ;;  %v911_v27 = vrot.slane %v4930_v0, %v4755_v5  ;;  %v984_v56 = vmul.f32 %v975_v51, %v4947_v55  ;;  %v1194_v45 = vrot.slane %v1179_v11, %v4841_v8  ;;  %v1220_v11 = vrot.slane %v4977_v42, %v4860_v33 }
 0x142   : > { %1154 = vrot.lane.b32.xlu1 %v1147_v52, %s4543_s24 }
 0x143   : > { %v926_v52 = vrot.slane %v911_v27, %v4755_v5  ;;  %v1235_v39 = vrot.slane %v1220_v11, %v4860_v33 }
 0x145   : > { %554 = vrot.lane.b32.xlu0 %v548_v60, %s4540_s9  ;;  %v935_v16 = vmul.f32 %v926_v52, %v4932_v6  ;;  %v1024_v60 = vrot.slane %v1009_v41, %v4860_v33 }
 0x146   : > { %1203 = vrot.lane.b32.xlu1 %v1196_v19, %s4543_s24  ;;  %v1171_v19 = vrot.slane %v4977_v42, %v4841_v8 }
 0x147   : > { %v1033_v10 = vmul.f32 %v1024_v60, %v4958_v50  ;;  %v1197_v50 = vmul.f32 %v1194_v45, %v1166_v3 }
 0x148   : > { %v1186_v55 = vrot.slane %v1171_v19, %v4841_v8 }
 0x149   : > { %603 = vrot.lane.b32.xlu0 %v597_v43, %s4540_s9 }
 0x14a   : > { %1214 = vperm.xlu1 %4266, %v4771_v22   ;;  %v812_v22 = vrot.slane %v797_v40, %v4860_v33  ;;  %v1195_v43 = vmul.f32 %v1186_v55, %v1166_v3  ;;  %v1224_v55 = vrot.slane %v4977_v42, %v4863_v34 }
 0x14c   : > { %v821_v17 = vmul.f32 %v812_v22, %v4911_v7  ;;  %v1122_v7 = vrot.slane %v4977_v42, %v4755_v5  ;;  %v1243_v42 = vrot.slane %v1228_v38, %v4860_v33 }
 0x14d   : > { %729 = vrot.lane.b32.xlu0 %v723_v46, %s4541_s10 }
 0x14e   : > { %v1137_v6 = vrot.slane %v1122_v7, %v4755_v5 }
 0x150   : > { %v1146_v0 = vmul.f32 %v1137_v6, %v5001_v26 }
 0x151   : > { %778 = vrot.lane.b32.xlu0 %v772_v62, %s4541_s10 }
 0x155   : > { %827 = vrot.lane.b32.xlu0 %v821_v17, %s4541_s10 }
 0x159   : > { %941 = vrot.lane.b32.xlu0 %v935_v16, %s4542_s20 }
 0x15d   : > { %990 = vrot.lane.b32.xlu0 %v984_v56, %s4542_s20 }
 0x161   : > { %1039 = vrot.lane.b32.xlu0 %v1033_v10, %s4542_s20 }
 0x165   : > { %1152 = vrot.lane.b32.xlu0 %v1146_v0, %s4543_s24 }
 0x169   : > { %1201 = vrot.lane.b32.xlu0 %v1195_v43, %s4543_s24  ;;  %v5107_v51 = vpop.permute.xlu0 %459 }
 0x16a   : > { %v5081_v59 = vpop.permute.xlu1 %457 }
 0x16d   : > { %1205 = vrot.lane.b32.xlu0 %v1197_v50, %s4543_s24  ;;  %v5111_v56 = vpop.permute.xlu0 %509  ;;  %v1239_v50 = vrot.slane %v1224_v55, %v4860_v33  ;;  %v5145_v55 = vld [vmem:[#allocation6] sm:$0xf] }
 0x16e   : > { %v5083_v46 = vpop.permute.xlu1 %507 }
 0x172   : > { %v5085_v26 = vpop.permute.xlu1 %556  ;;  %v5115_v60 = vpop.permute.xlu0 %558 }
 0x177   : > { %v5087_v31 = vpop.permute.xlu1 %605  ;;  %v5119_v6 = vpop.permute.xlu0 %607 }
 0x183   : > { %v5123_v0 = vpop.permute.xlu0 %683 }
 0x184   : > { %v5089_v40 = vpop.permute.xlu1 %679 }
 0x187   : > { %v5131_v45 = vpop.permute.xlu0 %733 }
 0x188   : > { %v5091_v62 = vpop.permute.xlu1 %681 }
 0x18b   : > { %v5140_v30 = vpop.permute.xlu0 %782 }
 0x18c   : > { %v5093_v27 = vpop.permute.xlu1 %731 }
 0x18f   : > { %v5147_v24 = vpop.permute.xlu0 %831 }
 0x190   : > { %v5095_v22 = vpop.permute.xlu1 %780 }
 0x194   : > { %v5097_v17 = vpop.permute.xlu1 %829 }
 0x198   : > { %v5099_v3 = vpop.permute.xlu1 %891 }
 0x19c   : > { %v5101_v52 = vpop.permute.xlu1 %893 }
 0x1a0   : > { %v5103_v61 = vpop.permute.xlu1 %943 }
 0x1a4   : > { %v5105_v16 = vpop.permute.xlu1 %992 }
 0x1a8   : > { %v5109_v41 = vpop.permute.xlu1 %1041 }
 0x1ac   : > { %v5113_v7 = vpop.permute.xlu1 %1102 }
 0x1ad   : > { %6653 = vst [vmem:[#allocation17_spill] sm:$0xff] %v5113_v7 }
 0x1b0   : > { %v5117_v10 = vpop.permute.xlu1 %1104 }
 0x1b1   : > { %6654 = vst [vmem:[#allocation18_spill] sm:$0xff] %v5117_v10 }
 0x1b4   : > { %v5121_v19 = vpop.permute.xlu1 %1154 }
 0x1b5   : > { %6655 = vst [vmem:[#allocation19_spill] sm:$0xff] %v5121_v19  ;;  %v1263_v19 = vld [vmem:[#allocation2 + $0x8] sm:$0xf] }
 0x1b8   : > { %v5129_v43 = vpop.permute.xlu1 %1203 }
 0x1b9   : > { %6656 = vst [vmem:[#allocation20_spill] sm:$0xff] %v5129_v43 }
 0x1c5   : > { %v1215_v37 = vpop.permute.xlu1 %1214 }
 0x1c6   : > { %v1245_v35 = vmul.f32 %v1239_v50, %v1215_v37  ;;  %v1244_v32 = vmul.f32 %v1235_v39, %v1215_v37  ;;  %v1246_v28 = vmul.f32 %v1243_v42, %v1215_v37 }
 0x1c8   : > { %1252 = vrot.lane.b32.xlu1 %v1245_v35, %s4543_s24  ;;  %1250 = vrot.lane.b32.xlu0 %v1244_v32, %s4543_s24  ;;  %v5150_v35 = vpop.permute.xlu0 %895  ;;  %v6584_v32 = vmov 21  }
 0x1c9   : > { %4268 = vset.pattern.permute.xlu1 %v6584_v32 }
 0x1cc   : > { %1264 = vrot.lane.b32.xlu1 %v4779_v29, %s4545_s28  ;;  %1254 = vrot.lane.b32.xlu0 %v1246_v28, %s4543_s24  ;;  %v5153_v38 = vpop.permute.xlu0 %945 }
 0x1cd   : > { %6657 = vst [vmem:[#allocation21_spill] sm:$0xff] %v5153_v38 }
 0x1d0   : > { %1276 = vperm.xlu0 %4267, %v5145_v55   ;;  %v5155_v37 = vpop.permute.xlu0 %994 }
 0x1d1   : > { %6658 = vst [vmem:[#allocation22_spill] sm:$0xff] %v5155_v37 }
 0x1d4   : > { %v5157_v39 = vpop.permute.xlu0 %1043 }
 0x1d5   : > { %6659 = vst [vmem:[#allocation23_spill] sm:$0xff] %v5157_v39 }
 0x1d8   : > { %v5159_v11 = vpop.permute.xlu0 %1106 }
 0x1d9   : > { %6660 = vst [vmem:[#allocation24_spill] sm:$0xff] %v5159_v11 }
 0x1dc   : > { %v5161_v28 = vpop.permute.xlu0 %1156 }
 0x1dd   : > { %6661 = vst [vmem:[#allocation25_spill] sm:$0xff] %v5161_v28 }
 0x1e0   : > { %v5163_v50 = vpop.permute.xlu0 %455 }
 0x1e4   : > { %v5165_v42 = vpop.permute.xlu0 %505 }
 0x1e8   : > { %v5167_v25 = vpop.permute.xlu0 %554 }
 0x1ec   : > { %v5169_v63 = vpop.permute.xlu0 %603 }
 0x1f0   : > { %v5171_v21 = vpop.permute.xlu0 %729 }
 0x1f4   : > { %v5173_v32 = vpop.permute.xlu0 %778 }
 0x1f8   : > { %v5175_v23 = vpop.permute.xlu0 %827 }
 0x1fc   : > { %v5177_v18 = vpop.permute.xlu0 %941 }
 0x200   : > { %v5179_v20 = vpop.permute.xlu0 %990 }
 0x204   : > { %v5181_v14 = vpop.permute.xlu0 %1039 }
 0x208   : > { %v5183_v15 = vpop.permute.xlu0 %1152 }
 0x209   : > { %6662 = vst [vmem:[#allocation26_spill] sm:$0xff] %v5183_v15 }
 0x20c   : > { %v5185_v12 = vpop.permute.xlu0 %1201 }
 0x20d   : > { %6663 = vst [vmem:[#allocation27_spill] sm:$0xff] %v5185_v12 }
 0x210   : > { %v5189_v1 = vpop.permute.xlu0 %1205 }
 0x211   : > { %6665 = vst [vmem:[#allocation29_spill] sm:$0xff] %v5189_v1 }
 0x23a   : > { %v5187_v2 = vpop.permute.xlu1 %1252  ;;  %v5191_v28 = vpop.permute.xlu0 %1250 }
 0x23b   : > { %6664 = vst [vmem:[#allocation28_spill] sm:$0xff] %v5187_v2  ;;  %6666 = vst [vmem:[#allocation30_spill] sm:$0xff] %v5191_v28 }
 0x23e   : > { %v1265_v44 = vpop.permute.xlu1 %1264  ;;  %v5200_v2 = vpop.permute.xlu0 %1254 }
 0x23f   : > { %v1266_v43 = vrot.slane %v1265_v44, 4  ;;  %6667 = vst [vmem:[#allocation31_spill] sm:$0xff] %v5200_v2 }
 0x241   : > { %v1268_v11 = vsel %vm1267_vm9, %v1266_v43, %v1265_v44  ;;  %v5195_v10 = vmul.f32 %v1266_v43, %v1263_v19 }
 0x242   : > { %v1271_v7 = vmul.f32 %v1268_v11, %v4818_v54 }
 0x243   : > { %v1292_v15 = vrot.slane %v5195_v10, %v4752_v4 }
 0x244   : > { %v1284_v12 = vrot.slane %v1271_v7, %v4752_v4  ;;  %v1288_v28 = vrot.slane %v1271_v7, %v4825_v58 }
 0x245   : > { %v1307_v1 = vrot.slane %v1292_v15, %v4752_v4  ;;  %v6598_v15 = vmov 22  }
 0x246   : > { %v1299_v39 = vrot.slane %v1284_v12, %v4752_v4  ;;  %v1303_v19 = vrot.slane %v1288_v28, %v4752_v4 }
 0x24b   : > { %v1277_v37 = vpop.permute.xlu0 %1276 }
 0x24c   : > { %v1310_v38 = vmul.f32 %v1307_v1, %v1277_v37  ;;  %v1308_v44 = vmul.f32 %v1299_v39, %v1277_v37  ;;  %v1309_v43 = vmul.f32 %v1303_v19, %v1277_v37  ;;  %v1338_v1 = vrot.slane %v1271_v7, %v4822_v57 }
 0x24d   : > { %v1334_v39 = vrot.slane %v1271_v7, %v4755_v5  ;;  %v1342_v37 = vrot.slane %v5195_v10, %v4755_v5 }
 0x24e   : > { %1318 = vrot.lane.b32.xlu0 %v1310_v38, %s4547_s29  ;;  %1314 = vrot.lane.b32.xlu1 %v1308_v44, %s4547_s29  ;;  %v1353_v38 = vrot.slane %v1338_v1, %v4755_v5  ;;  %v6600_v1 = vmov 23  }
 0x24f   : > { %v1349_v28 = vrot.slane %v1334_v39, %v4755_v5  ;;  %v1387_v39 = vrot.slane %v1271_v7, %v4844_v9 }
 0x252   : > { %1316 = vrot.lane.b32.xlu1 %v1309_v43, %s4547_s29 }
 0x256   : > { %1328 = vperm.xlu1 %4268, %v5145_v55  }
 0x25a   : > { %4269 = vset.pattern.permute.xlu1 %v6598_v15  ;;  %v1357_v15 = vrot.slane %v1342_v37, %v4755_v5 }
 0x2c0   : > { %v5211_v12 = vpop.permute.xlu1 %1314 }
 0x2c1   : > { %6668 = vst [vmem:[#allocation32_spill] sm:$0xff] %v5211_v12 }
 0x2c4   : > { %v5215_v11 = vpop.permute.xlu1 %1316 }
 0x2c5   : > { %6669 = vst [vmem:[#allocation33_spill] sm:$0xff] %v5215_v11  ;;  %v1383_v11 = vrot.slane %v1271_v7, %v4841_v8 }
 0x2d1   : > { %v1329_v44 = vpop.permute.xlu1 %1328 }
 0x2d2   : > { %v1359_v19 = vmul.f32 %v1353_v38, %v1329_v44  ;;  %v1358_v43 = vmul.f32 %v1349_v28, %v1329_v44  ;;  %v1360_v12 = vmul.f32 %v1357_v15, %v1329_v44  ;;  %v1402_v28 = vrot.slane %v1387_v39, %v4841_v8 }
 0x2d3   : > { %v1391_v15 = vrot.slane %v5195_v10, %v4841_v8  ;;  %v6602_v39 = vmov 24  }
 0x2d4   : > { %1366 = vrot.lane.b32.xlu1 %v1359_v19, %s4547_s29  ;;  %1364 = vrot.lane.b32.xlu0 %v1358_v43, %s4547_s29  ;;  %v1398_v19 = vrot.slane %v1383_v11, %v4841_v8  ;;  %v1436_v11 = vrot.slane %v1271_v7, %v4863_v34 }
 0x2d5   : > { %4271 = vset.pattern.permute.xlu0 %v6602_v39 }
 0x2d8   : > { %1377 = vperm.xlu1 %4269, %v5145_v55   ;;  %1368 = vrot.lane.b32.xlu0 %v1360_v12, %s4547_s29  ;;  %v1406_v12 = vrot.slane %v1391_v15, %v4841_v8  ;;  %v1440_v15 = vrot.slane %v5195_v10, %v4860_v33  ;;  %v6603_v10 = vmov 25  }
 0x2dc   : > { %4270 = vset.pattern.permute.xlu1 %v6600_v1 }
 0x346   : > { %v5229_v38 = vpop.permute.xlu1 %1366 }
 0x347   : > { %6670 = vst [vmem:[#allocation34_spill] sm:$0xff] %v5229_v38  ;;  %v1432_v38 = vrot.slane %v1271_v7, %v4860_v33  ;;  %v5255_v7 = vld [vmem:[#allocation6] sm:$0xf] }
 0x353   : > { %v1378_v37 = vpop.permute.xlu1 %1377 }
 0x354   : > { %v1408_v44 = vmul.f32 %v1402_v28, %v1378_v37  ;;  %v1407_v43 = vmul.f32 %v1398_v19, %v1378_v37  ;;  %v1409_v1 = vmul.f32 %v1406_v12, %v1378_v37  ;;  %v1451_v19 = vrot.slane %v1436_v11, %v4860_v33 }
 0x356   : > { %1415 = vrot.lane.b32.xlu1 %v1408_v44, %s4547_s29  ;;  %1413 = vrot.lane.b32.xlu0 %v1407_v43, %s4547_s29  ;;  %v1447_v44 = vrot.slane %v1432_v38, %v4860_v33  ;;  %v5259_v38 = vpop.permute.xlu0 %1318 }
 0x357   : > { %6672 = vst [vmem:[#allocation36_spill] sm:$0xff] %v5259_v38 }
 0x35a   : > { %1426 = vperm.xlu1 %4270, %v5145_v55   ;;  %1417 = vrot.lane.b32.xlu0 %v1409_v1, %s4547_s29  ;;  %v1455_v1 = vrot.slane %v1440_v15, %v4860_v33  ;;  %v5261_v11 = vpop.permute.xlu0 %1364 }
 0x35b   : > { %6673 = vst [vmem:[#allocation37_spill] sm:$0xff] %v5261_v11 }
 0x35e   : > { %4272 = vset.pattern.permute.xlu1 %v6603_v10 }
 0x3c8   : > { %v5243_v28 = vpop.permute.xlu1 %1415 }
 0x3c9   : > { %6671 = vst [vmem:[#allocation35_spill] sm:$0xff] %v5243_v28 }
 0x3d5   : > { %v1427_v37 = vpop.permute.xlu1 %1426 }
 0x3d6   : > { %v1457_v55 = vmul.f32 %v1451_v19, %v1427_v37  ;;  %v1456_v43 = vmul.f32 %v1447_v44, %v1427_v37  ;;  %v1458_v12 = vmul.f32 %v1455_v1, %v1427_v37  ;;  %v5263_v19 = vpop.permute.xlu0 %1368 }
 0x3d7   : > { %6674 = vst [vmem:[#allocation38_spill] sm:$0xff] %v5263_v19 }
 0x3d8   : > { %1464 = vrot.lane.b32.xlu1 %v1457_v55, %s4547_s29  ;;  %1462 = vrot.lane.b32.xlu0 %v1456_v43, %s4547_s29 }
 0x3da   : > { %v5265_v44 = vpop.permute.xlu0 %1413 }
 0x3db   : > { %6675 = vst [vmem:[#allocation39_spill] sm:$0xff] %v5265_v44 }
 0x3dc   : > { %1476 = vrot.lane.b32.xlu1 %v4788_v36, %s4551_s27  ;;  %1466 = vrot.lane.b32.xlu0 %v1458_v12, %s4547_s29  ;;  %v1475_v12 = vld [vmem:[#allocation2 + $0x8] sm:$0xf] }
 0x3de   : > { %v5269_v37 = vpop.permute.xlu0 %1417 }
 0x3df   : > { %6677 = vst [vmem:[#allocation41_spill] sm:$0xff] %v5269_v37 }
 0x3e0   : > { %1488 = vperm.xlu0 %4271, %v5255_v7  }
 0x44a   : > { %v5267_v15 = vpop.permute.xlu1 %1464  ;;  %v5271_v1 = vpop.permute.xlu0 %1462 }
 0x44b   : > { %6676 = vst [vmem:[#allocation40_spill] sm:$0xff] %v5267_v15  ;;  %6678 = vst [vmem:[#allocation42_spill] sm:$0xff] %v5271_v1 }
 0x44e   : > { %v1477_v55 = vpop.permute.xlu1 %1476  ;;  %v5280_v15 = vpop.permute.xlu0 %1466 }
 0x44f   : > { %v1478_v43 = vrot.slane %v1477_v55, 4  ;;  %6679 = vst [vmem:[#allocation43_spill] sm:$0xff] %v5280_v15  ;;  %v6721_v15 = vmov 6  }
 0x451   : > { %v1480_v39 = vsel %vm1479_vm10, %v1478_v43, %v1477_v55  ;;  %v5275_v28 = vmul.f32 %v1478_v43, %v1475_v12  ;;  %v6606_v43 = vmov 26  }
 0x452   : > { %v1483_v10 = vmul.f32 %v1480_v39, %v4818_v54 }
 0x453   : > { %v1504_v19 = vrot.slane %v5275_v28, %v4752_v4 }
 0x454   : > { %v1496_v44 = vrot.slane %v1483_v10, %v4752_v4  ;;  %v1500_v37 = vrot.slane %v1483_v10, %v4825_v58 }
 0x455   : > { %v1519_v11 = vrot.slane %v1504_v19, %v4752_v4 }
 0x456   : > { %v1511_v1 = vrot.slane %v1496_v44, %v4752_v4  ;;  %v1515_v54 = vrot.slane %v1500_v37, %v4752_v4  ;;  %v1546_v44 = vrot.slane %v1483_v10, %v4755_v5 }
 0x45b   : > { %v1489_v38 = vpop.permute.xlu0 %1488 }
 0x45c   : > { %v1522_v2 = vmul.f32 %v1519_v11, %v1489_v38  ;;  %v1520_v55 = vmul.f32 %v1511_v1, %v1489_v38  ;;  %v1521_v39 = vmul.f32 %v1515_v54, %v1489_v38  ;;  %v1550_v11 = vrot.slane %v1483_v10, %v4822_v57 }
 0x45d   : > { %v1561_v1 = vrot.slane %v1546_v44, %v4755_v5  ;;  %v1554_v38 = vrot.slane %v5275_v28, %v4755_v5  ;;  %v1599_v44 = vrot.slane %v1483_v10, %v4844_v9 }
 0x45e   : > { %1530 = vrot.lane.b32.xlu0 %v1522_v2, %s4553_s30  ;;  %1526 = vrot.lane.b32.xlu1 %v1520_v55, %s4553_s30  ;;  %v1565_v2 = vrot.slane %v1550_v11, %v4755_v5  ;;  %v6607_v11 = vmov 27  }
 0x462   : > { %1528 = vrot.lane.b32.xlu1 %v1521_v39, %s4553_s30  ;;  %v1569_v39 = vrot.slane %v1554_v38, %v4755_v5  ;;  %v1603_v38 = vrot.slane %v5275_v28, %v4841_v8 }
 0x466   : > { %1540 = vperm.xlu1 %4272, %v5255_v7  }
 0x46a   : > { %4273 = vset.pattern.permute.xlu1 %v6606_v43 }
 0x4d0   : > { %v5291_v19 = vpop.permute.xlu1 %1526 }
 0x4d1   : > { %6680 = vst [vmem:[#allocation44_spill] sm:$0xff] %v5291_v19  ;;  %v1595_v19 = vrot.slane %v1483_v10, %v4841_v8 }
 0x4d4   : > { %v5295_v37 = vpop.permute.xlu1 %1528 }
 0x4d5   : > { %6681 = vst [vmem:[#allocation45_spill] sm:$0xff] %v5295_v37 }
 0x4e1   : > { %v1541_v12 = vpop.permute.xlu1 %1540 }
 0x4e2   : > { %v1571_v55 = vmul.f32 %v1565_v2, %v1541_v12  ;;  %v1570_v54 = vmul.f32 %v1561_v1, %v1541_v12  ;;  %v1572_v43 = vmul.f32 %v1569_v39, %v1541_v12  ;;  %v1614_v1 = vrot.slane %v1599_v44, %v4841_v8 }
 0x4e3   : > { %v6609_v44 = vmov 28  }
 0x4e4   : > { %1578 = vrot.lane.b32.xlu1 %v1571_v55, %s4553_s30  ;;  %1576 = vrot.lane.b32.xlu0 %v1570_v54, %s4553_s30  ;;  %v1610_v55 = vrot.slane %v1595_v19, %v4841_v8  ;;  %v1644_v19 = vrot.slane %v1483_v10, %v4860_v33 }
 0x4e5   : > { %4275 = vset.pattern.permute.xlu0 %v6609_v44 }
 0x4e8   : > { %1589 = vperm.xlu1 %4273, %v5255_v7   ;;  %1580 = vrot.lane.b32.xlu0 %v1572_v43, %s4553_s30  ;;  %v1618_v43 = vrot.slane %v1603_v38, %v4841_v8 }
 0x4ec   : > { %4274 = vset.pattern.permute.xlu1 %v6607_v11 }
 0x556   : > { %v5309_v2 = vpop.permute.xlu1 %1578 }
 0x557   : > { %6682 = vst [vmem:[#allocation46_spill] sm:$0xff] %v5309_v2  ;;  %v1648_v2 = vrot.slane %v1483_v10, %v4863_v34  ;;  %v6610_v10 = vmov 29  }
 0x559   : > { %v1663_v38 = vrot.slane %v1648_v2, %v4860_v33  ;;  %v5339_v2 = vpop.permute.xlu0 %1530 }
 0x55a   : > { %6684 = vst [vmem:[#allocation48_spill] sm:$0xff] %v5339_v2 }
 0x563   : > { %v1590_v12 = vpop.permute.xlu1 %1589 }
 0x564   : > { %v1620_v54 = vmul.f32 %v1614_v1, %v1590_v12  ;;  %v1619_v39 = vmul.f32 %v1610_v55, %v1590_v12  ;;  %v1621_v11 = vmul.f32 %v1618_v43, %v1590_v12  ;;  %v1652_v55 = vrot.slane %v5275_v28, %v4860_v33  ;;  %v5335_v28 = vld [vmem:[#allocation6] sm:$0xf] }
 0x566   : > { %1627 = vrot.lane.b32.xlu1 %v1620_v54, %s4553_s30  ;;  %1625 = vrot.lane.b32.xlu0 %v1619_v39, %s4553_s30  ;;  %v1659_v54 = vrot.slane %v1644_v19, %v4860_v33  ;;  %v5341_v19 = vpop.permute.xlu0 %1576 }
 0x567   : > { %6685 = vst [vmem:[#allocation49_spill] sm:$0xff] %v5341_v19 }
 0x56a   : > { %1638 = vperm.xlu1 %4274, %v5255_v7   ;;  %1629 = vrot.lane.b32.xlu0 %v1621_v11, %s4553_s30  ;;  %v1667_v11 = vrot.slane %v1652_v55, %v4860_v33  ;;  %v5343_v55 = vpop.permute.xlu0 %1580 }
 0x56b   : > { %6686 = vst [vmem:[#allocation50_spill] sm:$0xff] %v5343_v55 }
 0x56e   : > { %4276 = vset.pattern.permute.xlu1 %v6610_v10 }
 0x5d8   : > { %v5323_v1 = vpop.permute.xlu1 %1627 }
 0x5d9   : > { %6683 = vst [vmem:[#allocation47_spill] sm:$0xff] %v5323_v1 }
 0x5e5   : > { %v1639_v12 = vpop.permute.xlu1 %1638 }
 0x5e6   : > { %v1668_v7 = vmul.f32 %v1659_v54, %v1639_v12  ;;  %v1669_v39 = vmul.f32 %v1663_v38, %v1639_v12  ;;  %v1670_v43 = vmul.f32 %v1667_v11, %v1639_v12  ;;  %v5345_v54 = vpop.permute.xlu0 %1625  ;;  %v5353_v11 = vld [vmem:[#allocation2] sm:$0xff] }
 0x5e7   : > { %6687 = vst [vmem:[#allocation51_spill] sm:$0xff] %v5345_v54 }
 0x5e8   : > { %1676 = vrot.lane.b32.xlu1 %v1669_v39, %s4553_s30  ;;  %1674 = vrot.lane.b32.xlu0 %v1668_v7, %s4553_s30 }
 0x5ec   : > { %1688 = vrot.lane.b32.xlu1 %v4762_v13, %s4557_s5  ;;  %1678 = vrot.lane.b32.xlu0 %v1670_v43, %s4553_s30  ;;  %v5349_v13 = vpop.permute.xlu0 %1629  ;;  %v1687_v43 = vld [vmem:[#allocation2 + $0x8] sm:$0xf] }
 0x5ed   : > { %6689 = vst [vmem:[#allocation53_spill] sm:$0xff] %v5349_v13 }
 0x5f0   : > { %1700 = vperm.xlu0 %4275, %v5335_v28  }
 0x65a   : > { %v5347_v38 = vpop.permute.xlu1 %1676  ;;  %v5351_v39 = vpop.permute.xlu0 %1674 }
 0x65b   : > { %6688 = vst [vmem:[#allocation52_spill] sm:$0xff] %v5347_v38  ;;  %6690 = vst [vmem:[#allocation54_spill] sm:$0xff] %v5351_v39 }
 0x65e   : > { %v1689_v12 = vpop.permute.xlu1 %1688  ;;  %v5362_v13 = vpop.permute.xlu0 %1678 }
 0x65f   : > { %v1690_v7 = vrot.slane %v1689_v12, 4  ;;  %6691 = vst [vmem:[#allocation55_spill] sm:$0xff] %v5362_v13 }
 0x661   : > { %v1692_v44 = vsel %vm1691_vm11, %v1690_v7, %v1689_v12  ;;  %v5357_v1 = vmul.f32 %v1690_v7, %v1687_v43  ;;  %v6614_v43 = vmov 30  }
 0x662   : > { %v1695_v10 = vmul.f32 %v1692_v44, %v5353_v11 }
 0x663   : > { %v1716_v38 = vrot.slane %v5357_v1, %v4752_v4 }
 0x664   : > { %v1708_v54 = vrot.slane %v1695_v10, %v4752_v4  ;;  %v1712_v55 = vrot.slane %v1695_v10, %v4825_v58 }
 0x665   : > { %v1731_v19 = vrot.slane %v1716_v38, %v4752_v4  ;;  %v1758_v38 = vrot.slane %v1695_v10, %v4755_v5 }
 0x666   : > { %v1723_v39 = vrot.slane %v1708_v54, %v4752_v4  ;;  %v1727_v44 = vrot.slane %v1712_v55, %v4752_v4 }
 0x66b   : > { %v1701_v2 = vpop.permute.xlu0 %1700 }
 0x66c   : > { %v1732_v37 = vmul.f32 %v1723_v39, %v1701_v2  ;;  %v1734_v12 = vmul.f32 %v1731_v19, %v1701_v2  ;;  %v1733_v7 = vmul.f32 %v1727_v44, %v1701_v2  ;;  %v1762_v19 = vrot.slane %v1695_v10, %v4822_v57 }
 0x66d   : > { %v1766_v39 = vrot.slane %v5357_v1, %v4755_v5 }
 0x66e   : > { %1742 = vrot.lane.b32.xlu0 %v1734_v12, %s6623_s12  ;;  %1738 = vrot.lane.b32.xlu1 %v1732_v37, %s6623_s12  ;;  %v1773_v37 = vrot.slane %v1758_v38, %v4755_v5  ;;  %v1777_v2 = vrot.slane %v1762_v19, %v4755_v5  ;;  %v1807_v38 = vrot.slane %v1695_v10, %v4841_v8 }
 0x66f   : > { %v1811_v19 = vrot.slane %v1695_v10, %v4844_v9 }
 0x672   : > { %1740 = vrot.lane.b32.xlu1 %v1733_v7, %s6623_s12 }
 0x676   : > { %1752 = vperm.xlu1 %4276, %v5335_v28  }
 0x67a   : > { %4277 = vset.pattern.permute.xlu1 %v6614_v43  ;;  %v1781_v43 = vrot.slane %v1766_v39, %v4755_v5  ;;  %v1815_v39 = vrot.slane %v5357_v1, %v4841_v8 }
 0x6e0   : > { %v5373_v54 = vpop.permute.xlu1 %1738 }
 0x6e1   : > { %6692 = vst [vmem:[#allocation56_spill] sm:$0xff] %v5373_v54 }
 0x6e4   : > { %v5377_v55 = vpop.permute.xlu1 %1740 }
 0x6e5   : > { %6693 = vst [vmem:[#allocation57_spill] sm:$0xff] %v5377_v55  ;;  %v6616_v55 = vmov 31  }
 0x6f1   : > { %v1753_v12 = vpop.permute.xlu1 %1752 }
 0x6f2   : > { %v1782_v44 = vmul.f32 %v1773_v37, %v1753_v12  ;;  %v1783_v7 = vmul.f32 %v1777_v2, %v1753_v12  ;;  %v1784_v54 = vmul.f32 %v1781_v43, %v1753_v12  ;;  %v1822_v2 = vrot.slane %v1807_v38, %v4841_v8 }
 0x6f3   : > { %v1826_v43 = vrot.slane %v1811_v19, %v4841_v8  ;;  %v1856_v38 = vrot.slane %v1695_v10, %v4860_v33  ;;  %v1860_v19 = vrot.slane %v1695_v10, %v4863_v34  ;;  %v6620_v10 = vmov 33  }
 0x6f4   : > { %1790 = vrot.lane.b32.xlu1 %v1783_v7, %s6623_s12  ;;  %1788 = vrot.lane.b32.xlu0 %v1782_v44, %s6623_s12 }
 0x6f8   : > { %1801 = vperm.xlu1 %4277, %v5335_v28   ;;  %1792 = vrot.lane.b32.xlu0 %v1784_v54, %s6623_s12  ;;  %v1830_v54 = vrot.slane %v1815_v39, %v4841_v8  ;;  %v1864_v39 = vrot.slane %v5357_v1, %v4860_v33  ;;  %v1909_v1 = vld [vmem:[#allocation6] sm:$0xf] }
 0x6fc   : > { %4278 = vset.pattern.permute.xlu1 %v6616_v55 }
 0x766   : > { %v5391_v37 = vpop.permute.xlu1 %1790 }
 0x767   : > { %6694 = vst [vmem:[#allocation58_spill] sm:$0xff] %v5391_v37  ;;  %v6619_v37 = vmov 32  }
 0x768   : > { %4279 = vset.pattern.permute.xlu0 %v6619_v37 }
 0x773   : > { %v1802_v12 = vpop.permute.xlu1 %1801 }
 0x774   : > { %v1831_v44 = vmul.f32 %v1822_v2, %v1802_v12  ;;  %v1832_v7 = vmul.f32 %v1826_v43, %v1802_v12  ;;  %v1833_v55 = vmul.f32 %v1830_v54, %v1802_v12  ;;  %v1871_v43 = vrot.slane %v1856_v38, %v4860_v33  ;;  %v5418_v38 = vpop.permute.xlu0 %1742 }
 0x775   : > { %v1875_v12 = vrot.slane %v1860_v19, %v4860_v33  ;;  %6696 = vst [vmem:[#allocation60_spill] sm:$0xff] %v5418_v38 }
 0x776   : > { %1839 = vrot.lane.b32.xlu1 %v1832_v7, %s6623_s12  ;;  %1837 = vrot.lane.b32.xlu0 %v1831_v44, %s6623_s12 }
 0x778   : > { %v5420_v19 = vpop.permute.xlu0 %1788 }
 0x779   : > { %6697 = vst [vmem:[#allocation61_spill] sm:$0xff] %v5420_v19 }
 0x77a   : > { %1850 = vperm.xlu1 %4278, %v5335_v28   ;;  %1841 = vrot.lane.b32.xlu0 %v1833_v55, %s6623_s12  ;;  %v1879_v55 = vrot.slane %v1864_v39, %v4860_v33 }
 0x77c   : > { %v5422_v39 = vpop.permute.xlu0 %1792 }
 0x77d   : > { %6698 = vst [vmem:[#allocation62_spill] sm:$0xff] %v5422_v39 }
 0x77e   : > { %4280 = vset.pattern.permute.xlu1 %v6620_v10 }
 0x7e8   : > { %v5405_v2 = vpop.permute.xlu1 %1839 }
 0x7e9   : > { %6695 = vst [vmem:[#allocation59_spill] sm:$0xff] %v5405_v2 }
 0x7f5   : > { %v1851_v44 = vpop.permute.xlu1 %1850 }
 0x7f6   : > { %v1880_v28 = vmul.f32 %v1871_v43, %v1851_v44  ;;  %v1881_v7 = vmul.f32 %v1875_v12, %v1851_v44  ;;  %v1882_v54 = vmul.f32 %v1879_v55, %v1851_v44  ;;  %v5424_v43 = vpop.permute.xlu0 %1837  ;;  %v1899_v55 = vld [vmem:[#allocation2 + $0x8] sm:$0xf] }
 0x7f7   : > { %6699 = vst [vmem:[#allocation63_spill] sm:$0xff] %v5424_v43 }
 0x7f8   : > { %1888 = vrot.lane.b32.xlu1 %v1881_v7, %s6623_s12  ;;  %1886 = vrot.lane.b32.xlu0 %v1880_v28, %s6623_s12 }
 0x7fa   : > { %v5428_v44 = vpop.permute.xlu0 %1841 }
 0x7fb   : > { %6701 = vst [vmem:[#allocation65_spill] sm:$0xff] %v5428_v44 }
 0x7fc   : > { %1900 = vrot.lane.b32.xlu1 %v4779_v29, %s4563_s11  ;;  %1890 = vrot.lane.b32.xlu0 %v1882_v54, %s6623_s12  ;;  %s4565_s12 = smov 94  }
 0x800   : > { %1912 = vperm.xlu0 %4279, %v1909_v1  }
 0x86a   : > { %v5426_v12 = vpop.permute.xlu1 %1888  ;;  %v5430_v7 = vpop.permute.xlu0 %1886 }
 0x86b   : > { %6700 = vst [vmem:[#allocation64_spill] sm:$0xff] %v5426_v12  ;;  %6702 = vst [vmem:[#allocation66_spill] sm:$0xff] %v5430_v7 }
 0x86e   : > { %v1901_v29 = vpop.permute.xlu1 %1900  ;;  %v5442_v44 = vpop.permute.xlu0 %1890 }
 0x86f   : > { %v1902_v28 = vrot.slane %v1901_v29, 4  ;;  %6703 = vst [vmem:[#allocation67_spill] sm:$0xff] %v5442_v44  ;;  %v6626_v44 = vmov 34  }
 0x870   : > { %4281 = vset.pattern.permute.xlu0 %v6626_v44 }
 0x871   : > { %v1904_v54 = vsel %vm1903_vm12, %v1902_v28, %v1901_v29  ;;  %v5436_v10 = vmul.f32 %v1902_v28, %v1899_v55 }
 0x872   : > { %v5434_v37 = vmul.f32 %v1904_v54, %v5353_v11 }
 0x873   : > { %v1928_v12 = vrot.slane %v5436_v10, %v4752_v4 }
 0x874   : > { %v1920_v43 = vrot.slane %v5434_v37, %v4752_v4  ;;  %v1924_v2 = vrot.slane %v5434_v37, %v4825_v58 }
 0x875   : > { %v1943_v29 = vrot.slane %v1928_v12, %v4752_v4 }
 0x876   : > { %v1935_v7 = vrot.slane %v1920_v43, %v4752_v4  ;;  %v1939_v28 = vrot.slane %v1924_v2, %v4752_v4  ;;  %v6625_v43 = vmov 35   ;;  %v1970_v2 = vrot.slane %v5434_v37, %v4755_v5 }
 0x87b   : > { %v1913_v39 = vpop.permute.xlu0 %1912 }
 0x87c   : > { %v1944_v11 = vmul.f32 %v1935_v7, %v1913_v39  ;;  %v1946_v54 = vmul.f32 %v1943_v29, %v1913_v39  ;;  %v1945_v55 = vmul.f32 %v1939_v28, %v1913_v39  ;;  %v1974_v7 = vrot.slane %v5434_v37, %v4822_v57 }
 0x87d   : > { %v1985_v39 = vrot.slane %v1970_v2, %v4755_v5  ;;  %v6706_v2 = vmov 1  }
 0x87e   : > { %1954 = vrot.lane.b32.xlu0 %v1946_v54, %s4565_s12  ;;  %1950 = vrot.lane.b32.xlu1 %v1944_v11, %s4565_s12  ;;  %v1989_v11 = vrot.slane %v1974_v7, %v4755_v5  ;;  %v6707_v7 = vmov 0  }
 0x882   : > { %1952 = vrot.lane.b32.xlu1 %v1945_v55, %s4565_s12 }
 0x886   : > { %1964 = vperm.xlu1 %4280, %v1909_v1  }
 0x88a   : > { %4282 = vset.pattern.permute.xlu1 %v6625_v43  ;;  %v1978_v43 = vrot.slane %v5436_v10, %v4755_v5 }
 0x88c   : > { %v1993_v44 = vrot.slane %v1978_v43, %v4755_v5 }
 0x8f0   : > { %v5454_v12 = vpop.permute.xlu1 %1950 }
 0x8f1   : > { %6704 = vst [vmem:[#allocation68_spill] sm:$0xff] %v5454_v12 }
 0x8f4   : > { %v5460_v29 = vpop.permute.xlu1 %1952 }
 0x8f5   : > { %6705 = vst [vmem:[#allocation69_spill] sm:$0xff] %v5460_v29 }
 0x901   : > { %v1965_v54 = vpop.permute.xlu1 %1964 }
 0x902   : > { %v1994_v28 = vmul.f32 %v1985_v39, %v1965_v54  ;;  %v1995_v55 = vmul.f32 %v1989_v11, %v1965_v54  ;;  %v1996_v12 = vmul.f32 %v1993_v44, %v1965_v54  ;;  %v5472_v39 = vpop.permute.xlu0 %1954  ;;  %v2019_v11 = vrot.slane %v5434_v37, %v4841_v8 }
 0x903   : > { %6708 = vst [vmem:[#allocation70_spill] sm:$0xff] %v5472_v39 }
 0x904   : > { %2002 = vrot.lane.b32.xlu1 %v1995_v55, %s4565_s12  ;;  %2000 = vrot.lane.b32.xlu0 %v1994_v28, %s4565_s12  ;;  %v2023_v28 = vrot.slane %v5434_v37, %v4844_v9  ;;  %v2034_v44 = vrot.slane %v2019_v11, %v4841_v8 }
 0x906   : > { %v2038_v54 = vrot.slane %v2023_v28, %v4841_v8 }
 0x908   : > { %2062 = vperm.xlu1 %4282, %v1909_v1   ;;  %2013 = vperm.xlu0 %4281, %v1909_v1   ;;  %v2027_v1 = vrot.slane %v5436_v10, %v4841_v8 }
 0x90a   : > { %v2042_v19 = vrot.slane %v2027_v1, %v4841_v8 }
 0x90c   : > { %2004 = vrot.lane.b32.xlu1 %v1996_v12, %s4565_s12  ;;  %4284 = vset.pattern.permute.xlu0 %v6706_v2  ;;  %v2068_v12 = vrot.slane %v5434_v37, %v4860_v33 }
 0x90d   : > { %4283 = vset.pattern.permute.xlu1 %v6707_v7 }
 0x90e   : > { %v2083_v11 = vrot.slane %v2068_v12, %v4860_v33 }
 0x976   : > { %v5476_v29 = vpop.permute.xlu0 %2000  ;;  %v5480_v43 = vpop.permute.xlu1 %2002 }
 0x977   : > { %6709 = vst [vmem:[#allocation71_spill] sm:$0xff] %v5476_v29  ;;  %6710 = vst [vmem:[#allocation72_spill] sm:$0xff] %v5480_v43  ;;  %v2072_v29 = vrot.slane %v5434_v37, %v4863_v34  ;;  %v2076_v43 = vrot.slane %v5436_v10, %v4860_v33  ;;  %v2147_v10 = vld [vmem:[#allocation8] sm:$0xf] }
 0x979   : > { %v2091_v37 = vrot.slane %v2076_v43, %v4860_v33  ;;  %v5510_v43 = vld [vmem:[#allocation8] sm:$0xf] }
 0x983   : > { %v2014_v55 = vpop.permute.xlu0 %2013  ;;  %v2063_v39 = vpop.permute.xlu1 %2062 }
 0x984   : > { %v2043_v2 = vmul.f32 %v2034_v44, %v2014_v55  ;;  %v2044_v7 = vmul.f32 %v2038_v54, %v2014_v55  ;;  %v2045_v38 = vmul.f32 %v2042_v19, %v2014_v55  ;;  %v2092_v28 = vmul.f32 %v2083_v11, %v2063_v39 }
 0x985   : > { %v2087_v44 = vrot.slane %v2072_v29, %v4860_v33  ;;  %v2094_v54 = vmul.f32 %v2091_v37, %v2063_v39  ;;  %v6714_v55 = vmov 3   ;;  %v2275_v37 = vld [vmem:[#allocation8] sm:$0xf] }
 0x986   : > { %2049 = vrot.lane.b32.xlu0 %v2043_v2, %s4565_s12  ;;  %2051 = vrot.lane.b32.xlu1 %v2044_v7, %s4565_s12  ;;  %v2256_v2 = vld [vmem:[#allocation9 + $0x1] ss:$4 sm:$0x3] }
 0x987   : > { %v2093_v1 = vmul.f32 %v2087_v44, %v2063_v39  ;;  %v2261_v12 = vrot.slane %v2256_v2, %v4752_v4  ;;  %v2265_v19 = vrot.slane %v2256_v2, %v4755_v5  ;;  %v6713_v39 = vmov 8   ;;  %v4328_v7 = vld [vmem:[#allocation2] sm:$0xff] }
 0x988   : > { %v283_v11 = vmul.f32 %v4328_v7, %v4788_v36  ;;  %v6715_v44 = vmov 12   ;;  %v5524_v36 = vld [vmem:[#allocation8] sm:$0xf]  ;;  %v6719_v7 = vmov 5  }
 0x989   : > { %v5504_v29 = vcombine.low %v2261_v12, %v2265_v19  ;;  %6717 = vst [vmem:[#allocation74_spill] sm:$0xff] %v5524_v36 }
 0x98a   : > { %2053 = vrot.lane.b32.xlu0 %v2045_v38, %s4565_s12  ;;  %2098 = vrot.lane.b32.xlu1 %v2092_v28, %s4565_s12  ;;  %v6712_v38 = vmov 2   ;;  %v5515_v28 = vld [vmem:[#allocation8] sm:$0xf]  ;;  %v320_v2 = vrot.slane %v283_v11, %v4755_v5  ;;  %v294_v12 = vrot.slane %v283_v11, %v4752_v4 }
 0x98b   : > { %6711 = vst [vmem:[#allocation73_spill] sm:$0xff] %v5504_v29 }
 0x98e   : > { %2100 = vrot.lane.b32.xlu0 %v2093_v1, %s4565_s12  ;;  %2102 = vrot.lane.b32.xlu1 %v2094_v54, %s4565_s12  ;;  %v2477_v1 = vld [vmem:[#allocation9 + $0x2] ss:$4 sm:$0x3]  ;;  %v6716_v54 = vmov 4  }
 0x98f   : > { %v2486_v19 = vrot.slane %v2477_v1, %v4755_v5 }
 0x992   : > { %2177 = vperm.xlu0 %4284, %v2147_v10   ;;  %2150 = vperm.xlu1 %4283, %v2147_v10  }
 0x996   : > { %2267 = vrot.lane.b32.xlu0 %v5504_v29, %s4520_s23  ;;  %4285 = vset.pattern.permute.xlu1 %v6712_v38  ;;  %v6718_v38 = vmov 16   ;;  %v6722_v29 = vmov 7  }
 0x997   : > { %4291 = vset.pattern.permute.xlu0 %v6713_v39  ;;  %2203 = vperm.xlu1 %4285, %v2147_v10   ;;  %v330_v39 = vrot.slane %v320_v2, %v4755_v5 }
 0x99a   : > { %2499 = vperm.xlu0 %4291, %v5510_v43  }
 0x99b   : > { %4286 = vset.pattern.permute.xlu1 %v6714_v55  ;;  %v304_v55 = vrot.slane %v294_v12, %v4752_v4  ;;  %v372_v12 = vrot.slane %v283_v11, %v4860_v33 }
 0x99c   : > { %2229 = vperm.xlu1 %4286, %v2147_v10   ;;  %v2482_v10 = vrot.slane %v2477_v1, %v4752_v4  ;;  %v6720_v1 = vmov 20  }
 0x99d   : > { %v309_v13 = vmul.f32 %v304_v55, %v4812_v48 }
 0x99e   : > { %4295 = vset.pattern.permute.xlu0 %v6715_v44  ;;  %v5531_v44 = vcombine.low %v2482_v10, %v2486_v19  ;;  %v324_v19 = vrot.slane %v283_v11, %v4822_v57 }
 0x99f   : > { %2709 = vperm.xlu0 %4295, %v5515_v28  }
 0x9a0   : > { %4287 = vset.pattern.permute.xlu1 %v6716_v54  ;;  %v346_v54 = vrot.slane %v283_v11, %v4841_v8 }
 0x9a1   : > { %2278 = vperm.xlu1 %4287, %v2275_v37  }
 0x9a2   : > { %v356_v2 = vrot.slane %v346_v54, %v4841_v8 }
 0x9a3   : > { %4299 = vset.pattern.permute.xlu0 %v6718_v38  ;;  %v335_v38 = vmul.f32 %v330_v39, %v4810_v47 }
 0x9a4   : > { %2919 = vperm.xlu0 %4299, %v5524_v36   ;;  %v361_v36 = vmul.f32 %v356_v2, %v4814_v49 }
 0x9a5   : > { %4288 = vset.pattern.permute.xlu1 %v6719_v7  ;;  %v337_v10 = vadd.f32 %v335_v38, %v309_v13  ;;  %v298_v7 = vrot.slane %v283_v11, %v4825_v58  ;;  %v350_v13 = vrot.slane %v283_v11, %v4844_v9  ;;  %v462_v38 = vsel %vm461_vm13, %v5163_v50, %v5081_v59 }
 0x9a6   : > { %2329 = vperm.xlu1 %4288, %v2275_v37   ;;  %v560_v50 = vsel %vm461_vm13, %v5167_v25, %v5085_v26 }
 0x9a7   : > { %v363_v39 = vadd.f32 %v361_v36, %v337_v10  ;;  %v308_v55 = vrot.slane %v298_v7, %v4752_v4  ;;  %v376_v7 = vrot.slane %v283_v11, %v4863_v34 }
 0x9a8   : > { %3118 = vrot.lane.b32.xlu0 %v5531_v44, %s4545_s28 }
 0x9a9   : > { %4303 = vset.pattern.permute.xlu0 %v6720_v1  ;;  %v382_v1 = vrot.slane %v372_v12, %v4860_v33  ;;  %v310_v36 = vmul.f32 %v308_v55, %v4812_v48  ;;  %v511_v12 = vsel %vm461_vm13, %v5165_v42, %v5083_v46  ;;  %v386_v55 = vrot.slane %v376_v7, %v4860_v33 }
 0x9aa   : > { %4289 = vset.pattern.permute.xlu1 %v6721_v15  ;;  %v334_v15 = vrot.slane %v324_v19, %v4755_v5  ;;  %v360_v19 = vrot.slane %v350_v13, %v4841_v8 }
 0x9ab   : > { %2378 = vperm.xlu1 %4289, %v2275_v37   ;;  %v387_v54 = vmul.f32 %v382_v1, %v4816_v53 }
 0x9ac   : > { %v362_v42 = vmul.f32 %v360_v19, %v4814_v49  ;;  %v463_v49 = vsel %vm461_vm13, %v5081_v59, %v5107_v51  ;;  %v784_v59 = vsel %vm685_vm14, %v5173_v32, %v5095_v22  ;;  %v561_v51 = vsel %vm461_vm13, %v5085_v26, %v5115_v60 }
 0x9ad   : > { %v389_v2 = vadd.f32 %v387_v54, %v363_v39  ;;  %v6724_v54 = vmov 10   ;;  %v687_v26 = vsel %vm685_vm14, %v5091_v62, %v5123_v0  ;;  %v947_v0 = vsel %vm897_vm15, %v5177_v18, %v5103_v61 }
 0x9ae   : > { %v1045_v18 = vsel %vm897_vm15, %v5181_v14, %v5109_v41 }
 0x9af   : > { %4290 = vset.pattern.permute.xlu1 %v6722_v29  ;;  %v6723_v29 = vmov 9   ;;  %v466_v10 = vadd.f32 %v462_v38, %v389_v2  ;;  %v388_v2 = vmul.f32 %v386_v55, %v4816_v53  ;;  %v512_v53 = vsel %vm461_vm13, %v5083_v46, %v5111_v56 }
 0x9b0   : > { %2427 = vperm.xlu1 %4290, %v2275_v37   ;;  %v336_v37 = vmul.f32 %v334_v15, %v4810_v47  ;;  %v609_v47 = vsel %vm461_vm13, %v5169_v63, %v5087_v31  ;;  %v2134_v15 = vld [vmem:[#allocation9] ss:$4 sm:$0x3]  ;;  %v686_v63 = vsel %vm685_vm14, %v5089_v40, %v5091_v62  ;;  %v610_v46 = vsel %vm461_vm13, %v5087_v31, %v5119_v6 }
 0x9b1   : > { %v515_v1 = vadd.f32 %v511_v12, %v466_v10  ;;  %v2139_v13 = vrot.slane %v2134_v15, %v4752_v4  ;;  %v2143_v38 = vrot.slane %v2134_v15, %v4755_v5  ;;  %v735_v12 = vsel %vm685_vm14, %v5171_v21, %v5093_v27  ;;  %v6728_v15 = vld [vmem:[#allocation21_spill] sm:$0xff] }
 0x9b2   : > { %v338_v39 = vadd.f32 %v336_v37, %v310_v36  ;;  %v6725_v37 = vmov 11   ;;  %v833_v21 = vsel %vm685_vm14, %v5175_v23, %v5097_v17  ;;  %v736_v23 = vsel %vm685_vm14, %v5093_v27, %v5131_v45 }
 0x9b3   : > { %v564_v48 = vadd.f32 %v560_v50, %v515_v1  ;;  %v5589_v10 = vcombine.low %v2139_v13, %v2143_v38  ;;  %v898_v31 = vsel %vm897_vm15, %v5099_v3, %v5101_v52  ;;  %v785_v6 = vsel %vm685_vm14, %v5095_v22, %v5140_v30  ;;  %v6732_v13 = vld [vmem:[#allocation18_spill] sm:$0xff] }
 0x9b4   : > { %2488 = vrot.lane.b32.xlu1 %v5531_v44, %s4529_s6  ;;  %v364_v25 = vadd.f32 %v362_v42, %v338_v39  ;;  %v834_v27 = vsel %vm685_vm14, %v5097_v17, %v5147_v24  ;;  %v996_v3 = vsel %vm897_vm15, %v5179_v20, %v5105_v16  ;;  %v899_v30 = vsel %vm897_vm15, %v5101_v52, %v5150_v35  ;;  %v6730_v20 = vld [vmem:[#allocation22_spill] sm:$0xff] }
 0x9b5   : > { %4292 = vset.pattern.permute.xlu1 %v6723_v29  ;;  %v613_v11 = vadd.f32 %v609_v47, %v564_v48  ;;  %v6727_v47 = vmov 14   ;;  %v948_v17 = vsel %vm897_vm15, %v5103_v61, %v6728_v15  ;;  %v6729_v42 = vmov 15   ;;  %v6733_v61 = vld [vmem:[#allocation17_spill] sm:$0xff]  ;;  %v6753_v15 = vld [vmem:[#allocation38_spill] sm:$0xff] }
 0x9b6   : > { %v390_v36 = vadd.f32 %v388_v2, %v364_v25  ;;  %v997_v52 = vsel %vm897_vm15, %v5105_v16, %v6730_v20  ;;  %v1109_v38 = vsel %vm1108_vm0, %v6733_v61, %v6732_v13  ;;  %v6734_v2 = vld [vmem:[#allocation73_spill] sm:$0xff] }
 0x9b7   : > { %v690_v29 = vadd.f32 %v686_v63, %v613_v11  ;;  %v6731_v11 = vld [vmem:[#allocation23_spill] sm:$0xff] }
 0x9b8   : > { %2550 = vperm.xlu1 %4292, %v5510_v43   ;;  %v467_v40 = vadd.f32 %v463_v49, %v390_v36  ;;  %v1046_v14 = vsel %vm897_vm15, %v5109_v41, %v6731_v11  ;;  %v6736_v49 = vmov 17   ;;  %v6738_v36 = vld [vmem:[#allocation26_spill] sm:$0xff]  ;;  %v6757_v11 = vmov 19  }
 0x9b9   : > { %v739_v19 = vadd.f32 %v735_v12, %v690_v29  ;;  %v6739_v12 = vld [vmem:[#allocation25_spill] sm:$0xff] }
 0x9ba   : > { %v516_v7 = vadd.f32 %v512_v53, %v467_v40 }
 0x9bb   : > { %v788_v56 = vadd.f32 %v784_v59, %v739_v19  ;;  %v6740_v59 = vld [vmem:[#allocation20_spill] sm:$0xff] }
 0x9bc   : > { %4293 = vset.pattern.permute.xlu1 %v6724_v54  ;;  %v565_v32 = vadd.f32 %v561_v51, %v516_v7  ;;  %v6741_v51 = vld [vmem:[#allocation27_spill] sm:$0xff]  ;;  %v6742_v7 = vld [vmem:[#allocation74_spill] sm:$0xff] }
 0x9bd   : > { %2599 = vperm.xlu1 %4293, %v5510_v43   ;;  %v837_v60 = vadd.f32 %v833_v21, %v788_v56  ;;  %v1207_v19 = vsel %vm1108_vm0, %v6741_v51, %v6740_v59  ;;  %v6765_v51 = vld [vmem:[#allocation49_spill] sm:$0xff] }
 0x9be   : > { %v614_v50 = vadd.f32 %v610_v46, %v565_v32  ;;  %v6743_v46 = vld [vmem:[#allocation29_spill] sm:$0xff]  ;;  %v6744_v32 = vld [vmem:[#allocation28_spill] sm:$0xff] }
 0x9bf   : > { %v902_v39 = vadd.f32 %v898_v31, %v837_v60  ;;  %v1208_v56 = vsel %vm1108_vm0, %v6740_v59, %v6743_v46  ;;  %v6764_v59 = vld [vmem:[#allocation46_spill] sm:$0xff] }
 0x9c0   : > { %v691_v1 = vadd.f32 %v687_v26, %v614_v50  ;;  %v6745_v26 = vld [vmem:[#allocation30_spill] sm:$0xff] }
 0x9c1   : > { %4294 = vset.pattern.permute.xlu1 %v6725_v37  ;;  %v951_v22 = vadd.f32 %v947_v0, %v902_v39  ;;  %v6737_v37 = vld [vmem:[#allocation19_spill] sm:$0xff]  ;;  %v1256_v60 = vsel %vm1108_vm0, %v6745_v26, %v6744_v32  ;;  %v6748_v39 = vld [vmem:[#allocation32_spill] sm:$0xff]  ;;  %v6749_v0 = vmov 18   ;;  %v6767_v46 = vld [vmem:[#allocation50_spill] sm:$0xff] }
 0x9c2   : > { %2648 = vperm.xlu1 %4294, %v5510_v43   ;;  %v6726_v43 = vmov 13   ;;  %v740_v62 = vadd.f32 %v736_v23, %v691_v1  ;;  %v1158_v41 = vsel %vm1108_vm0, %v6738_v36, %v6737_v37  ;;  %v1159_v53 = vsel %vm1108_vm0, %v6737_v37, %v6739_v12  ;;  %v6746_v23 = vld [vmem:[#allocation31_spill] sm:$0xff]  ;;  %v5709_v36 = vld [vmem:[#allocation8] sm:$0xf] }
 0x9c3   : > { %v1000_v24 = vadd.f32 %v996_v3, %v951_v22  ;;  %v1257_v1 = vsel %vm1108_vm0, %v6744_v32, %v6746_v23  ;;  %v6752_v22 = vld [vmem:[#allocation37_spill] sm:$0xff]  ;;  %v6763_v12 = vld [vmem:[#allocation48_spill] sm:$0xff]  ;;  %v6768_v32 = vld [vmem:[#allocation47_spill] sm:$0xff] }
 0x9c4   : > { %v789_v45 = vadd.f32 %v785_v6, %v740_v62  ;;  %v6747_v6 = vld [vmem:[#allocation33_spill] sm:$0xff]  ;;  %v6769_v26 = vld [vmem:[#allocation51_spill] sm:$0xff] }
 0x9c5   : > { %v1049_v35 = vadd.f32 %v1045_v18, %v1000_v24  ;;  %v1321_v62 = vsel %vm6633_vm1, %v6748_v39, %v6747_v6  ;;  %v6770_v23 = vld [vmem:[#allocation53_spill] sm:$0xff]  ;;  %v6772_v39 = vld [vmem:[#allocation54_spill] sm:$0xff] }
 0x9c6   : > { %2698 = vrot.lane.b32.xlu1 %v5589_v10, %s4533_s8  ;;  %v838_v48 = vadd.f32 %v834_v27, %v789_v45  ;;  %v6750_v27 = vld [vmem:[#allocation36_spill] sm:$0xff] }
 0x9c7   : > { %4296 = vset.pattern.permute.xlu1 %v6726_v43  ;;  %v1113_v16 = vadd.f32 %v1109_v38, %v1049_v35  ;;  %v1322_v45 = vsel %vm6633_vm1, %v6747_v6, %v6750_v27  ;;  %v6756_v35 = vld [vmem:[#allocation41_spill] sm:$0xff]  ;;  %v6771_v6 = vld [vmem:[#allocation52_spill] sm:$0xff] }
 0x9c8   : > { %v903_v55 = vadd.f32 %v899_v30, %v838_v48  ;;  %v6751_v30 = vld [vmem:[#allocation34_spill] sm:$0xff] }
 0x9c9   : > { %v1162_v21 = vadd.f32 %v1158_v41, %v1113_v16  ;;  %v1370_v48 = vsel %vm6633_vm1, %v6752_v22, %v6751_v30  ;;  %v6776_v22 = vld [vmem:[#allocation56_spill] sm:$0xff] }
 0x9ca   : > { %2760 = vperm.xlu1 %4296, %v5515_v28   ;;  %v952_v54 = vadd.f32 %v948_v17, %v903_v55  ;;  %v1371_v17 = vsel %vm6633_vm1, %v6751_v30, %v6753_v15  ;;  %v6755_v55 = vld [vmem:[#allocation39_spill] sm:$0xff]  ;;  %v6775_v30 = vld [vmem:[#allocation57_spill] sm:$0xff]  ;;  %v6777_v15 = vld [vmem:[#allocation60_spill] sm:$0xff] }
 0x9cb   : > { %v1211_v50 = vadd.f32 %v1207_v19, %v1162_v21  ;;  %v1582_v19 = vsel %vm6634_vm2, %v6765_v51, %v6764_v59  ;;  %v3336_v51 = vld [vmem:[#allocation8] sm:$0xf] }
 0x9cc   : > { %v1001_v25 = vadd.f32 %v997_v52, %v952_v54 }
 0x9ce   : > { %4297 = vset.pattern.permute.xlu1 %v6727_v47  ;;  %v1050_v29 = vadd.f32 %v1046_v14, %v1001_v25  ;;  %v1260_v47 = vadd.f32 %v1256_v60, %v1211_v50  ;;  %v6758_v25 = vld [vmem:[#allocation40_spill] sm:$0xff]  ;;  %v1631_v60 = vsel %vm6634_vm2, %v6769_v26, %v6768_v32 }
 0x9cf   : > { %2809 = vperm.xlu1 %4297, %v5515_v28  }
 0x9d0   : > { %v1325_v18 = vadd.f32 %v1321_v62, %v1260_v47  ;;  %v1680_v62 = vsel %vm6634_vm2, %v6772_v39, %v6771_v6  ;;  %v6773_v47 = vld [vmem:[#allocation55_spill] sm:$0xff] }
 0x9d1   : > { %v1681_v27 = vsel %vm6634_vm2, %v6771_v6, %v6773_v47 }
 0x9d2   : > { %v1374_v52 = vadd.f32 %v1370_v48, %v1325_v18 }
 0x9d3   : > { %4298 = vset.pattern.permute.xlu1 %v6729_v42  ;;  %v6754_v42 = vld [vmem:[#allocation35_spill] sm:$0xff] }
 0x9d4   : > { %2858 = vperm.xlu1 %4298, %v5515_v28   ;;  %v6735_v28 = vld [vmem:[#allocation24_spill] sm:$0xff]  ;;  %v1419_v20 = vsel %vm6633_vm1, %v6755_v55, %v6754_v42  ;;  %v1420_v54 = vsel %vm6633_vm1, %v6754_v42, %v6756_v35  ;;  %v6778_v42 = vld [vmem:[#allocation58_spill] sm:$0xff]  ;;  %v6779_v55 = vld [vmem:[#allocation61_spill] sm:$0xff] }
 0x9d5   : > { %v1110_v63 = vsel %vm1108_vm0, %v6732_v13, %v6735_v28  ;;  %v6759_v13 = vld [vmem:[#allocation42_spill] sm:$0xff]  ;;  %v1423_v38 = vadd.f32 %v1419_v20, %v1374_v52  ;;  %v6760_v28 = vld [vmem:[#allocation43_spill] sm:$0xff] }
 0x9d6   : > { %v1114_v40 = vadd.f32 %v1110_v63, %v1050_v29  ;;  %v1468_v61 = vsel %vm6633_vm1, %v6759_v13, %v6758_v25  ;;  %v1469_v63 = vsel %vm6633_vm1, %v6758_v25, %v6760_v28  ;;  %v6762_v29 = vld [vmem:[#allocation44_spill] sm:$0xff]  ;;  %vm6636_vm1 = vcmask 777216   ;;  %v6780_v35 = vld [vmem:[#allocation62_spill] sm:$0xff]  ;;  %v6782_v25 = vld [vmem:[#allocation63_spill] sm:$0xff] }
 0x9d7   : > { %v1472_v41 = vadd.f32 %v1468_v61, %v1423_v38  ;;  %v1745_v48 = vsel %vm6636_vm1, %v6776_v22, %v6775_v30  ;;  %v1794_v20 = vsel %vm6636_vm1, %v6779_v55, %v6778_v42  ;;  %v2005_v61 = vpop.permute.xlu1 %2004  ;;  %v6783_v38 = vmov 23  }
 0x9d8   : > { %2908 = vrot.lane.b32.xlu1 %v6734_v2, %s4518_s21  ;;  %v1163_v43 = vadd.f32 %v1159_v53, %v1114_v40  ;;  %v6794_v22 = vmov 26  }
 0x9d9   : > { %4300 = vset.pattern.permute.xlu1 %v6736_v49  ;;  %v6761_v49 = vld [vmem:[#allocation45_spill] sm:$0xff] }
 0x9da   : > { %v1212_v31 = vadd.f32 %v1208_v56, %v1163_v43  ;;  %v1533_v37 = vsel %vm6634_vm2, %v6762_v29, %v6761_v49  ;;  %v1534_v53 = vsel %vm6634_vm2, %v6761_v49, %v6763_v12  ;;  %v1583_v56 = vsel %vm6634_vm2, %v6764_v59, %v6767_v46  ;;  %v6785_v29 = vld [vmem:[#allocation64_spill] sm:$0xff] }
 0x9db   : > { %v1537_v21 = vadd.f32 %v1533_v37, %v1472_v41  ;;  %v6786_v37 = vld [vmem:[#allocation66_spill] sm:$0xff] }
 0x9dc   : > { %2970 = vperm.xlu1 %4300, %v6742_v7   ;;  %v1261_v3 = vadd.f32 %v1257_v1, %v1212_v31  ;;  %v1632_v1 = vsel %vm6634_vm2, %v6768_v32, %v6770_v23  ;;  %vm6635_vm2 = vcmask 769024   ;;  %v1892_v41 = vsel %vm6636_vm1, %v6786_v37, %v6785_v29  ;;  %v6790_v32 = vld [vmem:[#allocation70_spill] sm:$0xff]  ;;  %v6792_v23 = vld [vmem:[#allocation72_spill] sm:$0xff] }
 0x9dd   : > { %v1586_v50 = vadd.f32 %v1582_v19, %v1537_v21  ;;  %v6789_v21 = vld [vmem:[#allocation68_spill] sm:$0xff]  ;;  %v2007_v39 = vsel %vm6635_vm2, %v6792_v23, %v2005_v61  ;;  %v6797_v61 = vmov 30   ;;  %v6799_v37 = vmov 33  }
 0x9de   : > { %v1326_v24 = vadd.f32 %v1322_v45, %v1261_v3  ;;  %v6774_v45 = vmov 22  }
 0x9e0   : > { %4301 = vset.pattern.permute.xlu1 %v6749_v0  ;;  %v1375_v14 = vadd.f32 %v1371_v17, %v1326_v24  ;;  %v1635_v0 = vadd.f32 %v1631_v60, %v1586_v50  ;;  %v1746_v17 = vsel %vm6636_vm1, %v6775_v30, %v6777_v15  ;;  %v6791_v60 = vmov 25  }
 0x9e1   : > { %3019 = vperm.xlu1 %4301, %v6742_v7  }
 0x9e2   : > { %v1424_v16 = vadd.f32 %v1420_v54, %v1375_v14  ;;  %v1684_v18 = vadd.f32 %v1680_v62, %v1635_v0  ;;  %v1795_v54 = vsel %vm6636_vm1, %v6778_v42, %v6780_v35  ;;  %v6781_v14 = vld [vmem:[#allocation59_spill] sm:$0xff]  ;;  %v6795_v35 = vmov 27  }
 0x9e3   : > { %v1843_v13 = vsel %vm6636_vm1, %v6782_v25, %v6781_v14  ;;  %v3546_v25 = vld [vmem:[#allocation8] sm:$0xf] }
 0x9e4   : > { %v1473_v40 = vadd.f32 %v1469_v63, %v1424_v16  ;;  %v1749_v52 = vadd.f32 %v1745_v48, %v1684_v18  ;;  %v6784_v63 = vld [vmem:[#allocation65_spill] sm:$0xff] }
 0x9e5   : > { %4302 = vset.pattern.permute.xlu1 %v6757_v11  ;;  %v1844_v16 = vsel %vm6636_vm1, %v6781_v14, %v6784_v63 }
 0x9e6   : > { %3068 = vperm.xlu1 %4302, %v6742_v7   ;;  %v6766_v7 = vmov 21   ;;  %v1538_v43 = vadd.f32 %v1534_v53, %v1473_v40  ;;  %v1798_v28 = vadd.f32 %v1794_v20, %v1749_v52  ;;  %v6787_v53 = vld [vmem:[#allocation67_spill] sm:$0xff] }
 0x9e7   : > { %v1893_v40 = vsel %vm6636_vm1, %v6785_v29, %v6787_v53  ;;  %v6800_v53 = vmov 24  }
 0x9e8   : > { %v1587_v31 = vadd.f32 %v1583_v56, %v1538_v43  ;;  %v1847_v12 = vadd.f32 %v1843_v13, %v1798_v28  ;;  %v6796_v13 = vmov 29  }
 0x9ea   : > { %4304 = vset.pattern.permute.xlu1 %v6766_v7  ;;  %v1636_v3 = vadd.f32 %v1632_v1, %v1587_v31  ;;  %v6788_v7 = vld [vmem:[#allocation69_spill] sm:$0xff]  ;;  %v1896_v43 = vadd.f32 %v1892_v41, %v1847_v12  ;;  %v6793_v1 = vld [vmem:[#allocation71_spill] sm:$0xff] }
 0x9eb   : > { %3180 = vperm.xlu1 %4304, %v5709_v36   ;;  %v1957_v46 = vsel %vm6635_vm2, %v6789_v21, %v6788_v7  ;;  %v1958_v26 = vsel %vm6635_vm2, %v6788_v7, %v6790_v32  ;;  %v2006_v31 = vsel %vm6635_vm2, %v6793_v1, %v6792_v23 }
 0x9ec   : > { %v1685_v24 = vadd.f32 %v1681_v27, %v1636_v3  ;;  %v1961_v6 = vadd.f32 %v1957_v46, %v1896_v43 }
 0x9ee   : > { %v1750_v11 = vadd.f32 %v1746_v17, %v1685_v24 }
 0x9ef   : > { %4305 = vset.pattern.permute.xlu1 %v6774_v45  ;;  %v2010_v45 = vadd.f32 %v2006_v31, %v1961_v6 }
 0x9f0   : > { %3229 = vperm.xlu1 %4305, %v5709_v36   ;;  %v1799_v49 = vadd.f32 %v1795_v54, %v1750_v11 }
 0x9f2   : > { %v1848_v19 = vadd.f32 %v1844_v16, %v1799_v49 }
 0x9f4   : > { %4306 = vset.pattern.permute.xlu1 %v6783_v38  ;;  %v1897_v50 = vadd.f32 %v1893_v40, %v1848_v19  ;;  %v6798_v38 = vmov 31   ;;  %v6801_v40 = vmov 28  }
 0x9f5   : > { %3278 = vperm.xlu1 %4306, %v5709_v36  }
 0x9f6   : > { %v1962_v0 = vadd.f32 %v1958_v26, %v1897_v50 }
 0x9f8   : > { %v2050_v59 = vpop.permute.xlu0 %2049  ;;  %v2052_v56 = vpop.permute.xlu1 %2051  ;;  %v2011_v30 = vadd.f32 %v2007_v39, %v1962_v0 }
 0x9f9   : > { %4308 = vset.pattern.permute.xlu1 %v6791_v60  ;;  %v2055_v47 = vsel %vm6635_vm2, %v2050_v59, %v2052_v56  ;;  %v6802_v59 = vmov 32  }
 0x9fa   : > { %3390 = vperm.xlu1 %4308, %v3336_v51   ;;  %v2059_v48 = vadd.f32 %v2055_v47, %v2010_v45 }
 0x9fc   : > { %v2054_v62 = vpop.permute.xlu0 %2053  ;;  %v2099_v27 = vpop.permute.xlu1 %2098 }
 0x9fd   : > { %v2056_v3 = vsel %vm6635_vm2, %v2052_v56, %v2054_v62 }
 0x9fe   : > { %4309 = vset.pattern.permute.xlu1 %v6794_v22  ;;  %v2060_v15 = vadd.f32 %v2056_v3, %v2011_v30 }
 0x9ff   : > { %3439 = vperm.xlu1 %4309, %v3336_v51  }
 0xa00   : > { %v2101_v18 = vpop.permute.xlu0 %2100  ;;  %v2103_v17 = vpop.permute.xlu1 %2102 }
 0xa01   : > { %v2104_v24 = vsel %vm6635_vm2, %v2099_v27, %v2101_v18  ;;  %v2105_v42 = vsel %vm6635_vm2, %v2101_v18, %v2103_v17 }
 0xa02   : > { %v2108_v55 = vadd.f32 %v2104_v24, %v2059_v48  ;;  %v2109_v20 = vadd.f32 %v2105_v42, %v2060_v15 }
 0xa03   : > { %4310 = vset.pattern.permute.xlu1 %v6795_v35 }
 0xa04   : > { %v2112_v52 = vmin.f32 %v2108_v55, 0.0  ;;  %v2113_v54 = vmin.f32 %v2109_v20, 0.0  ;;  %3488 = vperm.xlu1 %4310, %v3336_v51   ;;  %vm2110_vm2 = vcmp.gt.f32.partialorder %v2108_v55, 0.0  ;;  %vm2111_vm1 = vcmp.gt.f32.partialorder %v2109_v20, 0.0 }
 0xa06   : > { %v2114_v11 = vmul.f32 1.442695, %v2112_v52  ;;  %v2116_v14 = vmul.f32 1.442695, %v2113_v54 }
 0xa08   : > { %4320 = vpow2.f32 %v2114_v11  ;;  %4312 = vset.pattern.permute.xlu1 %v6796_v13 }
 0xa09   : > { %4322 = vpow2.f32 %v2116_v14  ;;  %3600 = vperm.xlu1 %4312, %v3546_v25  }
 0xa0d   : > { %4313 = vset.pattern.permute.xlu1 %v6797_v61  ;;  %v5795_v19 = vpop.permute.xlu0 %2177 }
 0xa0e   : > { %3649 = vperm.xlu1 %4313, %v3546_v25  }
 0xa11   : > { %v2268_v7 = vpop.permute.xlu0 %2267 }
 0xa12   : > { %4314 = vset.pattern.permute.xlu1 %v6798_v38  ;;  %v2269_v39 = vrot.slane %v2268_v7, 4 }
 0xa13   : > { %3698 = vperm.xlu1 %4314, %v3546_v25  }
 0xa14   : > { %v2270_v47 = vsel %vm408_vm6, %v2269_v39, %v2268_v7 }
 0xa15   : > { %v4321_v28 = vpop.eup %4320  ;;  %v5801_v46 = vpop.permute.xlu0 %2499 }
 0xa16   : > { %v4323_v63 = vpop.eup %4322  ;;  %v4106_v16 = vadd.f32 -1.0, %v4321_v28 }
 0xa17   : > { %v4107_v49 = vadd.f32 -1.0, %v4323_v63  ;;  %4316 = vset.pattern.permute.xlu1 %v6799_v37 }
 0xa18   : > { %v2120_v29 = vsel %vm2110_vm2, %v2108_v55, %v4106_v16 }
 0xa19   : > { %v2121_v41 = vsel %vm2111_vm1, %v2109_v20, %v4107_v49 }
 0xa1a   : > { %v2124_v12 = vcombine.low %v2120_v29, %v2121_v41 }
 0xa1c   : > { %2125 = vrot.lane.b32.xlu0 %v2124_v12, %s4518_s21  ;;  %s6839_s21 = sshll.u32 %s4727_s7, 3 }
 0xa1d   : > { %s251_s23 = scalar_lea.vmem [#allocation11], %s6839_s21 }
 0xa1e   : > { %s3992_s6 = sshll.u32 %s251_s23, 4  ;;  %s3993_s6 = int_to_ptr.vmem [resolvable:$true] %s3992_s6 }
 0xa20   : > { %3129 = vperm.xlu0 %4303, %v5709_v36   ;;  %v5797_v36 = vpop.permute.xlu1 %2150 }
 0xa24   : > { %3328 = vrot.lane.b32.xlu0 %v5589_v10, %s4551_s27  ;;  %v5799_v21 = vpop.permute.xlu1 %2203 }
 0xa25   : > { %4307 = vset.pattern.permute.xlu0 %v6800_v53 }
 0xa28   : > { %3339 = vperm.xlu0 %4307, %v3336_v51   ;;  %v5803_v51 = vpop.permute.xlu1 %2229 }
 0xa2c   : > { %3538 = vrot.lane.b32.xlu0 %v6734_v2, %s4557_s5  ;;  %v5805_v2 = vpop.permute.xlu0 %2709  ;;  %v5807_v56 = vpop.permute.xlu1 %2278 }
 0xa2d   : > { %4311 = vset.pattern.permute.xlu0 %v6801_v40 }
 0xa30   : > { %3549 = vperm.xlu0 %4311, %v3546_v25   ;;  %v5809_v43 = vpop.permute.xlu0 %2919 }
 0xa34   : > { %3748 = vrot.lane.b32.xlu0 %v5531_v44, %s4563_s11  ;;  %v5811_v44 = vpop.permute.xlu1 %2329  ;;  %v5813_v32 = vpop.permute.xlu0 %3118  ;;  %s6806_s11 = smov 95  }
 0xa35   : > { %4315 = vset.pattern.permute.xlu0 %v6802_v59 }
 0xa38   : > { %v5815_v26 = vpop.permute.xlu1 %2378 }
 0xa3c   : > { %v5821_v31 = vpop.permute.xlu1 %2427 }
 0xa40   : > { %v2489_v6 = vpop.permute.xlu1 %2488 }
 0xa41   : > { %v2490_v20 = vrot.slane %v2489_v6, 4 }
 0xa43   : > { %v2491_v13 = vsel %vm632_vm7, %v2490_v20, %v2489_v6 }
 0xa44   : > { %v5826_v45 = vpop.permute.xlu1 %2550 }
 0xa48   : > { %v5835_v18 = vpop.permute.xlu1 %2599 }
 0xa4c   : > { %v5844_v52 = vpop.permute.xlu1 %2648 }
 0xa50   : > { %v2699_v16 = vpop.permute.xlu1 %2698 }
 0xa8e   : > { %v2126_v60 = vpop.permute.xlu0 %2125 }
 0xa8f   : > { %v2127_v50 = vrot.slane %v2126_v60, 4 }
 0xa91   : > { %v2128_v23 = vsel %vm260_vm3, %v2127_v50, %v2126_v60  ;;  %2132 = vst.msk [vmem:[#allocation2 + $0x8] sm:$0xf] %vm268_vm4, %v2127_v50  ;;  %v5874_v50 = vpop.permute.xlu1 %2760 }
 0xa92   : > { %2131 = vst.msk [vmem:[#allocation2] sm:$0xff] %vm4802_vm5, %v2128_v23 }
 0xa98   : > { %v2255_v62 = vld [vmem:[#allocation2 + $0x8] sm:$0xf] }
 0xa99   : > { %v5823_v0 = vld [vmem:[#allocation2] sm:$0xff]  ;;  %v2274_v27 = vmul.f32 %v2269_v39, %v2255_v62  ;;  %v2476_v29 = vld [vmem:[#allocation2 + $0x8] sm:$0xf] }
 0xa9a   : > { %v5829_v3 = vmul.f32 %v2270_v47, %v5823_v0  ;;  %v5862_v37 = vmul.f32 %v2491_v13, %v5823_v0  ;;  %v2495_v7 = vmul.f32 %v2490_v20, %v2476_v29 }
 0xa9b   : > { %v2294_v30 = vrot.slane %v2274_v27, %v4752_v4  ;;  %v2343_v48 = vrot.slane %v2274_v27, %v4755_v5  ;;  %v2392_v14 = vrot.slane %v2274_v27, %v4841_v8  ;;  %v2441_v63 = vrot.slane %v2274_v27, %v4860_v33 }
 0xa9c   : > { %v2290_v22 = vrot.slane %v5829_v3, %v4825_v58  ;;  %v2339_v54 = vrot.slane %v5829_v3, %v4822_v57  ;;  %v2388_v25 = vrot.slane %v5829_v3, %v4844_v9  ;;  %v2437_v53 = vrot.slane %v5829_v3, %v4863_v34 }
 0xa9d   : > { %v2309_v15 = vrot.slane %v2294_v30, %v4752_v4  ;;  %v2358_v55 = vrot.slane %v2343_v48, %v4755_v5  ;;  %v2407_v38 = vrot.slane %v2392_v14, %v4841_v8  ;;  %v2456_v12 = vrot.slane %v2441_v63, %v4860_v33 }
 0xa9e   : > { %v2305_v17 = vrot.slane %v2290_v22, %v4752_v4  ;;  %v2354_v11 = vrot.slane %v2339_v54, %v4755_v5  ;;  %v2403_v28 = vrot.slane %v2388_v25, %v4841_v8  ;;  %v2452_v59 = vrot.slane %v2437_v53, %v4860_v33 }
 0xa9f   : > { %v2312_v24 = vmul.f32 %v2309_v15, %v5807_v56  ;;  %v2361_v35 = vmul.f32 %v2358_v55, %v5811_v44  ;;  %v2410_v49 = vmul.f32 %v2407_v38, %v5815_v26  ;;  %v2459_v40 = vmul.f32 %v2456_v12, %v5821_v31  ;;  %v5892_v55 = vpop.permute.xlu1 %2809 }
 0xaa0   : > { %v2311_v42 = vmul.f32 %v2305_v17, %v5807_v56  ;;  %v2360_v61 = vmul.f32 %v2354_v11, %v5811_v44  ;;  %v2409_v41 = vmul.f32 %v2403_v28, %v5815_v26  ;;  %v2507_v60 = vrot.slane %v5862_v37, %v4752_v4 }
 0xaa1   : > { %2320 = vrot.lane.b32.xlu0 %v2312_v24, %s4540_s9  ;;  %v2458_v23 = vmul.f32 %v2452_v59, %v5821_v31  ;;  %v2515_v1 = vrot.slane %v2495_v7, %v4752_v4  ;;  %v2564_v62 = vrot.slane %v2495_v7, %v4755_v5  ;;  %v2511_v47 = vrot.slane %v5862_v37, %v4825_v58 }
 0xaa2   : > { %2318 = vrot.lane.b32.xlu1 %v2311_v42, %s4540_s9  ;;  %v2522_v39 = vrot.slane %v2507_v60, %v4752_v4  ;;  %v2700_v27 = vrot.slane %v2699_v16, 4  ;;  %v2613_v30 = vrot.slane %v2495_v7, %v4841_v8  ;;  %v2560_v22 = vrot.slane %v5862_v37, %v4822_v57  ;;  %v2697_v42 = vld [vmem:[#allocation2 + $0x8] sm:$0xf] }
 0xaa3   : > { %v2530_v6 = vrot.slane %v2515_v1, %v4752_v4  ;;  %v2579_v17 = vrot.slane %v2564_v62, %v4755_v5  ;;  %v2526_v24 = vrot.slane %v2511_v47, %v4752_v4  ;;  %v2662_v54 = vrot.slane %v2495_v7, %v4860_v33 }
 0xaa4   : > { %v2531_v15 = vmul.f32 %v2522_v39, %v5801_v46  ;;  %v2701_v20 = vsel %vm844_vm8, %v2700_v27, %v2699_v16  ;;  %v2609_v11 = vrot.slane %v5862_v37, %v4844_v9  ;;  %v2575_v13 = vrot.slane %v2560_v22, %v4755_v5  ;;  %v5911_v16 = vpop.permute.xlu1 %2858  ;;  %v2907_v22 = vld [vmem:[#allocation2 + $0x8] sm:$0xf] }
 0xaa5   : > { %2369 = vrot.lane.b32.xlu0 %v2361_v35, %s4540_s9  ;;  %v2533_v48 = vmul.f32 %v2530_v6, %v5801_v46  ;;  %v2628_v35 = vrot.slane %v2613_v30, %v4841_v8  ;;  %v2582_v14 = vmul.f32 %v2579_v17, %v5826_v45  ;;  %v2532_v25 = vmul.f32 %v2526_v24, %v5801_v46 }
 0xaa6   : > { %2367 = vrot.lane.b32.xlu1 %v2360_v61, %s4540_s9  ;;  %v2705_v61 = vmul.f32 %v2700_v27, %v2697_v42  ;;  %v2677_v38 = vrot.slane %v2662_v54, %v4860_v33  ;;  %v2624_v28 = vrot.slane %v2609_v11, %v4841_v8  ;;  %v5909_v63 = vmul.f32 %v2701_v20, %v5823_v0 }
 0xaa7   : > { %v2581_v46 = vmul.f32 %v2575_v13, %v5826_v45 }
 0xaa8   : > { %v2725_v29 = vrot.slane %v2705_v61, %v4752_v4  ;;  %v2680_v12 = vmul.f32 %v2677_v38, %v5844_v52  ;;  %v2630_v53 = vmul.f32 %v2624_v28, %v5835_v18  ;;  %v2774_v7 = vrot.slane %v2705_v61, %v4755_v5 }
 0xaa9   : > { %2418 = vrot.lane.b32.xlu0 %v2410_v49, %s4540_s9  ;;  %v2631_v49 = vmul.f32 %v2628_v35, %v5835_v18  ;;  %v2717_v60 = vrot.slane %v5909_v63, %v4752_v4  ;;  %v2823_v6 = vrot.slane %v2705_v61, %v4841_v8  ;;  %v2721_v39 = vrot.slane %v5909_v63, %v4825_v58 }
 0xaaa   : > { %2416 = vrot.lane.b32.xlu1 %v2409_v41, %s4540_s9  ;;  %v2658_v41 = vrot.slane %v5862_v37, %v4863_v34  ;;  %v2789_v27 = vrot.slane %v2774_v7, %v4755_v5  ;;  %v2770_v17 = vrot.slane %v5909_v63, %v4822_v57 }
 0xaab   : > { %v2732_v30 = vrot.slane %v2717_v60, %v4752_v4  ;;  %v2736_v20 = vrot.slane %v2721_v39, %v4752_v4 }
 0xaac   : > { %v2673_v59 = vrot.slane %v2658_v41, %v4860_v33  ;;  %v2792_v24 = vmul.f32 %v2789_v27, %v5874_v50  ;;  %v2785_v11 = vrot.slane %v2770_v17, %v4755_v5  ;;  %v2384_v17 = vrot.slane %v5829_v3, %v4841_v8 }
 0xaad   : > { %2467 = vrot.lane.b32.xlu0 %v2459_v40, %s4540_s9  ;;  %v2740_v40 = vrot.slane %v2725_v29, %v4752_v4  ;;  %v2741_v42 = vmul.f32 %v2732_v30, %v5805_v2 }
 0xaae   : > { %2465 = vrot.lane.b32.xlu1 %v2458_v23, %s4540_s9  ;;  %v2909_v23 = vpop.permute.xlu1 %2908  ;;  %v2679_v47 = vmul.f32 %v2673_v59, %v5844_v52  ;;  %v2286_v59 = vrot.slane %v5829_v3, %v4752_v4 }
 0xaaf   : > { %v2910_v1 = vrot.slane %v2909_v23, 4  ;;  %v2743_v62 = vmul.f32 %v2740_v40, %v5805_v2 }
 0xab0   : > { %v2301_v39 = vrot.slane %v2286_v59, %v4752_v4 }
 0xab1   : > { %2541 = vrot.lane.b32.xlu0 %v2533_v48, %s4541_s10  ;;  %v2838_v48 = vrot.slane %v2823_v6, %v4841_v8  ;;  %v5945_v35 = vmul.f32 %v2910_v1, %v2907_v22  ;;  %v2911_v38 = vsel %vm260_vm3, %v2910_v1, %v2909_v23  ;;  %vm6807_vm3 = vcmask 900096  }
 0xab2   : > { %2537 = vrot.lane.b32.xlu1 %v2531_v15, %s4541_s10  ;;  %v2872_v15 = vrot.slane %v2705_v61, %v4860_v33  ;;  %v2819_v61 = vrot.slane %v5909_v63, %v4844_v9  ;;  %v5958_v28 = vpop.permute.xlu1 %2970  ;;  %vm6808_vm4 = vmmov %vm6807_vm3 }
 0xab3   : > { %v2935_v13 = vrot.slane %v5945_v35, %v4752_v4  ;;  %vm6809_vm5 = vmmov %vm6807_vm3 }
 0xab4   : > { %v2887_v54 = vrot.slane %v2872_v15, %v4860_v33  ;;  %v2834_v41 = vrot.slane %v2819_v61, %v4841_v8  ;;  %v2433_v61 = vrot.slane %v5829_v3, %v4860_v33  ;;  %vm6810_vm6 = vmmov %vm6807_vm3 }
 0xab5   : > { %2590 = vrot.lane.b32.xlu0 %v2582_v14, %s4541_s10  ;;  %v2841_v14 = vmul.f32 %v2838_v48, %v5892_v55  ;;  %v2950_v29 = vrot.slane %v2935_v13, %v4752_v4  ;;  %v2399_v13 = vrot.slane %v2384_v17, %v4841_v8  ;;  %vm6811_vm7 = vmmov %vm6807_vm3 }
 0xab6   : > { %2539 = vrot.lane.b32.xlu1 %v2532_v25, %s4541_s10  ;;  %v2742_v25 = vmul.f32 %v2736_v20, %v5805_v2  ;;  %v2868_v2 = vrot.slane %v5909_v63, %v4863_v34  ;;  %v5978_v7 = vpop.permute.xlu1 %3019  ;;  %v2840_v23 = vmul.f32 %v2834_v41, %v5892_v55  ;;  %vm6812_vm8 = vmmov %vm6807_vm3 }
 0xab7   : > { %v2953_v60 = vmul.f32 %v2950_v29, %v5809_v43 }
 0xab8   : > { %v2883_v40 = vrot.slane %v2868_v2, %v4860_v33 }
 0xab9   : > { %2639 = vrot.lane.b32.xlu0 %v2631_v49, %s4541_s10  ;;  %v2890_v49 = vmul.f32 %v2887_v54, %v5911_v16 }
 0xaba   : > { %2588 = vrot.lane.b32.xlu1 %v2581_v46, %s4541_s10  ;;  %v2791_v46 = vmul.f32 %v2785_v11, %v5874_v50  ;;  %v2889_v27 = vmul.f32 %v2883_v40, %v5911_v16  ;;  %v5995_v48 = vpop.permute.xlu1 %3068 }
 0xabd   : > { %2688 = vrot.lane.b32.xlu0 %v2680_v12, %s4541_s10  ;;  %v2984_v12 = vrot.slane %v5945_v35, %v4755_v5 }
 0xabe   : > { %2637 = vrot.lane.b32.xlu1 %v2630_v53, %s4541_s10  ;;  %v5971_v53 = vmul.f32 %v2911_v38, %v5823_v0  ;;  %v2408_v38 = vmul.f32 %v2399_v13, %v5815_v26  ;;  %v2605_v26 = vrot.slane %v5862_v37, %v4841_v8 }
 0xabf   : > { %v2999_v1 = vrot.slane %v2984_v12, %v4755_v5 }
 0xac0   : > { %v2927_v6 = vrot.slane %v5971_v53, %v4752_v4  ;;  %v2931_v22 = vrot.slane %v5971_v53, %v4825_v58  ;;  %v2980_v54 = vrot.slane %v5971_v53, %v4822_v57  ;;  %v3025_v41 = vrot.slane %v5971_v53, %v4841_v8 }
 0xac1   : > { %2751 = vrot.lane.b32.xlu0 %v2743_v62, %s4542_s20  ;;  %v2335_v62 = vrot.slane %v5829_v3, %v4755_v5  ;;  %v6028_v3 = vld [vmem:[#allocation8] sm:$0xf]  ;;  %v2620_v59 = vrot.slane %v2605_v26, %v4841_v8 }
 0xac2   : > { %2686 = vrot.lane.b32.xlu1 %v2679_v47, %s4541_s10  ;;  %v3002_v47 = vmul.f32 %v2999_v1, %v5958_v28  ;;  %v2942_v30 = vrot.slane %v2927_v6, %v4752_v4  ;;  %v2946_v20 = vrot.slane %v2931_v22, %v4752_v4  ;;  %v6804_v1 = vmov 34   ;;  %v6061_v22 = vpop.permute.xlu0 %3129 }
 0xac3   : > { %v2350_v15 = vrot.slane %v2335_v62, %v4755_v5  ;;  %v3120_v6 = vrot.slane %v5813_v32, 4 }
 0xac5   : > { %2800 = vrot.lane.b32.xlu0 %v2792_v24, %s4542_s20  ;;  %v2310_v24 = vmul.f32 %v2301_v39, %v5807_v56  ;;  %v2359_v11 = vmul.f32 %v2350_v15, %v5811_v44  ;;  %v2995_v56 = vrot.slane %v2980_v54, %v4755_v5  ;;  %v2448_v44 = vrot.slane %v2433_v61, %v4860_v33 }
 0xac6   : > { %2747 = vrot.lane.b32.xlu1 %v2741_v42, %s4542_s20  ;;  %v2951_v42 = vmul.f32 %v2942_v30, %v5809_v43 }
 0xac7   : > { %v2457_v2 = vmul.f32 %v2448_v44, %v5821_v31  ;;  %v2654_v31 = vrot.slane %v5862_v37, %v4860_v33  ;;  %v3117_v44 = vld [vmem:[#allocation2 + $0x8] sm:$0xf] }
 0xac9   : > { %2849 = vrot.lane.b32.xlu0 %v2841_v14, %s4542_s20  ;;  %v6010_v14 = vpop.permute.xlu1 %3180  ;;  %v2669_v39 = vrot.slane %v2654_v31, %v4860_v33 }
 0xaca   : > { %2749 = vrot.lane.b32.xlu1 %v2742_v25, %s4542_s20  ;;  %v2952_v25 = vmul.f32 %v2946_v20, %v5809_v43  ;;  %v2556_v43 = vrot.slane %v5862_v37, %v4755_v5  ;;  %v2766_v37 = vrot.slane %v5909_v63, %v4755_v5 }
 0xacb   : > { %v2678_v15 = vmul.f32 %v2669_v39, %v5844_v52  ;;  %v6082_v52 = vpop.permute.xlu0 %3328 }
 0xacc   : > { %v2571_v29 = vrot.slane %v2556_v43, %v4755_v5  ;;  %v2781_v17 = vrot.slane %v2766_v37, %v4755_v5 }
 0xacd   : > { %2898 = vrot.lane.b32.xlu0 %v2890_v49, %s4542_s20  ;;  %v3001_v49 = vmul.f32 %v2995_v56, %v5958_v28  ;;  %v2864_v56 = vrot.slane %v5909_v63, %v4860_v33 }
 0xace   : > { %2798 = vrot.lane.b32.xlu1 %v2791_v46, %s4542_s20  ;;  %v6024_v46 = vpop.permute.xlu1 %3229  ;;  %v2580_v40 = vmul.f32 %v2571_v29, %v5826_v45  ;;  %v2629_v45 = vmul.f32 %v2620_v59, %v5835_v18  ;;  %v3121_v18 = vsel %vm1267_vm9, %v3120_v6, %v5813_v32  ;;  %v6102_v29 = vmul.f32 %v3120_v6, %v3117_v44  ;;  %vm6813_vm9 = vmmov %vm6807_vm3 }
 0xad1   : > { %2961 = vrot.lane.b32.xlu0 %v2953_v60, %s4543_s24  ;;  %v3040_v60 = vrot.slane %v3025_v41, %v4841_v8 }
 0xad2   : > { %2847 = vrot.lane.b32.xlu1 %v2840_v23, %s4542_s20  ;;  %v6038_v12 = vpop.permute.xlu1 %3278  ;;  %v3029_v23 = vrot.slane %v5971_v53, %v4844_v9 }
 0xad3   : > { %v3049_v62 = vmul.f32 %v3040_v60, %v5978_v7 }
 0xad5   : > { %3010 = vrot.lane.b32.xlu0 %v3002_v47, %s4543_s24  ;;  %v3044_v47 = vrot.slane %v3029_v23, %v4841_v8 }
 0xad6   : > { %2896 = vrot.lane.b32.xlu1 %v2889_v27, %s4542_s20  ;;  %v3074_v27 = vrot.slane %v5971_v53, %v4860_v33  ;;  %v6059_v30 = vpop.permute.xlu1 %3390 }
 0xad7   : > { %v3050_v20 = vmul.f32 %v3044_v47, %v5978_v7 }
 0xad8   : > { %v3089_v54 = vrot.slane %v3074_v27, %v4860_v33 }
 0xad9   : > { %2316 = vrot.lane.b32.xlu0 %v2310_v24, %s4540_s9  ;;  %v2815_v24 = vrot.slane %v5909_v63, %v4841_v8  ;;  %v6100_v63 = vmul.f32 %v5589_v10, %v5823_v0 }
 0xada   : > { %2957 = vrot.lane.b32.xlu1 %v2951_v42, %s4543_s24  ;;  %v6072_v42 = vmul.f32 %v3121_v18, %v5823_v0  ;;  %v6080_v32 = vpop.permute.xlu1 %3439 }
 0xadb   : > { %v2830_v13 = vrot.slane %v2815_v24, %v4841_v8  ;;  %v2161_v60 = vrot.slane %v6100_v63, %v4825_v58  ;;  %v2187_v23 = vrot.slane %v6100_v63, %v4822_v57  ;;  %v2213_v24 = vrot.slane %v6100_v63, %v4844_v9 }
 0xadc   : > { %v3141_v61 = vrot.slane %v6072_v42, %v4825_v58  ;;  %v3186_v26 = vrot.slane %v6072_v42, %v4755_v5  ;;  %v2239_v44 = vrot.slane %v6100_v63, %v4863_v34 }
 0xadd   : > { %2365 = vrot.lane.b32.xlu0 %v2359_v11, %s4540_s9  ;;  %v3082_v11 = vrot.slane %v5945_v35, %v4860_v33  ;;  %v2839_v43 = vmul.f32 %v2830_v13, %v5892_v55  ;;  %v6110_v55 = vpop.permute.xlu0 %3339  ;;  %v2197_v47 = vrot.slane %v2187_v23, %v4755_v5  ;;  %v3033_v13 = vrot.slane %v5945_v35, %v4841_v8 }
 0xade   : > { %2959 = vrot.lane.b32.xlu1 %v2952_v25, %s4543_s24  ;;  %v2790_v25 = vmul.f32 %v2781_v17, %v5874_v50  ;;  %v2879_v50 = vrot.slane %v2864_v56, %v4860_v33  ;;  %v3156_v41 = vrot.slane %v3141_v61, %v4752_v4  ;;  %v6108_v59 = vpop.permute.xlu1 %3488  ;;  %v3201_v6 = vrot.slane %v3186_v26, %v4755_v5 }
 0xadf   : > { %v3330_v17 = vrot.slane %v6082_v52, 4  ;;  %v3048_v26 = vrot.slane %v3033_v13, %v4841_v8  ;;  %v3137_v23 = vrot.slane %v6072_v42, %v4752_v4 }
 0xae0   : > { %v2888_v10 = vmul.f32 %v2879_v50, %v5911_v16  ;;  %v3210_v18 = vmul.f32 %v3201_v6, %v6010_v14 }
 0xae1   : > { %2414 = vrot.lane.b32.xlu0 %v2408_v38, %s4540_s9  ;;  %v3098_v38 = vmul.f32 %v3089_v54, %v5995_v48  ;;  %v6128_v39 = vpop.permute.xlu0 %3538  ;;  %v2199_v54 = vmul.f32 %v2197_v47, %v5795_v19  ;;  %v3331_v56 = vsel %vm1479_vm10, %v3330_v17, %v6082_v52  ;;  %vm6814_vm10 = vmmov %vm6807_vm3 }
 0xae2   : > { %3008 = vrot.lane.b32.xlu1 %v3001_v49, %s4543_s24  ;;  %v3097_v49 = vrot.slane %v3082_v11, %v4860_v33  ;;  %v6126_v16 = vpop.permute.xlu1 %3600 }
 0xae5   : > { %2463 = vrot.lane.b32.xlu0 %v2457_v2, %s4540_s9  ;;  %v2976_v2 = vrot.slane %v5971_v53, %v4755_v5 }
 0xae6   : > { %3810 = vperm.xlu1 %4316, %v6028_v3   ;;  %v6152_v61 = vpop.permute.xlu1 %3649 }
 0xae7   : > { %v2991_v31 = vrot.slane %v2976_v2, %v4755_v5  ;;  %v6166_v2 = vmul.f32 %v3331_v56, %v5823_v0 }
 0xae9   : > { %2586 = vrot.lane.b32.xlu0 %v2580_v40, %s4541_s10  ;;  %v3100_v40 = vmul.f32 %v3097_v49, %v5995_v48  ;;  %v3000_v37 = vmul.f32 %v2991_v31, %v5958_v28  ;;  %v3284_v28 = vrot.slane %v6072_v42, %v4860_v33  ;;  %v2223_v49 = vrot.slane %v2213_v24, %v4841_v8 }
 0xaea   : > { %4317 = vset.pattern.permute.xlu1 %v6804_v1  ;;  %v3194_v1 = vrot.slane %v6102_v29, %v4755_v5  ;;  %v2249_v31 = vrot.slane %v2239_v44, %v4860_v33  ;;  %v3152_v24 = vrot.slane %v3137_v23, %v4752_v4  ;;  %v3396_v56 = vrot.slane %v6166_v2, %v4755_v5 }
 0xaeb   : > { %3859 = vperm.xlu1 %4317, %v6028_v3   ;;  %v3299_v35 = vrot.slane %v3284_v28, %v4860_v33 }
 0xaec   : > { %v3209_v27 = vrot.slane %v3194_v1, %v4755_v5  ;;  %v6179_v1 = vpop.permute.xlu1 %3698  ;;  %v2251_v47 = vmul.f32 %v2249_v31, %v5803_v51 }
 0xaed   : > { %2635 = vrot.lane.b32.xlu0 %v2629_v45, %s4541_s10  ;;  %v3162_v45 = vmul.f32 %v3156_v41, %v6061_v22  ;;  %v3078_v41 = vrot.slane %v5971_v53, %v4863_v34 }
 0xaee   : > { %v3212_v11 = vmul.f32 %v3209_v27, %v6010_v14  ;;  %v3145_v27 = vrot.slane %v6102_v29, %v4752_v4 }
 0xaef   : > { %3055 = vrot.lane.b32.xlu1 %v3049_v62, %s4543_s24  ;;  %v2171_v62 = vrot.slane %v2161_v60, %v4752_v4 }
 0xaf0   : > { %v3160_v44 = vrot.slane %v3145_v27, %v4752_v4  ;;  %v3494_v27 = vrot.slane %v6166_v2, %v4860_v33 }
 0xaf1   : > { %2684 = vrot.lane.b32.xlu0 %v2678_v15, %s4541_s10  ;;  %v3239_v15 = vrot.slane %v6072_v42, %v4844_v9 }
 0xaf3   : > { %3057 = vrot.lane.b32.xlu1 %v3050_v20, %s4543_s24  ;;  %v2173_v20 = vmul.f32 %v2171_v62, %v5797_v36  ;;  %v3051_v62 = vmul.f32 %v3048_v26, %v5978_v7 }
 0xaf5   : > { %2796 = vrot.lane.b32.xlu0 %v2790_v25, %s4542_s20  ;;  %v3254_v25 = vrot.slane %v3239_v15, %v4841_v8  ;;  %v2201_v50 = vadd.f32 %v2199_v54, %v2173_v20 }
 0xaf7   : > { %3104 = vrot.lane.b32.xlu1 %v3098_v38, %s4543_s24  ;;  %v6154_v38 = vpop.permute.xlu0 %3549  ;;  %v3260_v52 = vmul.f32 %v3254_v25, %v6024_v46 }
 0xaf9   : > { %2845 = vrot.lane.b32.xlu0 %v2839_v43, %s4542_s20  ;;  %v3292_v43 = vrot.slane %v6102_v29, %v4860_v33 }
 0xafb   : > { %3108 = vrot.lane.b32.xlu1 %v3100_v40, %s4543_s24  ;;  %v6805_v40 = vmov 35   ;;  %v3307_v60 = vrot.slane %v3292_v43, %v4860_v33  ;;  %v6181_v6 = vpop.permute.xlu0 %3748 }
 0xafd   : > { %2894 = vrot.lane.b32.xlu0 %v2888_v10, %s4542_s20  ;;  %v2225_v10 = vmul.f32 %v2223_v49, %v5799_v21  ;;  %v3310_v15 = vmul.f32 %v3307_v60, %v6038_v12  ;;  %s3978_s20 = scalar_lea.sflag [#allocation5], %s4727_s7 }
 0xaff   : > { %3169 = vrot.lane.b32.xlu1 %v3162_v45, %s4547_s29  ;;  %v2227_v53 = vadd.f32 %v2225_v10, %v2201_v50  ;;  %v3308_v45 = vmul.f32 %v3299_v35, %v6038_v12  ;;  %v3161_v35 = vmul.f32 %v3152_v24, %v6061_v22  ;;  %v3411_v50 = vrot.slane %v3396_v56, %v4755_v5 }
 0xb00   : > { %v3540_v10 = vrot.slane %v6128_v39, 4 }
 0xb01   : > { %3006 = vrot.lane.b32.xlu0 %v3000_v37, %s4543_s24  ;;  %v3351_v37 = vrot.slane %v6166_v2, %v4825_v58  ;;  %v2253_v54 = vadd.f32 %v2251_v47, %v2227_v53  ;;  %v3420_v23 = vmul.f32 %v3411_v50, %v6059_v30 }
 0xb03   : > { %3216 = vrot.lane.b32.xlu1 %v3210_v18, %s4547_s29  ;;  %v3327_v18 = vld [vmem:[#allocation2 + $0x8] sm:$0xf] }
 0xb04   : > { %v6195_v28 = vmul.f32 %v3330_v17, %v3327_v18  ;;  %v3190_v17 = vrot.slane %v6072_v42, %v4822_v57 }
 0xb05   : > { %3759 = vperm.xlu0 %4315, %v6028_v3  }
 0xb06   : > { %v3205_v26 = vrot.slane %v3190_v17, %v4755_v5  ;;  %v3509_v17 = vrot.slane %v3494_v27, %v4860_v33 }
 0xb07   : > { %3220 = vrot.lane.b32.xlu1 %v3212_v11, %s4547_s29  ;;  %v3366_v11 = vrot.slane %v3351_v37, %v4752_v4 }
 0xb09   : > { %4318 = vset.pattern.permute.xlu0 %v6805_v40  ;;  %v3163_v40 = vmul.f32 %v3160_v44, %v6061_v22  ;;  %v3211_v22 = vmul.f32 %v3205_v26, %v6010_v14 }
 0xb0a   : > { %3908 = vperm.xlu0 %4318, %v6028_v3   ;;  %v3093_v3 = vrot.slane %v3078_v41, %v4860_v33  ;;  %v3235_v41 = vrot.slane %v6072_v42, %v4841_v8 }
 0xb0b   : > { %3267 = vrot.lane.b32.xlu1 %v3260_v52, %s4547_s29  ;;  %v3404_v52 = vrot.slane %v6195_v28, %v4755_v5 }
 0xb0c   : > { %v3099_v25 = vmul.f32 %v3093_v3, %v5995_v48  ;;  %v3372_v48 = vmul.f32 %v3366_v11, %v6110_v55  ;;  %v3243_v3 = vrot.slane %v6102_v29, %v4841_v8  ;;  %v3250_v47 = vrot.slane %v3235_v41, %v4841_v8 }
 0xb0d   : > { %v3419_v53 = vrot.slane %v3404_v52, %v4755_v5  ;;  %v3288_v29 = vrot.slane %v6072_v42, %v4863_v34 }
 0xb0e   : > { %3059 = vrot.lane.b32.xlu0 %v3051_v62, %s4543_s24 }
 0xb0f   : > { %3314 = vrot.lane.b32.xlu1 %v3308_v45, %s4547_s29  ;;  %v3449_v45 = vrot.slane %v6166_v2, %v4844_v9 }
 0xb11   : > { %v3464_v14 = vrot.slane %v3449_v45, %v4841_v8 }
 0xb12   : > { %3106 = vrot.lane.b32.xlu0 %v3099_v25, %s4543_s24  ;;  %v3258_v25 = vrot.slane %v3243_v3, %v4841_v8  ;;  %s4437_s24 = scalar_lea.vmem %s3993_s6, 128 }
 0xb13   : > { %v2321_v20 = vpop.permute.xlu0 %2320  ;;  %3318 = vrot.lane.b32.xlu1 %v3310_v15, %s4547_s29  ;;  %v3541_v15 = vsel %vm1691_vm11, %v3540_v10, %v6128_v39  ;;  %v3502_v39 = vrot.slane %v6195_v28, %v4860_v33  ;;  %v3470_v44 = vmul.f32 %v3464_v14, %v6080_v32  ;;  %vm6815_vm11 = vcmask 785408   ;;  %p4438_p12 = scmp.ne.s32.totalorder %s3993_s6, %s4437_s24 }
 0xb14   : > { %v6197_v7 = vpop.permute.xlu1 %2318  ;;  %v3261_v41 = vmul.f32 %v3258_v25, %v6024_v46  ;;  %v3400_v25 = vrot.slane %v6166_v2, %v4822_v57 }
 0xb15   : > { %v2323_v13 = vsel %vm461_vm13, %v6197_v7, %v2321_v20  ;;  %v3422_v20 = vmul.f32 %v3419_v53, %v6059_v30  ;;  %v3355_v53 = vrot.slane %v6195_v28, %v4752_v4  ;;  %p4439_p7 = pnand %p4438_p12, %p6840_p5 }
 0xb16   : > { %v2327_v49 = vadd.f32 %v2323_v13, %v2253_v54  ;;  %3167 = vrot.lane.b32.xlu0 %v3161_v35, %s4547_s29  ;;  %v6254_v13 = vmul.f32 %v3541_v15, %v5823_v0  ;;  %v3303_v35 = vrot.slane %v3288_v29, %v4860_v33  ;;  %v3517_v0 = vrot.slane %v3502_v39, %v4860_v33 }
 0xb17   : > { %v2370_v43 = vpop.permute.xlu0 %2369  ;;  %3379 = vrot.lane.b32.xlu1 %v3372_v48, %s4553_s30  ;;  %v3347_v48 = vrot.slane %v6166_v2, %v4752_v4  ;;  %p4440_p10 = pneg %p4439_p7 }
 0xb18   : > { %v6222_v31 = vpop.permute.xlu1 %2367  ;;  %v3561_v50 = vrot.slane %v6254_v13, %v4825_v58  ;;  %v3606_v27 = vrot.slane %v6254_v13, %v4755_v5 }
 0xb19   : > { %v2372_v60 = vsel %vm461_vm13, %v6222_v31, %v2370_v43  ;;  %v3362_v45 = vrot.slane %v3347_v48, %v4752_v4 }
 0xb1a   : > { %v2376_v37 = vadd.f32 %v2372_v60, %v2327_v49  ;;  %3171 = vrot.lane.b32.xlu0 %v3163_v40, %s4547_s29  ;;  %v3259_v49 = vmul.f32 %v3250_v47, %v6024_v46  ;;  %v3518_v40 = vmul.f32 %v3509_v17, %v6108_v59  ;;  %v3309_v60 = vmul.f32 %v3303_v35, %v6038_v12 }
 0xb1b   : > { %v2419_v62 = vpop.permute.xlu0 %2418  ;;  %3426 = vrot.lane.b32.xlu1 %v3420_v23, %s4553_s30  ;;  %v3520_v23 = vmul.f32 %v3517_v0, %v6108_v59  ;;  %v3621_v29 = vrot.slane %v3606_v27, %v4755_v5  ;;  %v3445_v35 = vrot.slane %v6166_v2, %v4841_v8 }
 0xb1c   : > { %v6238_v18 = vpop.permute.xlu1 %2416 }
 0xb1d   : > { %v2421_v24 = vsel %vm461_vm13, %v6238_v18, %v2419_v62  ;;  %v3576_v62 = vrot.slane %v3561_v50, %v4752_v4  ;;  %v3630_v48 = vmul.f32 %v3621_v29, %v6126_v16  ;;  %v3415_v50 = vrot.slane %v3400_v25, %v4755_v5 }
 0xb1e   : > { %v2425_v54 = vadd.f32 %v2421_v24, %v2376_v37  ;;  %3218 = vrot.lane.b32.xlu0 %v3211_v22, %s4547_s29  ;;  %v3537_v37 = vld [vmem:[#allocation2 + $0x8] sm:$0xf]  ;;  %v3370_v24 = vrot.slane %v3355_v53, %v4752_v4 }
 0xb1f   : > { %v2468_v11 = vpop.permute.xlu0 %2467  ;;  %3430 = vrot.lane.b32.xlu1 %v3422_v20, %s4553_s30  ;;  %v6281_v3 = vmul.f32 %v3540_v10, %v3537_v37  ;;  %v3371_v20 = vmul.f32 %v3362_v45, %v6110_v55  ;;  %v3582_v10 = vmul.f32 %v3576_v62, %v6154_v38  ;;  %v3421_v45 = vmul.f32 %v3415_v50, %v6059_v30 }
 0xb20   : > { %v6256_v56 = vpop.permute.xlu1 %2465  ;;  %v3373_v17 = vmul.f32 %v3370_v24, %v6110_v55  ;;  %v3460_v62 = vrot.slane %v3445_v35, %v4841_v8  ;;  %v2157_v30 = vrot.slane %v6100_v63, %v4752_v4  ;;  %v2209_v50 = vrot.slane %v6100_v63, %v4841_v8 }
 0xb21   : > { %v2470_v42 = vsel %vm461_vm13, %v6256_v56, %v2468_v11  ;;  %v3614_v39 = vrot.slane %v6281_v3, %v4755_v5 }
 0xb22   : > { %v2474_v43 = vadd.f32 %v2470_v42, %v2425_v54  ;;  %3265 = vrot.lane.b32.xlu0 %v3259_v49, %s4547_s29  ;;  %v3659_v42 = vrot.slane %v6254_v13, %v4844_v9 }
 0xb23   : > { %3477 = vrot.lane.b32.xlu1 %v3470_v44, %s4553_s30  ;;  %v2542_v52 = vpop.permute.xlu0 %2541 }
 0xb24   : > { %v2538_v26 = vpop.permute.xlu1 %2537  ;;  %v3674_v55 = vrot.slane %v3659_v42, %v4841_v8 }
 0xb26   : > { %3269 = vrot.lane.b32.xlu0 %v3261_v41, %s4547_s29  ;;  %v3704_v41 = vrot.slane %v6254_v13, %v4860_v33  ;;  %v3680_v24 = vmul.f32 %v3674_v55, %v6152_v61 }
 0xb27   : > { %3524 = vrot.lane.b32.xlu1 %v3518_v40, %s4553_s30  ;;  %v2591_v22 = vpop.permute.xlu0 %2590 }
 0xb28   : > { %v2540_v46 = vpop.permute.xlu1 %2539 }
 0xb29   : > { %v6284_v12 = vsel %vm685_vm14, %v2538_v26, %v2540_v46  ;;  %v2544_v47 = vsel %vm685_vm14, %v2540_v46, %v2542_v52  ;;  %v3629_v52 = vrot.slane %v3614_v39, %v4755_v5  ;;  %v3498_v46 = vrot.slane %v6166_v2, %v4863_v34 }
 0xb2a   : > { %v2548_v15 = vadd.f32 %v2544_v47, %v2474_v43  ;;  %3316 = vrot.lane.b32.xlu0 %v3309_v60, %s4547_s29  ;;  %v3469_v2 = vmul.f32 %v3460_v62, %v6080_v32  ;;  %v2235_v62 = vrot.slane %v6100_v63, %v4860_v33 }
 0xb2b   : > { %3528 = vrot.lane.b32.xlu1 %v3520_v23, %s4553_s30  ;;  %v2640_v14 = vpop.permute.xlu0 %2639  ;;  %v3453_v23 = vrot.slane %v6195_v28, %v4841_v8  ;;  %v3632_v37 = vmul.f32 %v3629_v52, %v6126_v16  ;;  %v3712_v28 = vrot.slane %v6281_v3, %v4860_v33 }
 0xb2c   : > { %v6294_v54 = vpop.permute.xlu1 %2588 }
 0xb2d   : > { %v2593_v11 = vsel %vm685_vm14, %v6294_v54, %v2591_v22  ;;  %v3727_v29 = vrot.slane %v3712_v28, %v4860_v33 }
 0xb2e   : > { %v2597_v49 = vadd.f32 %v2593_v11, %v2548_v15  ;;  %3377 = vrot.lane.b32.xlu0 %v3371_v20, %s4553_s30  ;;  %v2183_v15 = vrot.slane %v6100_v63, %v4755_v5  ;;  %v3719_v20 = vrot.slane %v3704_v41, %v4860_v33  ;;  %v3557_v11 = vrot.slane %v6254_v13, %v4752_v4 }
 0xb2f   : > { %3589 = vrot.lane.b32.xlu1 %v3582_v10, %s6806_s11  ;;  %v2689_v44 = vpop.permute.xlu0 %2688  ;;  %v3468_v10 = vrot.slane %v3453_v23, %v4841_v8 }
 0xb30   : > { %v6308_v43 = vpop.permute.xlu1 %2637  ;;  %v3728_v42 = vmul.f32 %v3719_v20, %v6179_v1 }
 0xb31   : > { %v2642_v0 = vsel %vm685_vm14, %v6308_v43, %v2640_v14  ;;  %v3513_v14 = vrot.slane %v3498_v46, %v4860_v33 }
 0xb32   : > { %v2646_v26 = vadd.f32 %v2642_v0, %v2597_v49  ;;  %3381 = vrot.lane.b32.xlu0 %v3373_v17, %s4553_s30  ;;  %v2167_v49 = vrot.slane %v2157_v30, %v4752_v4  ;;  %v2193_v17 = vrot.slane %v2183_v15, %v4755_v5  ;;  %v3471_v0 = vmul.f32 %v3468_v10, %v6080_v32 }
 0xb33   : > { %3636 = vrot.lane.b32.xlu1 %v3630_v48, %s6806_s11  ;;  %v2752_v40 = vpop.permute.xlu0 %2751  ;;  %v3519_v52 = vmul.f32 %v3513_v14, %v6108_v59  ;;  %v3565_v32 = vrot.slane %v6281_v3, %v4752_v4  ;;  %v2219_v59 = vrot.slane %v2209_v50, %v4841_v8  ;;  %v2245_v15 = vrot.slane %v2235_v62, %v4860_v33 }
 0xb34   : > { %v6322_v60 = vpop.permute.xlu1 %2686  ;;  %v2172_v41 = vmul.f32 %v2167_v49, %v5797_v36  ;;  %v2198_v23 = vmul.f32 %v2193_v17, %v5795_v19 }
 0xb35   : > { %v2691_v53 = vsel %vm685_vm14, %v6322_v60, %v2689_v44  ;;  %v3580_v46 = vrot.slane %v3565_v32, %v4752_v4  ;;  %v2224_v63 = vmul.f32 %v2219_v59, %v5799_v21  ;;  %v2250_v21 = vmul.f32 %v2245_v15, %v5803_v51 }
 0xb36   : > { %v2695_v22 = vadd.f32 %v2691_v53, %v2646_v26  ;;  %3428 = vrot.lane.b32.xlu0 %v3421_v45, %s4553_s30  ;;  %v3730_v53 = vmul.f32 %v3727_v29, %v6179_v1 }
 0xb37   : > { %3640 = vrot.lane.b32.xlu1 %v3632_v37, %s6806_s11  ;;  %v2801_v47 = vpop.permute.xlu0 %2800  ;;  %v3583_v14 = vmul.f32 %v3580_v46, %v6154_v38 }
 0xb38   : > { %v2748_v27 = vpop.permute.xlu1 %2747 }
 0xb3a   : > { %3475 = vrot.lane.b32.xlu0 %v3469_v2, %s4553_s30 }
 0xb3b   : > { %3687 = vrot.lane.b32.xlu1 %v3680_v24, %s6806_s11  ;;  %v2850_v25 = vpop.permute.xlu0 %2849  ;;  %v3655_v24 = vrot.slane %v6254_v13, %v4841_v8 }
 0xb3c   : > { %v2750_v39 = vpop.permute.xlu1 %2749 }
 0xb3d   : > { %v6355_v44 = vsel %vm897_vm15, %v2748_v27, %v2750_v39  ;;  %v2754_v35 = vsel %vm897_vm15, %v2750_v39, %v2752_v40  ;;  %v3572_v40 = vrot.slane %v3557_v11, %v4752_v4  ;;  %v3610_v27 = vrot.slane %v6254_v13, %v4822_v57 }
 0xb3e   : > { %v2758_v48 = vadd.f32 %v2754_v35, %v2695_v22  ;;  %3479 = vrot.lane.b32.xlu0 %v3471_v0, %s4553_s30  ;;  %v2200_v22 = vadd.f32 %v2198_v23, %v2172_v41  ;;  %v3663_v39 = vrot.slane %v6281_v3, %v4841_v8  ;;  %v3670_v49 = vrot.slane %v3655_v24, %v4841_v8 }
 0xb3f   : > { %3734 = vrot.lane.b32.xlu1 %v3728_v42, %s6806_s11  ;;  %v2899_v26 = vpop.permute.xlu0 %2898  ;;  %v3581_v28 = vmul.f32 %v3572_v40, %v6154_v38  ;;  %v3625_v29 = vrot.slane %v3610_v27, %v4755_v5  ;;  %v3708_v3 = vrot.slane %v6254_v13, %v4863_v34 }
 0xb40   : > { %v6364_v55 = vpop.permute.xlu1 %2798  ;;  %v2226_v10 = vadd.f32 %v2224_v63, %v2200_v22  ;;  %v3678_v51 = vrot.slane %v3663_v39, %v4841_v8  ;;  %v3679_v50 = vmul.f32 %v3670_v49, %v6152_v61 }
 0xb41   : > { %v2803_v45 = vsel %vm897_vm15, %v6364_v55, %v2801_v47  ;;  %v3631_v0 = vmul.f32 %v3625_v29, %v6126_v16 }
 0xb42   : > { %v2807_v37 = vadd.f32 %v2803_v45, %v2758_v48  ;;  %3526 = vrot.lane.b32.xlu0 %v3519_v52, %s4553_s30  ;;  %v2252_v17 = vadd.f32 %v2250_v21, %v2226_v10  ;;  %v3681_v45 = vmul.f32 %v3678_v51, %v6152_v61 }
 0xb43   : > { %3738 = vrot.lane.b32.xlu1 %v3730_v53, %s6806_s11  ;;  %v2962_v19 = vpop.permute.xlu0 %2961 }
 0xb44   : > { %v6379_v36 = vpop.permute.xlu1 %2847 }
 0xb45   : > { %v2852_v47 = vsel %vm897_vm15, %v6379_v36, %v2850_v25 }
 0xb46   : > { %v2856_v30 = vadd.f32 %v2852_v47, %v2807_v37  ;;  %3587 = vrot.lane.b32.xlu0 %v3581_v28, %s6806_s11  ;;  %v3723_v37 = vrot.slane %v3708_v3, %v4860_v33 }
 0xb47   : > { %v3011_v20 = vpop.permute.xlu0 %3010 }
 0xb48   : > { %v6392_v2 = vpop.permute.xlu1 %2896  ;;  %v3729_v22 = vmul.f32 %v3723_v37, %v6179_v1 }
 0xb49   : > { %v2901_v11 = vsel %vm897_vm15, %v6392_v2, %v2899_v26 }
 0xb4a   : > { %v2905_v25 = vadd.f32 %v2901_v11, %v2856_v30  ;;  %3591 = vrot.lane.b32.xlu0 %v3583_v14, %s6806_s11 }
 0xb4b   : > { %v2317_v42 = vpop.permute.xlu0 %2316 }
 0xb4c   : > { %v2958_v35 = vpop.permute.xlu1 %2957  ;;  %v2322_v38 = vsel %vm461_vm13, %v2317_v42, %v6197_v7 }
 0xb4d   : > { %v2326_v48 = vadd.f32 %v2322_v38, %v2252_v17  ;;  %v3750_v17 = vrot.slane %v6181_v6, 4 }
 0xb4e   : > { %3638 = vrot.lane.b32.xlu0 %v3631_v0, %s6806_s11 }
 0xb4f   : > { %v2366_v52 = vpop.permute.xlu0 %2365 }
 0xb50   : > { %v2960_v26 = vpop.permute.xlu1 %2959  ;;  %v2371_v41 = vsel %vm461_vm13, %v2366_v52, %v6222_v31  ;;  %v3747_v52 = vld [vmem:[#allocation2 + $0x8] sm:$0xf] }
 0xb51   : > { %v2963_v23 = vsel %vm1108_vm0, %v2958_v35, %v2960_v26  ;;  %v2964_v7 = vsel %vm1108_vm0, %v2960_v26, %v2962_v19  ;;  %v2375_v16 = vadd.f32 %v2371_v41, %v2326_v48  ;;  %v3755_v26 = vmul.f32 %v3750_v17, %v3747_v52 }
 0xb52   : > { %v2968_v32 = vadd.f32 %v2964_v7, %v2905_v25  ;;  %3685 = vrot.lane.b32.xlu0 %v3679_v50, %s6806_s11 }
 0xb53   : > { %v2415_v40 = vpop.permute.xlu0 %2414  ;;  %v3824_v37 = vrot.slane %v3755_v26, %v4755_v5 }
 0xb54   : > { %v3009_v53 = vpop.permute.xlu1 %3008  ;;  %v2420_v13 = vsel %vm461_vm13, %v2415_v40, %v6238_v18 }
 0xb55   : > { %v3013_v59 = vsel %vm1108_vm0, %v3009_v53, %v3011_v20  ;;  %v2424_v31 = vadd.f32 %v2420_v13, %v2375_v16 }
 0xb56   : > { %v6421_v62 = vadd.f32 %v3013_v59, %v2968_v32  ;;  %3689 = vrot.lane.b32.xlu0 %v3681_v45, %s6806_s11 }
 0xb57   : > { %v2464_v19 = vpop.permute.xlu0 %2463 }
 0xb58   : > { %v2469_v46 = vsel %vm461_vm13, %v2464_v19, %v6256_v56  ;;  %vm6817_vm13 = vmmov %vm6815_vm11 }
 0xb59   : > { %v2473_v28 = vadd.f32 %v2469_v46, %v2424_v31 }
 0xb5a   : > { %3736 = vrot.lane.b32.xlu0 %v3729_v22, %s6806_s11 }
 0xb5b   : > { %v2547_v61 = vadd.f32 %v6284_v12, %v2473_v28  ;;  %v2587_v47 = vpop.permute.xlu0 %2586 }
 0xb5c   : > { %v2592_v18 = vsel %vm685_vm14, %v2587_v47, %v6294_v54 }
 0xb5d   : > { %v2596_v27 = vadd.f32 %v2592_v18, %v2547_v61  ;;  %v3873_v18 = vrot.slane %v3755_v26, %v4841_v8 }
 0xb5f   : > { %v2636_v30 = vpop.permute.xlu0 %2635 }
 0xb60   : > { %v2641_v63 = vsel %vm685_vm14, %v2636_v30, %v6308_v43 }
 0xb61   : > { %v3811_v15 = vpop.permute.xlu1 %3810  ;;  %v2645_v24 = vadd.f32 %v2641_v63, %v2596_v27 }
 0xb63   : > { %v2685_v1 = vpop.permute.xlu0 %2684 }
 0xb64   : > { %v2690_v56 = vsel %vm685_vm14, %v2685_v1, %v6322_v60  ;;  %vm6818_vm14 = vmmov %vm6815_vm11 }
 0xb65   : > { %v2694_v20 = vadd.f32 %v2690_v56, %v2645_v24 }
 0xb66   : > { %v6435_v10 = vpop.permute.xlu1 %3859 }
 0xb67   : > { %v2757_v12 = vadd.f32 %v6355_v44, %v2694_v20  ;;  %v2797_v14 = vpop.permute.xlu0 %2796 }
 0xb68   : > { %v2802_v54 = vsel %vm897_vm15, %v2797_v14, %v6364_v55  ;;  %v3751_v55 = vsel %vm1903_vm12, %v3750_v17, %v6181_v6  ;;  %vm6816_vm12 = vmmov %vm6815_vm11 }
 0xb69   : > { %v2806_v11 = vadd.f32 %v2802_v54, %v2757_v12  ;;  %v3922_v54 = vrot.slane %v3755_v26, %v4860_v33 }
 0xb6a   : > { %v3056_v29 = vpop.permute.xlu1 %3055 }
 0xb6b   : > { %v2846_v25 = vpop.permute.xlu0 %2845 }
 0xb6c   : > { %v2851_v43 = vsel %vm897_vm15, %v2846_v25, %v6379_v36  ;;  %v4329_v36 = vld [vmem:[#allocation2] sm:$0xff] }
 0xb6d   : > { %v2855_v21 = vadd.f32 %v2851_v43, %v2806_v11  ;;  %v3754_v51 = vmul.f32 %v4329_v36, %v3751_v55 }
 0xb6e   : > { %v3058_v39 = vpop.permute.xlu1 %3057 }
 0xb6f   : > { %v3061_v49 = vsel %vm1108_vm0, %v3056_v29, %v3058_v39  ;;  %v2895_v60 = vpop.permute.xlu0 %2894  ;;  %v3767_v3 = vrot.slane %v3754_v51, %v4752_v4  ;;  %v3771_v41 = vrot.slane %v3754_v51, %v4825_v58  ;;  %v3820_v45 = vrot.slane %v3754_v51, %v4822_v57 }
 0xb70   : > { %v2900_v44 = vsel %vm897_vm15, %v2895_v60, %v6392_v2  ;;  %v3816_v2 = vrot.slane %v3754_v51, %v4755_v5  ;;  %v3865_v46 = vrot.slane %v3754_v51, %v4841_v8  ;;  %v3839_v57 = vrot.slane %v3824_v37, %v4755_v5  ;;  %vm6819_vm15 = vmmov %vm6815_vm11 }
 0xb71   : > { %v2904_v42 = vadd.f32 %v2900_v44, %v2855_v21  ;;  %v3782_v16 = vrot.slane %v3767_v3, %v4752_v4  ;;  %v3786_v6 = vrot.slane %v3771_v41, %v4752_v4  ;;  %v3835_v28 = vrot.slane %v3820_v45, %v4755_v5 }
 0xb72   : > { %v3105_v7 = vpop.permute.xlu1 %3104  ;;  %v3831_v13 = vrot.slane %v3816_v2, %v4755_v5  ;;  %v3869_v61 = vrot.slane %v3754_v51, %v4844_v9  ;;  %v3842_v47 = vmul.f32 %v3839_v57, %v3811_v15  ;;  %v3880_v30 = vrot.slane %v3865_v46, %v4841_v8 }
 0xb73   : > { %v2967_v35 = vadd.f32 %v2963_v23, %v2904_v42  ;;  %v3007_v38 = vpop.permute.xlu0 %3006  ;;  %v3775_v23 = vrot.slane %v3755_v26, %v4752_v4  ;;  %v3914_v5 = vrot.slane %v3754_v51, %v4860_v33  ;;  %v3918_v14 = vrot.slane %v3754_v51, %v4863_v34 }
 0xb74   : > { %v3012_v0 = vsel %vm1108_vm0, %v3007_v38, %v3009_v53  ;;  %v3840_v59 = vmul.f32 %v3831_v13, %v3811_v15  ;;  %v3884_v24 = vrot.slane %v3869_v61, %v4841_v8  ;;  %v3889_v56 = vmul.f32 %v3880_v30, %v6435_v10 }
 0xb75   : > { %v3016_v48 = vadd.f32 %v3012_v0, %v2967_v35  ;;  %v3790_v58 = vrot.slane %v3775_v23, %v4752_v4  ;;  %v3841_v4 = vmul.f32 %v3835_v28, %v3811_v15  ;;  %v3888_v15 = vrot.slane %v3873_v18, %v4841_v8 }
 0xb76   : > { %v3109_v31 = vpop.permute.xlu1 %3108  ;;  %v3890_v20 = vmul.f32 %v3884_v24, %v6435_v10  ;;  %v3933_v34 = vrot.slane %v3918_v14, %v4860_v33  ;;  %v3937_v60 = vrot.slane %v3922_v54, %v4860_v33 }
 0xb77   : > { %v3065_v50 = vadd.f32 %v3061_v49, %v3016_v48  ;;  %v3891_v8 = vmul.f32 %v3888_v15, %v6435_v10 }
 0xb7a   : > { %v3170_v1 = vpop.permute.xlu1 %3169 }
 0xb7e   : > { %v3217_v21 = vpop.permute.xlu1 %3216 }
 0xb80   : > { %v3760_v32 = vpop.permute.xlu0 %3759 }
 0xb81   : > { %v3791_v40 = vmul.f32 %v3782_v16, %v3760_v32  ;;  %v3792_v53 = vmul.f32 %v3786_v6, %v3760_v32  ;;  %v3793_v19 = vmul.f32 %v3790_v58, %v3760_v32 }
 0xb82   : > { %v3221_v35 = vpop.permute.xlu1 %3220 }
 0xb83   : > { %3799 = vrot.lane.b32.xlu1 %v3792_v53, %s4565_s12  ;;  %3797 = vrot.lane.b32.xlu0 %v3791_v40, %s4565_s12 }
 0xb85   : > { %v3909_v22 = vpop.permute.xlu0 %3908 }
 0xb86   : > { %v3939_v17 = vmul.f32 %v3933_v34, %v3909_v22  ;;  %v3940_v44 = vmul.f32 %v3937_v60, %v3909_v22  ;;  %v3268_v38 = vpop.permute.xlu1 %3267 }
 0xb87   : > { %3846 = vrot.lane.b32.xlu1 %v3840_v59, %s4565_s12  ;;  %3801 = vrot.lane.b32.xlu0 %v3793_v19, %s4565_s12 }
 0xb89   : > { %v3060_v27 = vpop.permute.xlu0 %3059 }
 0xb8a   : > { %v3062_v63 = vsel %vm1108_vm0, %v3058_v39, %v3060_v27  ;;  %v3315_v0 = vpop.permute.xlu1 %3314 }
 0xb8b   : > { %v3066_v9 = vadd.f32 %v3062_v63, %v6421_v62  ;;  %3850 = vrot.lane.b32.xlu1 %v3842_v47, %s4565_s12  ;;  %3848 = vrot.lane.b32.xlu0 %v3841_v4, %s4565_s12  ;;  %v3929_v62 = vrot.slane %v3914_v5, %v4860_v33 }
 0xb8d   : > { %v3107_v12 = vpop.permute.xlu0 %3106  ;;  %v3938_v39 = vmul.f32 %v3929_v62, %v3909_v22 }
 0xb8e   : > { %v3110_v11 = vsel %vm1108_vm0, %v3105_v7, %v3107_v12  ;;  %v3111_v29 = vsel %vm1108_vm0, %v3107_v12, %v3109_v31  ;;  %v3319_v36 = vpop.permute.xlu1 %3318  ;;  %vm6820_vm0 = vmmov %vm6815_vm11 }
 0xb8f   : > { %v3114_v25 = vadd.f32 %v3110_v11, %v3065_v50  ;;  %v3115_v43 = vadd.f32 %v3111_v29, %v3066_v9  ;;  %3897 = vrot.lane.b32.xlu1 %v3890_v20, %s4565_s12  ;;  %3895 = vrot.lane.b32.xlu0 %v3889_v56, %s4565_s12  ;;  %vm6821_vm1 = vmmov %vm6820_vm0 }
 0xb90   : > { %vm6822_vm2 = vmmov %vm6820_vm0 }
 0xb91   : > { %v3168_v49 = vpop.permute.xlu0 %3167 }
 0xb92   : > { %v3380_v33 = vpop.permute.xlu1 %3379  ;;  %v3173_v19 = vsel %vm6807_vm3, %v3168_v49, %v3170_v1  ;;  %vm6823_vm3 = vcmask 777216  }
 0xb93   : > { %3899 = vrot.lane.b32.xlu0 %v3891_v8, %s4565_s12  ;;  %3944 = vrot.lane.b32.xlu1 %v3938_v39, %s4565_s12  ;;  %v3177_v4 = vadd.f32 %v3173_v19, %v3114_v25 }
 0xb95   : > { %v3172_v42 = vpop.permute.xlu0 %3171 }
 0xb96   : > { %v3427_v52 = vpop.permute.xlu1 %3426  ;;  %v3174_v22 = vsel %vm6808_vm4, %v3170_v1, %v3172_v42  ;;  %vm6824_vm4 = vmmov %vm6823_vm3 }
 0xb97   : > { %3946 = vrot.lane.b32.xlu0 %v3939_v17, %s4565_s12  ;;  %3948 = vrot.lane.b32.xlu1 %v3940_v44, %s4565_s12  ;;  %v3178_v47 = vadd.f32 %v3174_v22, %v3115_v43 }
 0xb99   : > { %v3219_v10 = vpop.permute.xlu0 %3218 }
 0xb9a   : > { %v3431_v3 = vpop.permute.xlu1 %3430  ;;  %v3222_v57 = vsel %vm6809_vm5, %v3217_v21, %v3219_v10  ;;  %v3223_v61 = vsel %vm6810_vm6, %v3219_v10, %v3221_v35  ;;  %vm6825_vm5 = vmmov %vm6823_vm3 }
 0xb9b   : > { %v3226_v30 = vadd.f32 %v3222_v57, %v3177_v4  ;;  %v3227_v63 = vadd.f32 %v3223_v61, %v3178_v47  ;;  %vm6826_vm6 = vmmov %vm6823_vm3 }
 0xb9d   : > { %v3266_v55 = vpop.permute.xlu0 %3265 }
 0xb9e   : > { %v3478_v2 = vpop.permute.xlu1 %3477  ;;  %v3271_v18 = vsel %vm6811_vm7, %v3266_v55, %v3268_v38  ;;  %vm6827_vm7 = vmmov %vm6823_vm3 }
 0xb9f   : > { %v3275_v9 = vadd.f32 %v3271_v18, %v3226_v30  ;;  %v4330_v18 = vld [vmem:[%s4733_s13] sm:$0xff]  ;;  %s4116_s13 = sshll.u32 %s4615_s19, 7  ;;  %s4568_s19 = smov [#allocation11]  }
 0xba0   : > { %s3990_s10 = scalar_lea.hbm %s6566_s4, %s4116_s13  ;;  %s4441_s28 = sshll.u32 %s4568_s19, 4  ;;  %s4442_s28 = int_to_ptr.vmem [resolvable:$false] %s4441_s28 }
 0xba1   : > { %v3270_v48 = vpop.permute.xlu0 %3269  ;;  %s4443_s29 = scalar_lea.vmem %s4442_s28, 256  ;;  %p4444_p13 = scmp.lt.s32.totalorder %s3993_s6, %s4442_s28 }
 0xba2   : > { %v3525_v23 = vpop.permute.xlu1 %3524  ;;  %v3272_v27 = vsel %vm6812_vm8, %v3268_v38, %v3270_v48  ;;  %vm6828_vm8 = vmmov %vm6823_vm3  ;;  %p4445_p0 = scmp.lt.s32.totalorder %s4443_s29, %s4437_s24 }
 0xba3   : > { %v3276_v1 = vadd.f32 %v3272_v27, %v3227_v63  ;;  %v3956_v27 = vcombine.high %v4330_v18, %v4330_v18 }
 0xba4   : > { %p4446_p1 = por %p4445_p0, %p4444_p13 }
 0xba5   : > { %v3317_v51 = vpop.permute.xlu0 %3316 }
 0xba6   : > { %v3529_v6 = vpop.permute.xlu1 %3528  ;;  %v3320_v24 = vsel %vm6813_vm9, %v3315_v0, %v3317_v51  ;;  %v3321_v5 = vsel %vm6814_vm10, %v3317_v51, %v3319_v36  ;;  %vm6829_vm9 = vmmov %vm6823_vm3  ;;  %p4447_p3 = pnand %p4446_p1, %p4440_p10 }
 0xba7   : > { %v3324_v14 = vadd.f32 %v3320_v24, %v3275_v9  ;;  %v3325_v54 = vadd.f32 %v3321_v5, %v3276_v1  ;;  %vm6830_vm10 = vmmov %vm6823_vm3 }
 0xba9   : > { %v3378_v50 = vpop.permute.xlu0 %3377 }
 0xbaa   : > { %v3590_v40 = vpop.permute.xlu1 %3589  ;;  %v3383_v20 = vsel %vm6815_vm11, %v3378_v50, %v3380_v33  ;;  %vm6831_vm11 = vcmask 769024  }
 0xbab   : > { %v3387_v62 = vadd.f32 %v3383_v20, %v3324_v14 }
 0xbad   : > { %v3382_v26 = vpop.permute.xlu0 %3381 }
 0xbae   : > { %v3637_v45 = vpop.permute.xlu1 %3636  ;;  %v3384_v12 = vsel %vm6816_vm12, %v3380_v33, %v3382_v26  ;;  %vm6832_vm12 = vmmov %vm6831_vm11 }
 0xbaf   : > { %v3388_v25 = vadd.f32 %v3384_v12, %v3325_v54 }
 0xbb1   : > { %v3429_v41 = vpop.permute.xlu0 %3428 }
 0xbb2   : > { %v3641_v13 = vpop.permute.xlu1 %3640  ;;  %v3432_v11 = vsel %vm6817_vm13, %v3427_v52, %v3429_v41  ;;  %v3433_v29 = vsel %vm6818_vm14, %v3429_v41, %v3431_v3  ;;  %vm6833_vm13 = vmmov %vm6831_vm11 }
 0xbb3   : > { %v3436_v49 = vadd.f32 %v3432_v11, %v3387_v62  ;;  %v3437_v34 = vadd.f32 %v3433_v29, %v3388_v25  ;;  %vm6834_vm14 = vmmov %vm6831_vm11 }
 0xbb5   : > { %v3476_v7 = vpop.permute.xlu0 %3475 }
 0xbb6   : > { %v3688_v59 = vpop.permute.xlu1 %3687  ;;  %v3481_v21 = vsel %vm6819_vm15, %v3476_v7, %v3478_v2  ;;  %vm6835_vm15 = vmmov %vm6831_vm11 }
 0xbb7   : > { %v3485_v44 = vadd.f32 %v3481_v21, %v3436_v49 }
 0xbb9   : > { %v3480_v16 = vpop.permute.xlu0 %3479 }
 0xbba   : > { %v3735_v46 = vpop.permute.xlu1 %3734  ;;  %v3482_v39 = vsel %vm6820_vm0, %v3478_v2, %v3480_v16  ;;  %vm6836_vm0 = vmmov %vm6831_vm11 }
 0xbbb   : > { %v3486_v42 = vadd.f32 %v3482_v39, %v3437_v34 }
 0xbbd   : > { %v3527_v32 = vpop.permute.xlu0 %3526 }
 0xbbe   : > { %v3739_v15 = vpop.permute.xlu1 %3738  ;;  %v3530_v60 = vsel %vm6821_vm1, %v3525_v23, %v3527_v32  ;;  %v3531_v17 = vsel %vm6822_vm2, %v3527_v32, %v3529_v6  ;;  %vm6837_vm1 = vmmov %vm6836_vm0 }
 0xbbf   : > { %v3534_v0 = vadd.f32 %v3530_v60, %v3485_v44  ;;  %v3535_v48 = vadd.f32 %v3531_v17, %v3486_v42  ;;  %vm6838_vm2 = vmmov %vm6836_vm0 }
 0xbc1   : > { %v3588_v53 = vpop.permute.xlu0 %3587 }
 0xbc2   : > { %v3593_v38 = vsel %vm6823_vm3, %v3588_v53, %v3590_v40 }
 0xbc3   : > { %v3597_v33 = vadd.f32 %v3593_v38, %v3534_v0 }
 0xbc5   : > { %v3592_v37 = vpop.permute.xlu0 %3591 }
 0xbc6   : > { %v3594_v55 = vsel %vm6824_vm4, %v3590_v40, %v3592_v37 }
 0xbc7   : > { %v3598_v50 = vadd.f32 %v3594_v55, %v3535_v48 }
 0xbc9   : > { %v3639_v58 = vpop.permute.xlu0 %3638 }
 0xbca   : > { %v3642_v36 = vsel %vm6825_vm5, %v3637_v45, %v3639_v58  ;;  %v3643_v51 = vsel %vm6826_vm6, %v3639_v58, %v3641_v13 }
 0xbcb   : > { %v3646_v2 = vadd.f32 %v3642_v36, %v3597_v33  ;;  %v3647_v7 = vadd.f32 %v3643_v51, %v3598_v50 }
 0xbcd   : > { %v3686_v31 = vpop.permute.xlu0 %3685 }
 0xbce   : > { %v3691_v3 = vsel %vm6827_vm7, %v3686_v31, %v3688_v59 }
 0xbcf   : > { %v3695_v6 = vadd.f32 %v3691_v3, %v3646_v2 }
 0xbd1   : > { %v3690_v28 = vpop.permute.xlu0 %3689 }
 0xbd2   : > { %v3692_v41 = vsel %vm6828_vm8, %v3688_v59, %v3690_v28 }
 0xbd3   : > { %v3696_v32 = vadd.f32 %v3692_v41, %v3647_v7 }
 0xbd5   : > { %v3737_v56 = vpop.permute.xlu0 %3736 }
 0xbd6   : > { %v3740_v23 = vsel %vm6829_vm9, %v3735_v46, %v3737_v56  ;;  %v3741_v16 = vsel %vm6830_vm10, %v3737_v56, %v3739_v15 }
 0xbd7   : > { %v3744_v13 = vadd.f32 %v3740_v23, %v3695_v6  ;;  %v3745_v58 = vadd.f32 %v3741_v16, %v3696_v32 }
 0xbf5   : > { %v3800_v43 = vpop.permute.xlu1 %3799  ;;  %v3798_v8 = vpop.permute.xlu0 %3797 }
 0xbf6   : > { %v3803_v45 = vsel %vm6831_vm11, %v3798_v8, %v3800_v43 }
 0xbf7   : > { %v3807_v19 = vadd.f32 %v3803_v45, %v3744_v13 }
 0xbf9   : > { %v3847_v35 = vpop.permute.xlu1 %3846  ;;  %v3802_v10 = vpop.permute.xlu0 %3801 }
 0xbfa   : > { %v3804_v37 = vsel %vm6832_vm12, %v3800_v43, %v3802_v10 }
 0xbfb   : > { %v3808_v22 = vadd.f32 %v3804_v37, %v3745_v58 }
 0xbfd   : > { %v3851_v52 = vpop.permute.xlu1 %3850  ;;  %v3849_v26 = vpop.permute.xlu0 %3848 }
 0xbfe   : > { %v3852_v31 = vsel %vm6833_vm13, %v3847_v35, %v3849_v26  ;;  %v3853_v59 = vsel %vm6834_vm14, %v3849_v26, %v3851_v52 }
 0xbff   : > { %v3856_v4 = vadd.f32 %v3852_v31, %v3807_v19  ;;  %v3857_v47 = vadd.f32 %v3853_v59, %v3808_v22 }
 0xc01   : > { %v3898_v40 = vpop.permute.xlu1 %3897  ;;  %v3896_v53 = vpop.permute.xlu0 %3895 }
 0xc02   : > { %v3901_v57 = vsel %vm6835_vm15, %v3896_v53, %v3898_v40 }
 0xc03   : > { %v3905_v30 = vadd.f32 %v3901_v57, %v3856_v4 }
 0xc05   : > { %v3945_v46 = vpop.permute.xlu1 %3944  ;;  %v3900_v28 = vpop.permute.xlu0 %3899 }
 0xc06   : > { %v3902_v61 = vsel %vm6836_vm0, %v3898_v40, %v3900_v28 }
 0xc07   : > { %v3906_v63 = vadd.f32 %v3902_v61, %v3857_v47 }
 0xc09   : > { %v3949_v24 = vpop.permute.xlu1 %3948  ;;  %v3947_v5 = vpop.permute.xlu0 %3946 }
 0xc0a   : > { %v3950_v9 = vsel %vm6837_vm1, %v3945_v46, %v3947_v5  ;;  %v3951_v1 = vsel %vm6838_vm2, %v3947_v5, %v3949_v24 }
 0xc0b   : > { %v3954_v15 = vadd.f32 %v3950_v9, %v3905_v30  ;;  %v3955_v56 = vadd.f32 %v3951_v1, %v3906_v63 }
 0xc0d   : > { %v3958_v20 = vadd.f32 %v4330_v18, %v3954_v15  ;;  %v3959_v12 = vadd.f32 %v3956_v27, %v3955_v56 }
 0xc0f   : > { %v3962_v14 = vmin.f32 %v3958_v20, 0.0  ;;  %v3963_v54 = vmin.f32 %v3959_v12, 0.0  ;;  %vm3960_vm3 = vcmp.gt.f32.partialorder %v3958_v20, 0.0  ;;  %vm3961_vm4 = vcmp.gt.f32.partialorder %v3959_v12, 0.0 }
 0xc11   : > { %v3964_v11 = vmul.f32 1.442695, %v3962_v14  ;;  %v3966_v29 = vmul.f32 1.442695, %v3963_v54 }
 0xc13   : > { %4324 = vpow2.f32 %v3964_v11 }
 0xc14   : > { %4326 = vpow2.f32 %v3966_v29 }
 0xc20   : > { %v4325_v62 = vpop.eup %4324 }
 0xc21   : > { %v4327_v25 = vpop.eup %4326  ;;  %v4108_v43 = vadd.f32 -1.0, %v4325_v62 }
 0xc22   : > { %v4109_v8 = vadd.f32 -1.0, %v4327_v25 }
 0xc23   : > { %v3970_v21 = vsel %vm3960_vm3, %v3958_v20, %v4108_v43 }
 0xc24   : > { %v3971_v39 = vsel %vm3961_vm4, %v3959_v12, %v4109_v8 }
 0xc25   : > { %v3974_v49 = vcombine.low %v3970_v21, %v3971_v39 }
 0xc27   : > { %3976 = vst [vmem:[%s251_s23] sm:$0xff] %v3974_v49 }
 0xc28   : > { %4450 = shalt.err (!%p4447_p3)
}
 0xc29   : > { %s4451_s27 = scalar_lea.hbm %s3990_s10, 128  ;;  %s4455_s5 = scalar_lea.hbm %s6566_s4, 256 }
 0xc2a   : > { %p4452_p4 = scmp.ne.s32.totalorder %s3990_s10, %s4451_s27  ;;  %p4456_p2 = scmp.lt.s32.totalorder %s3990_s10, %s6566_s4 }
 0xc2b   : > { %p4457_p6 = scmp.lt.s32.totalorder %s4455_s5, %s4451_s27 }
 0xc2c   : > { %p4453_p9 = pnand %p4452_p4, %p6840_p5 }
 0xc2d   : > { %p4458_p8 = por %p4457_p6, %p4456_p2 }
 0xc2e   : > { %p4454_p11 = pneg %p4453_p9 }
 0xc30   : > { %p4459_p12 = pnand %p4458_p8, %p4454_p11 }
 0xc32   : > { %4462 = shalt.err (!%p4459_p12)
}
 0xc33   : > { %4131 = dma.vmem_to_hbm [thread:$0]  (%p6840_p5), %s3993_s6, 128, %s3990_s10, %s3978_s20  }
 0xc34 PF: > { %s4004_s13 = sand.u32 1, %s4497_s15   ;;  %p6841_p7 = scmp.ne.s32.totalorder %s6638_s22, 0 }
 0xc35   : > { %p6842_p10 = scmp.ge.s32.totalorder %s4509_s18, 2  ;;  %s4005_s21 = scalar_lea.sflag [#allocation5], %s4004_s13 }
 0xc37   : > { %p4148_p13 = pnand %p6842_p10, %p6841_p7 }
 0xc39   : > { %p4149_p0 = pneg %p4148_p13 }
 0xc3b   : > { %4492 = dma.done.wait (%p4149_p0), %s4005_s21, 128  }
 0xc3c   : > { %4494 = vsyncadd (%p4149_p0), %s4005_s21, 4294967168  ;;  %p19_p1 = scmp.ge.s32.totalorder %s4681_s14, 4   ;;  %s6843_s15 = smov %s4501_s16 }
 0xc3d   : > { %s6844_s16 = smov %s4505_s17  ;;  %s6845_s17 = smov %s4691_s25 }
 0xc3e   : > { %s6846_s18 = smov %s4681_s14  ;;  %21 = sbr.rel (!%p19_p1) target bundleno = 7 (0x7), region = 95 }
 0xc43   :  { %4010 = vsyncpa [#allocation4], 1 }
 0xc44   :  { %4012 = vsyncpa [#allocation4 + $0x1], 1 }
 0xc45   :  { %4013 = vsyncpa [#allocation7], 1 }
 0xc46   :  { %4014 = vsyncpa [#allocation10], 1 }
 0xc47   :  { %4015 = vsyncpa [#allocation5], 1 }
 0xc48   :  { %4017 = vsyncpa [#allocation5 + $0x1], 1 }

</bundles_post_ra>
